<compile_context>
chip_gen: v7x
topology: tpu7x:2x2x1
jax: 0.10.0
libtpu: 0.0.40
codegen_flags: <defaults>
</compile_context>

<pallas_src>
import functools

import jax
import jax.numpy as jnp
from jax import lax
from jax.experimental import pallas as pl
from jax.experimental.pallas import tpu as pltpu  # noqa: F401  (TPU backend)

# ----------------------------- model config (scaled-down BERT) --------------
VOCAB = 64          # tiny synthetic vocab
HIDDEN = 32         # "bert_emb_dim" (768 in real BERT)
NUM_HEADS = 4
HEAD_DIM = HIDDEN // NUM_HEADS
FFN = 64
NUM_LAYERS = 2
MAX_POS = 64
LN_EPS = 1e-12      # BERT LayerNorm eps

# Packed per-layer vector params: rows of one [8, VEC_W] f32 array.
#   row 0: b_o (H)   row 1: b_1 (F)   row 2: b_2 (H)
#   row 3: ln1_g (H) row 4: ln1_b (H) row 5: ln2_g (H) row 6: ln2_b (H)
VEC_W = max(FFN, HIDDEN)


# ----------------------------- shared math helpers ---------------------------
def _layernorm(x, g, b):
    # One-pass statistics: both reductions are independent (can overlap on XLU).
    mu = jnp.mean(x, axis=-1, keepdims=True)
    ms = jnp.mean(x * x, axis=-1, keepdims=True)
    var = ms - mu * mu
    return (x - mu) * lax.rsqrt(var + LN_EPS) * g + b


# ----------------------------- fused encoder-stack kernel --------------------
def encoder_stack_kernel(x_ref, wqkv_ref, bqkv_ref, wo_ref, w1_ref, w2_ref,
                         vec_ref, o_ref, *, batch, seq):
    """Single invocation: the whole L-layer encoder over the [B*S, H] batch.

    All per-head weights are indexed along leading axes (free), so there are
    no lane slices and no head concatenate on the serial critical path.
    """
    bs = batch * seq
    x = x_ref[...]                                  # [BS, H] f32, resident

    for l in range(NUM_LAYERS):                     # static unroll over layers
        vec = vec_ref[l]                            # [8, VEC_W] f32
        b_o = vec[0:1, :HIDDEN]
        b_1 = vec[1:2, :FFN]
        b_2 = vec[2:3, :HIDDEN]
        ln1_g, ln1_b = vec[3:4, :HIDDEN], vec[4:5, :HIDDEN]
        ln2_g, ln2_b = vec[5:6, :HIDDEN], vec[6:7, :HIDDEN]

        # ---- multi-head self-attention: per-head projections + partial Wo sums
        attn = b_o                                  # [1, H], broadcasts on first add
        for h in range(NUM_HEADS):                  # short static unroll over heads
            iq = (l * 3 + 0) * NUM_HEADS + h
            ik = (l * 3 + 1) * NUM_HEADS + h
            iv = (l * 3 + 2) * NUM_HEADS + h
            # Softmax scale is pre-folded into the Q weight/bias (frozen params).
            q = (jnp.dot(x, wqkv_ref[iq], preferred_element_type=jnp.float32)
                 + bqkv_ref[iq]).reshape(batch, seq, HEAD_DIM)
            k = (jnp.dot(x, wqkv_ref[ik], preferred_element_type=jnp.float32)
                 + bqkv_ref[ik]).reshape(batch, seq, HEAD_DIM)
            v = (jnp.dot(x, wqkv_ref[iv], preferred_element_type=jnp.float32)
                 + bqkv_ref[iv]).reshape(batch, seq, HEAD_DIM)

            s = jnp.einsum('bqd,bkd->bqk', q, k,
                           preferred_element_type=jnp.float32)       # [B,S,S]
            s = s - jnp.max(s, axis=-1, keepdims=True)
            p = jnp.exp(s)
            # approx reciprocal (EUP slot); small accuracy trade-off vs exact div.
            p = p * pl.reciprocal(jnp.sum(p, axis=-1, keepdims=True), approx=True)
            ctx = jnp.einsum('bqk,bkd->bqd', p, v,
                             preferred_element_type=jnp.float32)     # [B,S,hd]
            # Fold the head concat away: sum per-head partial output projections.
            attn = attn + jnp.dot(ctx.reshape(bs, HEAD_DIM),
                                  wo_ref[l * NUM_HEADS + h],
                                  preferred_element_type=jnp.float32)

        h1 = _layernorm(x + attn, ln1_g, ln1_b)                       # f32

        # ---- feed-forward ----------------------------------------------------
        ff = jnp.dot(h1, w1_ref[l], preferred_element_type=jnp.float32) + b_1
        ff = jax.nn.gelu(ff, approximate=True)      # tanh GELU (EUP)
        ff = jnp.dot(ff, w2_ref[l], preferred_element_type=jnp.float32) + b_2

        x = _layernorm(h1 + ff, ln2_g, ln2_b)

    o_ref[...] = x


def encoder_stack(x2, params, *, batch, seq):
    """x2: [B*S, H] float32 embedded activations -> [B*S, H] float32."""
    BS, H = x2.shape
    kernel = functools.partial(encoder_stack_kernel, batch=batch, seq=seq)
    # Single grid step (no grid): everything (activations + all layer weights,
    # < 100 KB) is DMA'd to VMEM once and stays resident.
    return pl.pallas_call(
        kernel,
        out_shape=jax.ShapeDtypeStruct((BS, H), jnp.float32),
    )(x2, params['wqkv'], params['bqkv'], params['wo'],
      params['w1'], params['w2'], params['vec'])


# ----------------------------- parameters ------------------------------------
def init_params(key):
    """Deterministic synthetic BERT parameters (frozen, as in the PyTorch module).

    Returns both the 'raw' standard-layout weights (used by the pure-JAX
    reference) and the kernel-friendly repacked tensors:
      wqkv: [L*3*NH, H, HD]   per-head Q/K/V weights (scale folded into Q)
      bqkv: [L*3*NH, 1, HD]   per-head Q/K/V biases  (scale folded into Q)
      wo:   [L*NH, HD, H]     per-head output-projection rows
      w1:   [L, H, F], w2: [L, F, H]
      vec:  [L, 8, VEC_W]     b_o, b_1, b_2, ln1_{g,b}, ln2_{g,b}
    """
    keys = iter(jax.random.split(key, 5 + 16 * NUM_LAYERS))
    scale = 0.02

    def nrm(shape):
        return (scale * jax.random.normal(next(keys), shape)).astype(jnp.float32)

    params = {
        'tok_emb': nrm((VOCAB, HIDDEN)),
        'pos_emb': nrm((MAX_POS, HIDDEN)),
        'type_emb': nrm((2, HIDDEN)),
        'emb_ln_g': 1.0 + nrm((1, HIDDEN)),
        'emb_ln_b': nrm((1, HIDDEN)),
    }

    names = ('wq', 'wk', 'wv', 'wo', 'bq', 'bk', 'bv', 'bo',
             'w1', 'b1', 'w2', 'b2', 'ln1_g', 'ln1_b', 'ln2_g', 'ln2_b')
    raw = {n: [] for n in names}
    for _ in range(NUM_LAYERS):
        raw['wq'].append(nrm((HIDDEN, HIDDEN)))
        raw['wk'].append(nrm((HIDDEN, HIDDEN)))
        raw['wv'].append(nrm((HIDDEN, HIDDEN)))
        raw['wo'].append(nrm((HIDDEN, HIDDEN)))
        raw['bq'].append(nrm((HIDDEN,)))
        raw['bk'].append(nrm((HIDDEN,)))
        raw['bv'].append(nrm((HIDDEN,)))
        raw['bo'].append(nrm((HIDDEN,)))
        raw['w1'].append(nrm((HIDDEN, FFN)))
        raw['b1'].append(nrm((FFN,)))
        raw['w2'].append(nrm((FFN, HIDDEN)))
        raw['b2'].append(nrm((HIDDEN,)))
        raw['ln1_g'].append(1.0 + nrm((HIDDEN,)))
        raw['ln1_b'].append(nrm((HIDDEN,)))
        raw['ln2_g'].append(1.0 + nrm((HIDDEN,)))
        raw['ln2_b'].append(nrm((HIDDEN,)))
    raw = {k: jnp.stack(v) for k, v in raw.items()}
    params['raw'] = raw

    att_scale = 1.0 / (HEAD_DIM ** 0.5)

    def to_heads_w(w):  # [L, H, H] -> [L, NH, H, HD]
        return w.reshape(NUM_LAYERS, HIDDEN, NUM_HEADS, HEAD_DIM).transpose(0, 2, 1, 3)

    def to_heads_b(b):  # [L, H] -> [L, NH, 1, HD]
        return b.reshape(NUM_LAYERS, NUM_HEADS, 1, HEAD_DIM)

    wq_h = to_heads_w(raw['wq'] * att_scale)     # softmax scale folded into Q
    wk_h = to_heads_w(raw['wk'])
    wv_h = to_heads_w(raw['wv'])
    bq_h = to_heads_b(raw['bq'] * att_scale)
    bk_h = to_heads_b(raw['bk'])
    bv_h = to_heads_b(raw['bv'])

    params['wqkv'] = jnp.stack([wq_h, wk_h, wv_h], axis=1).reshape(
        NUM_LAYERS * 3 * NUM_HEADS, HIDDEN, HEAD_DIM)
    params['bqkv'] = jnp.stack([bq_h, bk_h, bv_h], axis=1).reshape(
        NUM_LAYERS * 3 * NUM_HEADS, 1, HEAD_DIM)
    # Rows h*HD:(h+1)*HD of Wo belong to head h.
    params['wo'] = raw['wo'].reshape(NUM_LAYERS * NUM_HEADS, HEAD_DIM, HIDDEN)
    params['w1'] = raw['w1']
    params['w2'] = raw['w2']

    def pad_rows(v):  # [L, n] -> [L, VEC_W]
        return jnp.pad(v, ((0, 0), (0, VEC_W - v.shape[-1])))

    params['vec'] = jnp.stack([
        pad_rows(raw['bo']), pad_rows(raw['b1']), pad_rows(raw['b2']),
        pad_rows(raw['ln1_g']), pad_rows(raw['ln1_b']),
        pad_rows(raw['ln2_g']), pad_rows(raw['ln2_b']),
        jnp.zeros((NUM_LAYERS, VEC_W), jnp.float32),
    ], axis=1).astype(jnp.float32)                           # [L, 8, VEC_W]
    return params


# ----------------------------- forward ----------------------------------------
@jax.jit
def bert_forward(captions_ids, params):
    """captions_ids: [B, S] int32 (S = max_dec_len + 2, already padded with pad_id).
    Returns per-token embeddings [B, S, HIDDEN]."""
    B, S = captions_ids.shape
    # Embedding gathers + embedding LayerNorm: plain JAX glue (tiny, fused by XLA).
    x = (jnp.take(params['tok_emb'], captions_ids, axis=0)
         + params['pos_emb'][None, :S, :]
         + params['type_emb'][0][None, None, :])
    x = _layernorm(x, params['emb_ln_g'], params['emb_ln_b'])
    # Fused encoder stack (one Pallas call for all layers).
    x2 = x.reshape(B * S, HIDDEN).astype(jnp.float32)
    out = encoder_stack(x2, params, batch=B, seq=S)
    return out.reshape(B, S, HIDDEN)


# ----------------------------- pure-JAX reference ------------------------------
def _ref_forward(captions_ids, params):
    """Standard (unpacked-weight, exact-softmax) multi-head encoder reference."""
    B, S = captions_ids.shape
    r = params['raw']
    x = (jnp.take(params['tok_emb'], captions_ids, axis=0)
         + params['pos_emb'][None, :S, :]
         + params['type_emb'][0][None, None, :])
    x = _layernorm(x, params['emb_ln_g'], params['emb_ln_b'])
    x = x.reshape(B * S, HIDDEN)
    att_scale = 1.0 / (HEAD_DIM ** 0.5)
    for l in range(NUM_LAYERS):
        q = (x @ r['wq'][l] + r['bq'][l]).reshape(B, S, NUM_HEADS, HEAD_DIM)
        k = (x @ r['wk'][l] + r['bk'][l]).reshape(B, S, NUM_HEADS, HEAD_DIM)
        v = (x @ r['wv'][l] + r['bv'][l]).reshape(B, S, NUM_HEADS, HEAD_DIM)
        s = jnp.einsum('bqhd,bkhd->bhqk', q, k) * att_scale
        p = jax.nn.softmax(s, axis=-1)
        ctx = jnp.einsum('bhqk,bkhd->bqhd', p, v).reshape(B * S, HIDDEN)
        attn = ctx @ r['wo'][l] + r['bo'][l]
        h1 = _layernorm(x + attn, r['ln1_g'][l], r['ln1_b'][l])
        ff = jax.nn.gelu(h1 @ r['w1'][l] + r['b1'][l], approximate=True)
        ff = ff @ r['w2'][l] + r['b2'][l]
        x = _layernorm(h1 + ff, r['ln2_g'][l], r['ln2_b'][l])
    return x.reshape(B, S, HIDDEN)


# ----------------------------- main ---------------------------------------------
if __name__ == "__main__":
    key = jax.random.PRNGKey(0)
    k_param, k_ids = jax.random.split(key)

    B = 2
    MAX_DEC_LEN = 14
    S = MAX_DEC_LEN + 2          # +2 for [CLS] and <end>, per the module docstring

    params = init_params(k_param)
    captions_ids = jax.random.randint(k_ids, (B, S), 0, VOCAB, dtype=jnp.int32)

    out = jax.block_until_ready(bert_forward(captions_ids, params))

    assert out.shape == (B, S, HIDDEN), out.shape
    assert bool(jnp.all(jnp.isfinite(out)))
    ref = _ref_forward(captions_ids, params)
    max_err = float(jnp.max(jnp.abs(out - ref)))
    assert jnp.allclose(out, ref, atol=2e-3, rtol=2e-3), max_err

    print("KERNEL_OK")
</pallas_src>

<mosaic_0001>
module attributes {stable_mosaic.version = 11 : i64} {
  func.func @encoder_stack_kernel(%arg0: memref<32x32xf32, #tpu.memory_space<vmem>>, %arg1: memref<24x32x8xf32, #tpu.memory_space<vmem>>, %arg2: memref<24x1x8xf32, #tpu.memory_space<vmem>>, %arg3: memref<8x8x32xf32, #tpu.memory_space<vmem>>, %arg4: memref<2x32x64xf32, #tpu.memory_space<vmem>>, %arg5: memref<2x64x32xf32, #tpu.memory_space<vmem>>, %arg6: memref<2x8x64xf32, #tpu.memory_space<vmem>>, %arg7: memref<32x32xf32, #tpu.memory_space<vmem>>) attributes {dimension_semantics = [], scalar_prefetch = 0 : i64, scratch_operands = 0 : i64, tpu.core_type = #tpu.core_type<tc>} {
    %c0 = arith.constant 0 : index
    %c0_0 = arith.constant 0 : index
    %0 = vector.load %arg0[%c0, %c0_0] : memref<32x32xf32, #tpu.memory_space<vmem>>, vector<32x32xf32>
    %c0_1 = arith.constant 0 : index
    %c0_2 = arith.constant 0 : index
    %c0_3 = arith.constant 0 : index
    %1 = vector.load %arg6[%c0_1, %c0_2, %c0_3] : memref<2x8x64xf32, #tpu.memory_space<vmem>>, vector<1x8x64xf32>
    %2 = vector.shape_cast %1 : vector<1x8x64xf32> to vector<8x64xf32>
    %3 = vector.extract_strided_slice %2 {offsets = [0, 0], sizes = [1, 32], strides = [1, 1]} : vector<8x64xf32> to vector<1x32xf32>
    %4 = vector.extract_strided_slice %2 {offsets = [1, 0], sizes = [1, 64], strides = [1, 1]} : vector<8x64xf32> to vector<1x64xf32>
    %5 = vector.extract_strided_slice %2 {offsets = [2, 0], sizes = [1, 32], strides = [1, 1]} : vector<8x64xf32> to vector<1x32xf32>
    %6 = vector.extract_strided_slice %2 {offsets = [3, 0], sizes = [1, 32], strides = [1, 1]} : vector<8x64xf32> to vector<1x32xf32>
    %7 = vector.extract_strided_slice %2 {offsets = [4, 0], sizes = [1, 32], strides = [1, 1]} : vector<8x64xf32> to vector<1x32xf32>
    %8 = vector.extract_strided_slice %2 {offsets = [5, 0], sizes = [1, 32], strides = [1, 1]} : vector<8x64xf32> to vector<1x32xf32>
    %9 = vector.extract_strided_slice %2 {offsets = [6, 0], sizes = [1, 32], strides = [1, 1]} : vector<8x64xf32> to vector<1x32xf32>
    %c0_4 = arith.constant 0 : index
    %c0_5 = arith.constant 0 : index
    %c0_6 = arith.constant 0 : index
    %10 = vector.load %arg1[%c0_4, %c0_5, %c0_6] : memref<24x32x8xf32, #tpu.memory_space<vmem>>, vector<1x32x8xf32>
    %11 = vector.shape_cast %10 : vector<1x32x8xf32> to vector<32x8xf32>
    %cst = arith.constant dense<0.000000e+00> : vector<32x8xf32>
    %12 = tpu.matmul %0, %11, %cst {dimension_numbers = #tpu.dot_dimension_numbers<[1], [0], [0], [1], [0, 0, 1, 1], [], []>} : vector<32x32xf32>, vector<32x8xf32>, vector<32x8xf32> -> vector<32x8xf32>
    %c0_7 = arith.constant 0 : index
    %c0_8 = arith.constant 0 : index
    %c0_9 = arith.constant 0 : index
    %13 = vector.load %arg2[%c0_7, %c0_8, %c0_9] : memref<24x1x8xf32, #tpu.memory_space<vmem>>, vector<1x1x8xf32>
    %14 = vector.shape_cast %13 : vector<1x1x8xf32> to vector<1x8xf32>
    %15 = vector.broadcast %14 : vector<1x8xf32> to vector<32x8xf32>
    %16 = arith.addf %12, %15 : vector<32x8xf32>
    %17 = vector.shape_cast %16 : vector<32x8xf32> to vector<2x16x8xf32>
    %c4 = arith.constant 4 : index
    %c0_10 = arith.constant 0 : index
    %c0_11 = arith.constant 0 : index
    %18 = vector.load %arg1[%c4, %c0_10, %c0_11] : memref<24x32x8xf32, #tpu.memory_space<vmem>>, vector<1x32x8xf32>
    %19 = vector.shape_cast %18 : vector<1x32x8xf32> to vector<32x8xf32>
    %cst_12 = arith.constant dense<0.000000e+00> : vector<32x8xf32>
    %20 = tpu.matmul %0, %19, %cst_12 {dimension_numbers = #tpu.dot_dimension_numbers<[1], [0], [0], [1], [0, 0, 1, 1], [], []>} : vector<32x32xf32>, vector<32x8xf32>, vector<32x8xf32> -> vector<32x8xf32>
    %c4_13 = arith.constant 4 : index
    %c0_14 = arith.constant 0 : index
    %c0_15 = arith.constant 0 : index
    %21 = vector.load %arg2[%c4_13, %c0_14, %c0_15] : memref<24x1x8xf32, #tpu.memory_space<vmem>>, vector<1x1x8xf32>
    %22 = vector.shape_cast %21 : vector<1x1x8xf32> to vector<1x8xf32>
    %23 = vector.broadcast %22 : vector<1x8xf32> to vector<32x8xf32>
    %24 = arith.addf %20, %23 : vector<32x8xf32>
    %25 = vector.shape_cast %24 : vector<32x8xf32> to vector<2x16x8xf32>
    %c8 = arith.constant 8 : index
    %c0_16 = arith.constant 0 : index
    %c0_17 = arith.constant 0 : index
    %26 = vector.load %arg1[%c8, %c0_16, %c0_17] : memref<24x32x8xf32, #tpu.memory_space<vmem>>, vector<1x32x8xf32>
    %27 = vector.shape_cast %26 : vector<1x32x8xf32> to vector<32x8xf32>
    %cst_18 = arith.constant dense<0.000000e+00> : vector<32x8xf32>
    %28 = tpu.matmul %0, %27, %cst_18 {dimension_numbers = #tpu.dot_dimension_numbers<[1], [0], [0], [1], [0, 0, 1, 1], [], []>} : vector<32x32xf32>, vector<32x8xf32>, vector<32x8xf32> -> vector<32x8xf32>
    %c8_19 = arith.constant 8 : index
    %c0_20 = arith.constant 0 : index
    %c0_21 = arith.constant 0 : index
    %29 = vector.load %arg2[%c8_19, %c0_20, %c0_21] : memref<24x1x8xf32, #tpu.memory_space<vmem>>, vector<1x1x8xf32>
    %30 = vector.shape_cast %29 : vector<1x1x8xf32> to vector<1x8xf32>
    %31 = vector.broadcast %30 : vector<1x8xf32> to vector<32x8xf32>
    %32 = arith.addf %28, %31 : vector<32x8xf32>
    %33 = vector.shape_cast %32 : vector<32x8xf32> to vector<2x16x8xf32>
    "tpu.trace_start"() <{level = 10 : i32, message = "bqd,bkd->bqk"}> : () -> ()
    %cst_22 = arith.constant dense<0.000000e+00> : vector<2x16x16xf32>
    %34 = tpu.matmul %17, %25, %cst_22 {dimension_numbers = #tpu.dot_dimension_numbers<[2], [2], [1], [1], [0, 0, 0, 1, 1, 1], [0], [0]>} : vector<2x16x8xf32>, vector<2x16x8xf32>, vector<2x16x16xf32> -> vector<2x16x16xf32>
    "tpu.trace_stop"() : () -> ()
    %cst_23 = arith.constant dense<0xFF800000> : vector<2x16xf32>
    %35 = vector.multi_reduction <maximumf>, %34, %cst_23 [2] : vector<2x16x16xf32> to vector<2x16xf32>
    %36 = vector.shape_cast %35 : vector<2x16xf32> to vector<2x16x1xf32>
    %37 = vector.broadcast %36 : vector<2x16x1xf32> to vector<2x16x16xf32>
    %38 = arith.subf %34, %37 : vector<2x16x16xf32>
    %39 = math.exp %38 : vector<2x16x16xf32>
    %cst_24 = arith.constant dense<0.000000e+00> : vector<2x16xf32>
    %40 = vector.multi_reduction <add>, %39, %cst_24 [2] : vector<2x16x16xf32> to vector<2x16xf32>
    %41 = vector.shape_cast %40 : vector<2x16xf32> to vector<2x16x1xf32>
    %42 = tpu.reciprocal %41 {approx = true} : vector<2x16x1xf32> -> vector<2x16x1xf32>
    %43 = vector.broadcast %42 : vector<2x16x1xf32> to vector<2x16x16xf32>
    %44 = arith.mulf %39, %43 : vector<2x16x16xf32>
    "tpu.trace_start"() <{level = 10 : i32, message = "bqk,bkd->bqd"}> : () -> ()
    %cst_25 = arith.constant dense<0.000000e+00> : vector<2x16x8xf32>
    %45 = tpu.matmul %44, %33, %cst_25 {dimension_numbers = #tpu.dot_dimension_numbers<[2], [1], [1], [2], [0, 0, 0, 1, 1, 2], [0], [0]>} : vector<2x16x16xf32>, vector<2x16x8xf32>, vector<2x16x8xf32> -> vector<2x16x8xf32>
    "tpu.trace_stop"() : () -> ()
    %46 = vector.shape_cast %45 : vector<2x16x8xf32> to vector<32x8xf32>
    %c0_26 = arith.constant 0 : index
    %c0_27 = arith.constant 0 : index
    %c0_28 = arith.constant 0 : index
    %47 = vector.load %arg3[%c0_26, %c0_27, %c0_28] : memref<8x8x32xf32, #tpu.memory_space<vmem>>, vector<1x8x32xf32>
    %48 = vector.shape_cast %47 : vector<1x8x32xf32> to vector<8x32xf32>
    %cst_29 = arith.constant dense<0.000000e+00> : vector<32x32xf32>
    %49 = tpu.matmul %46, %48, %cst_29 {dimension_numbers = #tpu.dot_dimension_numbers<[1], [0], [0], [1], [0, 0, 1, 1], [], []>} : vector<32x8xf32>, vector<8x32xf32>, vector<32x32xf32> -> vector<32x32xf32>
    %50 = vector.broadcast %3 : vector<1x32xf32> to vector<32x32xf32>
    %51 = arith.addf %50, %49 : vector<32x32xf32>
    %c1 = arith.constant 1 : index
    %c0_30 = arith.constant 0 : index
    %c0_31 = arith.constant 0 : index
    %52 = vector.load %arg1[%c1, %c0_30, %c0_31] : memref<24x32x8xf32, #tpu.memory_space<vmem>>, vector<1x32x8xf32>
    %53 = vector.shape_cast %52 : vector<1x32x8xf32> to vector<32x8xf32>
    %cst_32 = arith.constant dense<0.000000e+00> : vector<32x8xf32>
    %54 = tpu.matmul %0, %53, %cst_32 {dimension_numbers = #tpu.dot_dimension_numbers<[1], [0], [0], [1], [0, 0, 1, 1], [], []>} : vector<32x32xf32>, vector<32x8xf32>, vector<32x8xf32> -> vector<32x8xf32>
    %c1_33 = arith.constant 1 : index
    %c0_34 = arith.constant 0 : index
    %c0_35 = arith.constant 0 : index
    %55 = vector.load %arg2[%c1_33, %c0_34, %c0_35] : memref<24x1x8xf32, #tpu.memory_space<vmem>>, vector<1x1x8xf32>
    %56 = vector.shape_cast %55 : vector<1x1x8xf32> to vector<1x8xf32>
    %57 = vector.broadcast %56 : vector<1x8xf32> to vector<32x8xf32>
    %58 = arith.addf %54, %57 : vector<32x8xf32>
    %59 = vector.shape_cast %58 : vector<32x8xf32> to vector<2x16x8xf32>
    %c5 = arith.constant 5 : index
    %c0_36 = arith.constant 0 : index
    %c0_37 = arith.constant 0 : index
    %60 = vector.load %arg1[%c5, %c0_36, %c0_37] : memref<24x32x8xf32, #tpu.memory_space<vmem>>, vector<1x32x8xf32>
    %61 = vector.shape_cast %60 : vector<1x32x8xf32> to vector<32x8xf32>
    %cst_38 = arith.constant dense<0.000000e+00> : vector<32x8xf32>
    %62 = tpu.matmul %0, %61, %cst_38 {dimension_numbers = #tpu.dot_dimension_numbers<[1], [0], [0], [1], [0, 0, 1, 1], [], []>} : vector<32x32xf32>, vector<32x8xf32>, vector<32x8xf32> -> vector<32x8xf32>
    %c5_39 = arith.constant 5 : index
    %c0_40 = arith.constant 0 : index
    %c0_41 = arith.constant 0 : index
    %63 = vector.load %arg2[%c5_39, %c0_40, %c0_41] : memref<24x1x8xf32, #tpu.memory_space<vmem>>, vector<1x1x8xf32>
    %64 = vector.shape_cast %63 : vector<1x1x8xf32> to vector<1x8xf32>
    %65 = vector.broadcast %64 : vector<1x8xf32> to vector<32x8xf32>
    %66 = arith.addf %62, %65 : vector<32x8xf32>
    %67 = vector.shape_cast %66 : vector<32x8xf32> to vector<2x16x8xf32>
    %c9 = arith.constant 9 : index
    %c0_42 = arith.constant 0 : index
    %c0_43 = arith.constant 0 : index
    %68 = vector.load %arg1[%c9, %c0_42, %c0_43] : memref<24x32x8xf32, #tpu.memory_space<vmem>>, vector<1x32x8xf32>
    %69 = vector.shape_cast %68 : vector<1x32x8xf32> to vector<32x8xf32>
    %cst_44 = arith.constant dense<0.000000e+00> : vector<32x8xf32>
    %70 = tpu.matmul %0, %69, %cst_44 {dimension_numbers = #tpu.dot_dimension_numbers<[1], [0], [0], [1], [0, 0, 1, 1], [], []>} : vector<32x32xf32>, vector<32x8xf32>, vector<32x8xf32> -> vector<32x8xf32>
    %c9_45 = arith.constant 9 : index
    %c0_46 = arith.constant 0 : index
    %c0_47 = arith.constant 0 : index
    %71 = vector.load %arg2[%c9_45, %c0_46, %c0_47] : memref<24x1x8xf32, #tpu.memory_space<vmem>>, vector<1x1x8xf32>
    %72 = vector.shape_cast %71 : vector<1x1x8xf32> to vector<1x8xf32>
    %73 = vector.broadcast %72 : vector<1x8xf32> to vector<32x8xf32>
    %74 = arith.addf %70, %73 : vector<32x8xf32>
    %75 = vector.shape_cast %74 : vector<32x8xf32> to vector<2x16x8xf32>
    "tpu.trace_start"() <{level = 10 : i32, message = "bqd,bkd->bqk"}> : () -> ()
    %cst_48 = arith.constant dense<0.000000e+00> : vector<2x16x16xf32>
    %76 = tpu.matmul %59, %67, %cst_48 {dimension_numbers = #tpu.dot_dimension_numbers<[2], [2], [1], [1], [0, 0, 0, 1, 1, 1], [0], [0]>} : vector<2x16x8xf32>, vector<2x16x8xf32>, vector<2x16x16xf32> -> vector<2x16x16xf32>
    "tpu.trace_stop"() : () -> ()
    %cst_49 = arith.constant dense<0xFF800000> : vector<2x16xf32>
    %77 = vector.multi_reduction <maximumf>, %76, %cst_49 [2] : vector<2x16x16xf32> to vector<2x16xf32>
    %78 = vector.shape_cast %77 : vector<2x16xf32> to vector<2x16x1xf32>
    %79 = vector.broadcast %78 : vector<2x16x1xf32> to vector<2x16x16xf32>
    %80 = arith.subf %76, %79 : vector<2x16x16xf32>
    %81 = math.exp %80 : vector<2x16x16xf32>
    %cst_50 = arith.constant dense<0.000000e+00> : vector<2x16xf32>
    %82 = vector.multi_reduction <add>, %81, %cst_50 [2] : vector<2x16x16xf32> to vector<2x16xf32>
    %83 = vector.shape_cast %82 : vector<2x16xf32> to vector<2x16x1xf32>
    %84 = tpu.reciprocal %83 {approx = true} : vector<2x16x1xf32> -> vector<2x16x1xf32>
    %85 = vector.broadcast %84 : vector<2x16x1xf32> to vector<2x16x16xf32>
    %86 = arith.mulf %81, %85 : vector<2x16x16xf32>
    "tpu.trace_start"() <{level = 10 : i32, message = "bqk,bkd->bqd"}> : () -> ()
    %cst_51 = arith.constant dense<0.000000e+00> : vector<2x16x8xf32>
    %87 = tpu.matmul %86, %75, %cst_51 {dimension_numbers = #tpu.dot_dimension_numbers<[2], [1], [1], [2], [0, 0, 0, 1, 1, 2], [0], [0]>} : vector<2x16x16xf32>, vector<2x16x8xf32>, vector<2x16x8xf32> -> vector<2x16x8xf32>
    "tpu.trace_stop"() : () -> ()
    %88 = vector.shape_cast %87 : vector<2x16x8xf32> to vector<32x8xf32>
    %c1_52 = arith.constant 1 : index
    %c0_53 = arith.constant 0 : index
    %c0_54 = arith.constant 0 : index
    %89 = vector.load %arg3[%c1_52, %c0_53, %c0_54] : memref<8x8x32xf32, #tpu.memory_space<vmem>>, vector<1x8x32xf32>
    %90 = vector.shape_cast %89 : vector<1x8x32xf32> to vector<8x32xf32>
    %cst_55 = arith.constant dense<0.000000e+00> : vector<32x32xf32>
    %91 = tpu.matmul %88, %90, %cst_55 {dimension_numbers = #tpu.dot_dimension_numbers<[1], [0], [0], [1], [0, 0, 1, 1], [], []>} : vector<32x8xf32>, vector<8x32xf32>, vector<32x32xf32> -> vector<32x32xf32>
    %92 = arith.addf %51, %91 : vector<32x32xf32>
    %c2 = arith.constant 2 : index
    %c0_56 = arith.constant 0 : index
    %c0_57 = arith.constant 0 : index
    %93 = vector.load %arg1[%c2, %c0_56, %c0_57] : memref<24x32x8xf32, #tpu.memory_space<vmem>>, vector<1x32x8xf32>
    %94 = vector.shape_cast %93 : vector<1x32x8xf32> to vector<32x8xf32>
    %cst_58 = arith.constant dense<0.000000e+00> : vector<32x8xf32>
    %95 = tpu.matmul %0, %94, %cst_58 {dimension_numbers = #tpu.dot_dimension_numbers<[1], [0], [0], [1], [0, 0, 1, 1], [], []>} : vector<32x32xf32>, vector<32x8xf32>, vector<32x8xf32> -> vector<32x8xf32>
    %c2_59 = arith.constant 2 : index
    %c0_60 = arith.constant 0 : index
    %c0_61 = arith.constant 0 : index
    %96 = vector.load %arg2[%c2_59, %c0_60, %c0_61] : memref<24x1x8xf32, #tpu.memory_space<vmem>>, vector<1x1x8xf32>
    %97 = vector.shape_cast %96 : vector<1x1x8xf32> to vector<1x8xf32>
    %98 = vector.broadcast %97 : vector<1x8xf32> to vector<32x8xf32>
    %99 = arith.addf %95, %98 : vector<32x8xf32>
    %100 = vector.shape_cast %99 : vector<32x8xf32> to vector<2x16x8xf32>
    %c6 = arith.constant 6 : index
    %c0_62 = arith.constant 0 : index
    %c0_63 = arith.constant 0 : index
    %101 = vector.load %arg1[%c6, %c0_62, %c0_63] : memref<24x32x8xf32, #tpu.memory_space<vmem>>, vector<1x32x8xf32>
    %102 = vector.shape_cast %101 : vector<1x32x8xf32> to vector<32x8xf32>
    %cst_64 = arith.constant dense<0.000000e+00> : vector<32x8xf32>
    %103 = tpu.matmul %0, %102, %cst_64 {dimension_numbers = #tpu.dot_dimension_numbers<[1], [0], [0], [1], [0, 0, 1, 1], [], []>} : vector<32x32xf32>, vector<32x8xf32>, vector<32x8xf32> -> vector<32x8xf32>
    %c6_65 = arith.constant 6 : index
    %c0_66 = arith.constant 0 : index
    %c0_67 = arith.constant 0 : index
    %104 = vector.load %arg2[%c6_65, %c0_66, %c0_67] : memref<24x1x8xf32, #tpu.memory_space<vmem>>, vector<1x1x8xf32>
    %105 = vector.shape_cast %104 : vector<1x1x8xf32> to vector<1x8xf32>
    %106 = vector.broadcast %105 : vector<1x8xf32> to vector<32x8xf32>
    %107 = arith.addf %103, %106 : vector<32x8xf32>
    %108 = vector.shape_cast %107 : vector<32x8xf32> to vector<2x16x8xf32>
    %c10 = arith.constant 10 : index
    %c0_68 = arith.constant 0 : index
    %c0_69 = arith.constant 0 : index
    %109 = vector.load %arg1[%c10, %c0_68, %c0_69] : memref<24x32x8xf32, #tpu.memory_space<vmem>>, vector<1x32x8xf32>
    %110 = vector.shape_cast %109 : vector<1x32x8xf32> to vector<32x8xf32>
    %cst_70 = arith.constant dense<0.000000e+00> : vector<32x8xf32>
    %111 = tpu.matmul %0, %110, %cst_70 {dimension_numbers = #tpu.dot_dimension_numbers<[1], [0], [0], [1], [0, 0, 1, 1], [], []>} : vector<32x32xf32>, vector<32x8xf32>, vector<32x8xf32> -> vector<32x8xf32>
    %c10_71 = arith.constant 10 : index
    %c0_72 = arith.constant 0 : index
    %c0_73 = arith.constant 0 : index
    %112 = vector.load %arg2[%c10_71, %c0_72, %c0_73] : memref<24x1x8xf32, #tpu.memory_space<vmem>>, vector<1x1x8xf32>
    %113 = vector.shape_cast %112 : vector<1x1x8xf32> to vector<1x8xf32>
    %114 = vector.broadcast %113 : vector<1x8xf32> to vector<32x8xf32>
    %115 = arith.addf %111, %114 : vector<32x8xf32>
    %116 = vector.shape_cast %115 : vector<32x8xf32> to vector<2x16x8xf32>
    "tpu.trace_start"() <{level = 10 : i32, message = "bqd,bkd->bqk"}> : () -> ()
    %cst_74 = arith.constant dense<0.000000e+00> : vector<2x16x16xf32>
    %117 = tpu.matmul %100, %108, %cst_74 {dimension_numbers = #tpu.dot_dimension_numbers<[2], [2], [1], [1], [0, 0, 0, 1, 1, 1], [0], [0]>} : vector<2x16x8xf32>, vector<2x16x8xf32>, vector<2x16x16xf32> -> vector<2x16x16xf32>
    "tpu.trace_stop"() : () -> ()
    %cst_75 = arith.constant dense<0xFF800000> : vector<2x16xf32>
    %118 = vector.multi_reduction <maximumf>, %117, %cst_75 [2] : vector<2x16x16xf32> to vector<2x16xf32>
    %119 = vector.shape_cast %118 : vector<2x16xf32> to vector<2x16x1xf32>
    %120 = vector.broadcast %119 : vector<2x16x1xf32> to vector<2x16x16xf32>
    %121 = arith.subf %117, %120 : vector<2x16x16xf32>
    %122 = math.exp %121 : vector<2x16x16xf32>
    %cst_76 = arith.constant dense<0.000000e+00> : vector<2x16xf32>
    %123 = vector.multi_reduction <add>, %122, %cst_76 [2] : vector<2x16x16xf32> to vector<2x16xf32>
    %124 = vector.shape_cast %123 : vector<2x16xf32> to vector<2x16x1xf32>
    %125 = tpu.reciprocal %124 {approx = true} : vector<2x16x1xf32> -> vector<2x16x1xf32>
    %126 = vector.broadcast %125 : vector<2x16x1xf32> to vector<2x16x16xf32>
    %127 = arith.mulf %122, %126 : vector<2x16x16xf32>
    "tpu.trace_start"() <{level = 10 : i32, message = "bqk,bkd->bqd"}> : () -> ()
    %cst_77 = arith.constant dense<0.000000e+00> : vector<2x16x8xf32>
    %128 = tpu.matmul %127, %116, %cst_77 {dimension_numbers = #tpu.dot_dimension_numbers<[2], [1], [1], [2], [0, 0, 0, 1, 1, 2], [0], [0]>} : vector<2x16x16xf32>, vector<2x16x8xf32>, vector<2x16x8xf32> -> vector<2x16x8xf32>
    "tpu.trace_stop"() : () -> ()
    %129 = vector.shape_cast %128 : vector<2x16x8xf32> to vector<32x8xf32>
    %c2_78 = arith.constant 2 : index
    %c0_79 = arith.constant 0 : index
    %c0_80 = arith.constant 0 : index
    %130 = vector.load %arg3[%c2_78, %c0_79, %c0_80] : memref<8x8x32xf32, #tpu.memory_space<vmem>>, vector<1x8x32xf32>
    %131 = vector.shape_cast %130 : vector<1x8x32xf32> to vector<8x32xf32>
    %cst_81 = arith.constant dense<0.000000e+00> : vector<32x32xf32>
    %132 = tpu.matmul %129, %131, %cst_81 {dimension_numbers = #tpu.dot_dimension_numbers<[1], [0], [0], [1], [0, 0, 1, 1], [], []>} : vector<32x8xf32>, vector<8x32xf32>, vector<32x32xf32> -> vector<32x32xf32>
    %133 = arith.addf %92, %132 : vector<32x32xf32>
    %c3 = arith.constant 3 : index
    %c0_82 = arith.constant 0 : index
    %c0_83 = arith.constant 0 : index
    %134 = vector.load %arg1[%c3, %c0_82, %c0_83] : memref<24x32x8xf32, #tpu.memory_space<vmem>>, vector<1x32x8xf32>
    %135 = vector.shape_cast %134 : vector<1x32x8xf32> to vector<32x8xf32>
    %cst_84 = arith.constant dense<0.000000e+00> : vector<32x8xf32>
    %136 = tpu.matmul %0, %135, %cst_84 {dimension_numbers = #tpu.dot_dimension_numbers<[1], [0], [0], [1], [0, 0, 1, 1], [], []>} : vector<32x32xf32>, vector<32x8xf32>, vector<32x8xf32> -> vector<32x8xf32>
    %c3_85 = arith.constant 3 : index
    %c0_86 = arith.constant 0 : index
    %c0_87 = arith.constant 0 : index
    %137 = vector.load %arg2[%c3_85, %c0_86, %c0_87] : memref<24x1x8xf32, #tpu.memory_space<vmem>>, vector<1x1x8xf32>
    %138 = vector.shape_cast %137 : vector<1x1x8xf32> to vector<1x8xf32>
    %139 = vector.broadcast %138 : vector<1x8xf32> to vector<32x8xf32>
    %140 = arith.addf %136, %139 : vector<32x8xf32>
    %141 = vector.shape_cast %140 : vector<32x8xf32> to vector<2x16x8xf32>
    %c7 = arith.constant 7 : index
    %c0_88 = arith.constant 0 : index
    %c0_89 = arith.constant 0 : index
    %142 = vector.load %arg1[%c7, %c0_88, %c0_89] : memref<24x32x8xf32, #tpu.memory_space<vmem>>, vector<1x32x8xf32>
    %143 = vector.shape_cast %142 : vector<1x32x8xf32> to vector<32x8xf32>
    %cst_90 = arith.constant dense<0.000000e+00> : vector<32x8xf32>
    %144 = tpu.matmul %0, %143, %cst_90 {dimension_numbers = #tpu.dot_dimension_numbers<[1], [0], [0], [1], [0, 0, 1, 1], [], []>} : vector<32x32xf32>, vector<32x8xf32>, vector<32x8xf32> -> vector<32x8xf32>
    %c7_91 = arith.constant 7 : index
    %c0_92 = arith.constant 0 : index
    %c0_93 = arith.constant 0 : index
    %145 = vector.load %arg2[%c7_91, %c0_92, %c0_93] : memref<24x1x8xf32, #tpu.memory_space<vmem>>, vector<1x1x8xf32>
    %146 = vector.shape_cast %145 : vector<1x1x8xf32> to vector<1x8xf32>
    %147 = vector.broadcast %146 : vector<1x8xf32> to vector<32x8xf32>
    %148 = arith.addf %144, %147 : vector<32x8xf32>
    %149 = vector.shape_cast %148 : vector<32x8xf32> to vector<2x16x8xf32>
    %c11 = arith.constant 11 : index
    %c0_94 = arith.constant 0 : index
    %c0_95 = arith.constant 0 : index
    %150 = vector.load %arg1[%c11, %c0_94, %c0_95] : memref<24x32x8xf32, #tpu.memory_space<vmem>>, vector<1x32x8xf32>
    %151 = vector.shape_cast %150 : vector<1x32x8xf32> to vector<32x8xf32>
    %cst_96 = arith.constant dense<0.000000e+00> : vector<32x8xf32>
    %152 = tpu.matmul %0, %151, %cst_96 {dimension_numbers = #tpu.dot_dimension_numbers<[1], [0], [0], [1], [0, 0, 1, 1], [], []>} : vector<32x32xf32>, vector<32x8xf32>, vector<32x8xf32> -> vector<32x8xf32>
    %c11_97 = arith.constant 11 : index
    %c0_98 = arith.constant 0 : index
    %c0_99 = arith.constant 0 : index
    %153 = vector.load %arg2[%c11_97, %c0_98, %c0_99] : memref<24x1x8xf32, #tpu.memory_space<vmem>>, vector<1x1x8xf32>
    %154 = vector.shape_cast %153 : vector<1x1x8xf32> to vector<1x8xf32>
    %155 = vector.broadcast %154 : vector<1x8xf32> to vector<32x8xf32>
    %156 = arith.addf %152, %155 : vector<32x8xf32>
    %157 = vector.shape_cast %156 : vector<32x8xf32> to vector<2x16x8xf32>
    "tpu.trace_start"() <{level = 10 : i32, message = "bqd,bkd->bqk"}> : () -> ()
    %cst_100 = arith.constant dense<0.000000e+00> : vector<2x16x16xf32>
    %158 = tpu.matmul %141, %149, %cst_100 {dimension_numbers = #tpu.dot_dimension_numbers<[2], [2], [1], [1], [0, 0, 0, 1, 1, 1], [0], [0]>} : vector<2x16x8xf32>, vector<2x16x8xf32>, vector<2x16x16xf32> -> vector<2x16x16xf32>
    "tpu.trace_stop"() : () -> ()
    %cst_101 = arith.constant dense<0xFF800000> : vector<2x16xf32>
    %159 = vector.multi_reduction <maximumf>, %158, %cst_101 [2] : vector<2x16x16xf32> to vector<2x16xf32>
    %160 = vector.shape_cast %159 : vector<2x16xf32> to vector<2x16x1xf32>
    %161 = vector.broadcast %160 : vector<2x16x1xf32> to vector<2x16x16xf32>
    %162 = arith.subf %158, %161 : vector<2x16x16xf32>
    %163 = math.exp %162 : vector<2x16x16xf32>
    %cst_102 = arith.constant dense<0.000000e+00> : vector<2x16xf32>
    %164 = vector.multi_reduction <add>, %163, %cst_102 [2] : vector<2x16x16xf32> to vector<2x16xf32>
    %165 = vector.shape_cast %164 : vector<2x16xf32> to vector<2x16x1xf32>
    %166 = tpu.reciprocal %165 {approx = true} : vector<2x16x1xf32> -> vector<2x16x1xf32>
    %167 = vector.broadcast %166 : vector<2x16x1xf32> to vector<2x16x16xf32>
    %168 = arith.mulf %163, %167 : vector<2x16x16xf32>
    "tpu.trace_start"() <{level = 10 : i32, message = "bqk,bkd->bqd"}> : () -> ()
    %cst_103 = arith.constant dense<0.000000e+00> : vector<2x16x8xf32>
    %169 = tpu.matmul %168, %157, %cst_103 {dimension_numbers = #tpu.dot_dimension_numbers<[2], [1], [1], [2], [0, 0, 0, 1, 1, 2], [0], [0]>} : vector<2x16x16xf32>, vector<2x16x8xf32>, vector<2x16x8xf32> -> vector<2x16x8xf32>
    "tpu.trace_stop"() : () -> ()
    %170 = vector.shape_cast %169 : vector<2x16x8xf32> to vector<32x8xf32>
    %c3_104 = arith.constant 3 : index
    %c0_105 = arith.constant 0 : index
    %c0_106 = arith.constant 0 : index
    %171 = vector.load %arg3[%c3_104, %c0_105, %c0_106] : memref<8x8x32xf32, #tpu.memory_space<vmem>>, vector<1x8x32xf32>
    %172 = vector.shape_cast %171 : vector<1x8x32xf32> to vector<8x32xf32>
    %cst_107 = arith.constant dense<0.000000e+00> : vector<32x32xf32>
    %173 = tpu.matmul %170, %172, %cst_107 {dimension_numbers = #tpu.dot_dimension_numbers<[1], [0], [0], [1], [0, 0, 1, 1], [], []>} : vector<32x8xf32>, vector<8x32xf32>, vector<32x32xf32> -> vector<32x32xf32>
    %174 = arith.addf %133, %173 : vector<32x32xf32>
    %175 = arith.addf %0, %174 : vector<32x32xf32>
    %cst_108 = arith.constant dense<0.000000e+00> : vector<32xf32>
    %176 = vector.multi_reduction <add>, %175, %cst_108 [1] : vector<32x32xf32> to vector<32xf32>
    %177 = vector.shape_cast %176 : vector<32xf32> to vector<32x1xf32>
    %cst_109 = arith.constant 3.200000e+01 : f32
    %178 = vector.broadcast %cst_109 : f32 to vector<32x1xf32>
    %179 = arith.divf %177, %178 : vector<32x1xf32>
    %180 = arith.mulf %175, %175 : vector<32x32xf32>
    %cst_110 = arith.constant dense<0.000000e+00> : vector<32xf32>
    %181 = vector.multi_reduction <add>, %180, %cst_110 [1] : vector<32x32xf32> to vector<32xf32>
    %182 = vector.shape_cast %181 : vector<32xf32> to vector<32x1xf32>
    %cst_111 = arith.constant 3.200000e+01 : f32
    %183 = vector.broadcast %cst_111 : f32 to vector<32x1xf32>
    %184 = arith.divf %182, %183 : vector<32x1xf32>
    %185 = arith.mulf %179, %179 : vector<32x1xf32>
    %186 = arith.subf %184, %185 : vector<32x1xf32>
    %187 = vector.broadcast %179 : vector<32x1xf32> to vector<32x32xf32>
    %188 = arith.subf %175, %187 : vector<32x32xf32>
    %cst_112 = arith.constant 9.99999996E-13 : f32
    %189 = vector.broadcast %cst_112 : f32 to vector<32x1xf32>
    %190 = arith.addf %186, %189 : vector<32x1xf32>
    %191 = math.rsqrt %190 : vector<32x1xf32>
    %192 = vector.broadcast %191 : vector<32x1xf32> to vector<32x32xf32>
    %193 = arith.mulf %188, %192 : vector<32x32xf32>
    %194 = vector.broadcast %6 : vector<1x32xf32> to vector<32x32xf32>
    %195 = arith.mulf %193, %194 : vector<32x32xf32>
    %196 = vector.broadcast %7 : vector<1x32xf32> to vector<32x32xf32>
    %197 = arith.addf %195, %196 : vector<32x32xf32>
    %c0_113 = arith.constant 0 : index
    %c0_114 = arith.constant 0 : index
    %c0_115 = arith.constant 0 : index
    %198 = vector.load %arg4[%c0_113, %c0_114, %c0_115] : memref<2x32x64xf32, #tpu.memory_space<vmem>>, vector<1x32x64xf32>
    %199 = vector.shape_cast %198 : vector<1x32x64xf32> to vector<32x64xf32>
    %cst_116 = arith.constant dense<0.000000e+00> : vector<32x64xf32>
    %200 = tpu.matmul %197, %199, %cst_116 {dimension_numbers = #tpu.dot_dimension_numbers<[1], [0], [0], [1], [0, 0, 1, 1], [], []>} : vector<32x32xf32>, vector<32x64xf32>, vector<32x64xf32> -> vector<32x64xf32>
    %201 = vector.broadcast %4 : vector<1x64xf32> to vector<32x64xf32>
    %202 = arith.addf %200, %201 : vector<32x64xf32>
    %203 = arith.mulf %202, %202 : vector<32x64xf32>
    %204 = arith.mulf %202, %203 : vector<32x64xf32>
    %cst_117 = arith.constant 4.471500e-02 : f32
    %205 = vector.broadcast %cst_117 : f32 to vector<32x64xf32>
    %206 = arith.mulf %205, %204 : vector<32x64xf32>
    %207 = arith.addf %202, %206 : vector<32x64xf32>
    %cst_118 = arith.constant 0.797884583 : f32
    %208 = vector.broadcast %cst_118 : f32 to vector<32x64xf32>
    %209 = arith.mulf %208, %207 : vector<32x64xf32>
    %210 = math.tanh %209 : vector<32x64xf32>
    %cst_119 = arith.constant 1.000000e+00 : f32
    %211 = vector.broadcast %cst_119 : f32 to vector<32x64xf32>
    %212 = arith.addf %211, %210 : vector<32x64xf32>
    %cst_120 = arith.constant 5.000000e-01 : f32
    %213 = vector.broadcast %cst_120 : f32 to vector<32x64xf32>
    %214 = arith.mulf %213, %212 : vector<32x64xf32>
    %215 = arith.mulf %202, %214 : vector<32x64xf32>
    %c0_121 = arith.constant 0 : index
    %c0_122 = arith.constant 0 : index
    %c0_123 = arith.constant 0 : index
    %216 = vector.load %arg5[%c0_121, %c0_122, %c0_123] : memref<2x64x32xf32, #tpu.memory_space<vmem>>, vector<1x64x32xf32>
    %217 = vector.shape_cast %216 : vector<1x64x32xf32> to vector<64x32xf32>
    %cst_124 = arith.constant dense<0.000000e+00> : vector<32x32xf32>
    %218 = tpu.matmul %215, %217, %cst_124 {dimension_numbers = #tpu.dot_dimension_numbers<[1], [0], [0], [1], [0, 0, 1, 1], [], []>} : vector<32x64xf32>, vector<64x32xf32>, vector<32x32xf32> -> vector<32x32xf32>
    %219 = vector.broadcast %5 : vector<1x32xf32> to vector<32x32xf32>
    %220 = arith.addf %218, %219 : vector<32x32xf32>
    %221 = arith.addf %197, %220 : vector<32x32xf32>
    %cst_125 = arith.constant dense<0.000000e+00> : vector<32xf32>
    %222 = vector.multi_reduction <add>, %221, %cst_125 [1] : vector<32x32xf32> to vector<32xf32>
    %223 = vector.shape_cast %222 : vector<32xf32> to vector<32x1xf32>
    %cst_126 = arith.constant 3.200000e+01 : f32
    %224 = vector.broadcast %cst_126 : f32 to vector<32x1xf32>
    %225 = arith.divf %223, %224 : vector<32x1xf32>
    %226 = arith.mulf %221, %221 : vector<32x32xf32>
    %cst_127 = arith.constant dense<0.000000e+00> : vector<32xf32>
    %227 = vector.multi_reduction <add>, %226, %cst_127 [1] : vector<32x32xf32> to vector<32xf32>
    %228 = vector.shape_cast %227 : vector<32xf32> to vector<32x1xf32>
    %cst_128 = arith.constant 3.200000e+01 : f32
    %229 = vector.broadcast %cst_128 : f32 to vector<32x1xf32>
    %230 = arith.divf %228, %229 : vector<32x1xf32>
    %231 = arith.mulf %225, %225 : vector<32x1xf32>
    %232 = arith.subf %230, %231 : vector<32x1xf32>
    %233 = vector.broadcast %225 : vector<32x1xf32> to vector<32x32xf32>
    %234 = arith.subf %221, %233 : vector<32x32xf32>
    %cst_129 = arith.constant 9.99999996E-13 : f32
    %235 = vector.broadcast %cst_129 : f32 to vector<32x1xf32>
    %236 = arith.addf %232, %235 : vector<32x1xf32>
    %237 = math.rsqrt %236 : vector<32x1xf32>
    %238 = vector.broadcast %237 : vector<32x1xf32> to vector<32x32xf32>
    %239 = arith.mulf %234, %238 : vector<32x32xf32>
    %240 = vector.broadcast %8 : vector<1x32xf32> to vector<32x32xf32>
    %241 = arith.mulf %239, %240 : vector<32x32xf32>
    %242 = vector.broadcast %9 : vector<1x32xf32> to vector<32x32xf32>
    %243 = arith.addf %241, %242 : vector<32x32xf32>
    %c1_130 = arith.constant 1 : index
    %c0_131 = arith.constant 0 : index
    %c0_132 = arith.constant 0 : index
    %244 = vector.load %arg6[%c1_130, %c0_131, %c0_132] : memref<2x8x64xf32, #tpu.memory_space<vmem>>, vector<1x8x64xf32>
    %245 = vector.shape_cast %244 : vector<1x8x64xf32> to vector<8x64xf32>
    %246 = vector.extract_strided_slice %245 {offsets = [0, 0], sizes = [1, 32], strides = [1, 1]} : vector<8x64xf32> to vector<1x32xf32>
    %247 = vector.extract_strided_slice %245 {offsets = [1, 0], sizes = [1, 64], strides = [1, 1]} : vector<8x64xf32> to vector<1x64xf32>
    %248 = vector.extract_strided_slice %245 {offsets = [2, 0], sizes = [1, 32], strides = [1, 1]} : vector<8x64xf32> to vector<1x32xf32>
    %249 = vector.extract_strided_slice %245 {offsets = [3, 0], sizes = [1, 32], strides = [1, 1]} : vector<8x64xf32> to vector<1x32xf32>
    %250 = vector.extract_strided_slice %245 {offsets = [4, 0], sizes = [1, 32], strides = [1, 1]} : vector<8x64xf32> to vector<1x32xf32>
    %251 = vector.extract_strided_slice %245 {offsets = [5, 0], sizes = [1, 32], strides = [1, 1]} : vector<8x64xf32> to vector<1x32xf32>
    %252 = vector.extract_strided_slice %245 {offsets = [6, 0], sizes = [1, 32], strides = [1, 1]} : vector<8x64xf32> to vector<1x32xf32>
    %c12 = arith.constant 12 : index
    %c0_133 = arith.constant 0 : index
    %c0_134 = arith.constant 0 : index
    %253 = vector.load %arg1[%c12, %c0_133, %c0_134] : memref<24x32x8xf32, #tpu.memory_space<vmem>>, vector<1x32x8xf32>
    %254 = vector.shape_cast %253 : vector<1x32x8xf32> to vector<32x8xf32>
    %cst_135 = arith.constant dense<0.000000e+00> : vector<32x8xf32>
    %255 = tpu.matmul %243, %254, %cst_135 {dimension_numbers = #tpu.dot_dimension_numbers<[1], [0], [0], [1], [0, 0, 1, 1], [], []>} : vector<32x32xf32>, vector<32x8xf32>, vector<32x8xf32> -> vector<32x8xf32>
    %c12_136 = arith.constant 12 : index
    %c0_137 = arith.constant 0 : index
    %c0_138 = arith.constant 0 : index
    %256 = vector.load %arg2[%c12_136, %c0_137, %c0_138] : memref<24x1x8xf32, #tpu.memory_space<vmem>>, vector<1x1x8xf32>
    %257 = vector.shape_cast %256 : vector<1x1x8xf32> to vector<1x8xf32>
    %258 = vector.broadcast %257 : vector<1x8xf32> to vector<32x8xf32>
    %259 = arith.addf %255, %258 : vector<32x8xf32>
    %260 = vector.shape_cast %259 : vector<32x8xf32> to vector<2x16x8xf32>
    %c16 = arith.constant 16 : index
    %c0_139 = arith.constant 0 : index
    %c0_140 = arith.constant 0 : index
    %261 = vector.load %arg1[%c16, %c0_139, %c0_140] : memref<24x32x8xf32, #tpu.memory_space<vmem>>, vector<1x32x8xf32>
    %262 = vector.shape_cast %261 : vector<1x32x8xf32> to vector<32x8xf32>
    %cst_141 = arith.constant dense<0.000000e+00> : vector<32x8xf32>
    %263 = tpu.matmul %243, %262, %cst_141 {dimension_numbers = #tpu.dot_dimension_numbers<[1], [0], [0], [1], [0, 0, 1, 1], [], []>} : vector<32x32xf32>, vector<32x8xf32>, vector<32x8xf32> -> vector<32x8xf32>
    %c16_142 = arith.constant 16 : index
    %c0_143 = arith.constant 0 : index
    %c0_144 = arith.constant 0 : index
    %264 = vector.load %arg2[%c16_142, %c0_143, %c0_144] : memref<24x1x8xf32, #tpu.memory_space<vmem>>, vector<1x1x8xf32>
    %265 = vector.shape_cast %264 : vector<1x1x8xf32> to vector<1x8xf32>
    %266 = vector.broadcast %265 : vector<1x8xf32> to vector<32x8xf32>
    %267 = arith.addf %263, %266 : vector<32x8xf32>
    %268 = vector.shape_cast %267 : vector<32x8xf32> to vector<2x16x8xf32>
    %c20 = arith.constant 20 : index
    %c0_145 = arith.constant 0 : index
    %c0_146 = arith.constant 0 : index
    %269 = vector.load %arg1[%c20, %c0_145, %c0_146] : memref<24x32x8xf32, #tpu.memory_space<vmem>>, vector<1x32x8xf32>
    %270 = vector.shape_cast %269 : vector<1x32x8xf32> to vector<32x8xf32>
    %cst_147 = arith.constant dense<0.000000e+00> : vector<32x8xf32>
    %271 = tpu.matmul %243, %270, %cst_147 {dimension_numbers = #tpu.dot_dimension_numbers<[1], [0], [0], [1], [0, 0, 1, 1], [], []>} : vector<32x32xf32>, vector<32x8xf32>, vector<32x8xf32> -> vector<32x8xf32>
    %c20_148 = arith.constant 20 : index
    %c0_149 = arith.constant 0 : index
    %c0_150 = arith.constant 0 : index
    %272 = vector.load %arg2[%c20_148, %c0_149, %c0_150] : memref<24x1x8xf32, #tpu.memory_space<vmem>>, vector<1x1x8xf32>
    %273 = vector.shape_cast %272 : vector<1x1x8xf32> to vector<1x8xf32>
    %274 = vector.broadcast %273 : vector<1x8xf32> to vector<32x8xf32>
    %275 = arith.addf %271, %274 : vector<32x8xf32>
    %276 = vector.shape_cast %275 : vector<32x8xf32> to vector<2x16x8xf32>
    "tpu.trace_start"() <{level = 10 : i32, message = "bqd,bkd->bqk"}> : () -> ()
    %cst_151 = arith.constant dense<0.000000e+00> : vector<2x16x16xf32>
    %277 = tpu.matmul %260, %268, %cst_151 {dimension_numbers = #tpu.dot_dimension_numbers<[2], [2], [1], [1], [0, 0, 0, 1, 1, 1], [0], [0]>} : vector<2x16x8xf32>, vector<2x16x8xf32>, vector<2x16x16xf32> -> vector<2x16x16xf32>
    "tpu.trace_stop"() : () -> ()
    %cst_152 = arith.constant dense<0xFF800000> : vector<2x16xf32>
    %278 = vector.multi_reduction <maximumf>, %277, %cst_152 [2] : vector<2x16x16xf32> to vector<2x16xf32>
    %279 = vector.shape_cast %278 : vector<2x16xf32> to vector<2x16x1xf32>
    %280 = vector.broadcast %279 : vector<2x16x1xf32> to vector<2x16x16xf32>
    %281 = arith.subf %277, %280 : vector<2x16x16xf32>
    %282 = math.exp %281 : vector<2x16x16xf32>
    %cst_153 = arith.constant dense<0.000000e+00> : vector<2x16xf32>
    %283 = vector.multi_reduction <add>, %282, %cst_153 [2] : vector<2x16x16xf32> to vector<2x16xf32>
    %284 = vector.shape_cast %283 : vector<2x16xf32> to vector<2x16x1xf32>
    %285 = tpu.reciprocal %284 {approx = true} : vector<2x16x1xf32> -> vector<2x16x1xf32>
    %286 = vector.broadcast %285 : vector<2x16x1xf32> to vector<2x16x16xf32>
    %287 = arith.mulf %282, %286 : vector<2x16x16xf32>
    "tpu.trace_start"() <{level = 10 : i32, message = "bqk,bkd->bqd"}> : () -> ()
    %cst_154 = arith.constant dense<0.000000e+00> : vector<2x16x8xf32>
    %288 = tpu.matmul %287, %276, %cst_154 {dimension_numbers = #tpu.dot_dimension_numbers<[2], [1], [1], [2], [0, 0, 0, 1, 1, 2], [0], [0]>} : vector<2x16x16xf32>, vector<2x16x8xf32>, vector<2x16x8xf32> -> vector<2x16x8xf32>
    "tpu.trace_stop"() : () -> ()
    %289 = vector.shape_cast %288 : vector<2x16x8xf32> to vector<32x8xf32>
    %c4_155 = arith.constant 4 : index
    %c0_156 = arith.constant 0 : index
    %c0_157 = arith.constant 0 : index
    %290 = vector.load %arg3[%c4_155, %c0_156, %c0_157] : memref<8x8x32xf32, #tpu.memory_space<vmem>>, vector<1x8x32xf32>
    %291 = vector.shape_cast %290 : vector<1x8x32xf32> to vector<8x32xf32>
    %cst_158 = arith.constant dense<0.000000e+00> : vector<32x32xf32>
    %292 = tpu.matmul %289, %291, %cst_158 {dimension_numbers = #tpu.dot_dimension_numbers<[1], [0], [0], [1], [0, 0, 1, 1], [], []>} : vector<32x8xf32>, vector<8x32xf32>, vector<32x32xf32> -> vector<32x32xf32>
    %293 = vector.broadcast %246 : vector<1x32xf32> to vector<32x32xf32>
    %294 = arith.addf %293, %292 : vector<32x32xf32>
    %c13 = arith.constant 13 : index
    %c0_159 = arith.constant 0 : index
    %c0_160 = arith.constant 0 : index
    %295 = vector.load %arg1[%c13, %c0_159, %c0_160] : memref<24x32x8xf32, #tpu.memory_space<vmem>>, vector<1x32x8xf32>
    %296 = vector.shape_cast %295 : vector<1x32x8xf32> to vector<32x8xf32>
    %cst_161 = arith.constant dense<0.000000e+00> : vector<32x8xf32>
    %297 = tpu.matmul %243, %296, %cst_161 {dimension_numbers = #tpu.dot_dimension_numbers<[1], [0], [0], [1], [0, 0, 1, 1], [], []>} : vector<32x32xf32>, vector<32x8xf32>, vector<32x8xf32> -> vector<32x8xf32>
    %c13_162 = arith.constant 13 : index
    %c0_163 = arith.constant 0 : index
    %c0_164 = arith.constant 0 : index
    %298 = vector.load %arg2[%c13_162, %c0_163, %c0_164] : memref<24x1x8xf32, #tpu.memory_space<vmem>>, vector<1x1x8xf32>
    %299 = vector.shape_cast %298 : vector<1x1x8xf32> to vector<1x8xf32>
    %300 = vector.broadcast %299 : vector<1x8xf32> to vector<32x8xf32>
    %301 = arith.addf %297, %300 : vector<32x8xf32>
    %302 = vector.shape_cast %301 : vector<32x8xf32> to vector<2x16x8xf32>
    %c17 = arith.constant 17 : index
    %c0_165 = arith.constant 0 : index
    %c0_166 = arith.constant 0 : index
    %303 = vector.load %arg1[%c17, %c0_165, %c0_166] : memref<24x32x8xf32, #tpu.memory_space<vmem>>, vector<1x32x8xf32>
    %304 = vector.shape_cast %303 : vector<1x32x8xf32> to vector<32x8xf32>
    %cst_167 = arith.constant dense<0.000000e+00> : vector<32x8xf32>
    %305 = tpu.matmul %243, %304, %cst_167 {dimension_numbers = #tpu.dot_dimension_numbers<[1], [0], [0], [1], [0, 0, 1, 1], [], []>} : vector<32x32xf32>, vector<32x8xf32>, vector<32x8xf32> -> vector<32x8xf32>
    %c17_168 = arith.constant 17 : index
    %c0_169 = arith.constant 0 : index
    %c0_170 = arith.constant 0 : index
    %306 = vector.load %arg2[%c17_168, %c0_169, %c0_170] : memref<24x1x8xf32, #tpu.memory_space<vmem>>, vector<1x1x8xf32>
    %307 = vector.shape_cast %306 : vector<1x1x8xf32> to vector<1x8xf32>
    %308 = vector.broadcast %307 : vector<1x8xf32> to vector<32x8xf32>
    %309 = arith.addf %305, %308 : vector<32x8xf32>
    %310 = vector.shape_cast %309 : vector<32x8xf32> to vector<2x16x8xf32>
    %c21 = arith.constant 21 : index
    %c0_171 = arith.constant 0 : index
    %c0_172 = arith.constant 0 : index
    %311 = vector.load %arg1[%c21, %c0_171, %c0_172] : memref<24x32x8xf32, #tpu.memory_space<vmem>>, vector<1x32x8xf32>
    %312 = vector.shape_cast %311 : vector<1x32x8xf32> to vector<32x8xf32>
    %cst_173 = arith.constant dense<0.000000e+00> : vector<32x8xf32>
    %313 = tpu.matmul %243, %312, %cst_173 {dimension_numbers = #tpu.dot_dimension_numbers<[1], [0], [0], [1], [0, 0, 1, 1], [], []>} : vector<32x32xf32>, vector<32x8xf32>, vector<32x8xf32> -> vector<32x8xf32>
    %c21_174 = arith.constant 21 : index
    %c0_175 = arith.constant 0 : index
    %c0_176 = arith.constant 0 : index
    %314 = vector.load %arg2[%c21_174, %c0_175, %c0_176] : memref<24x1x8xf32, #tpu.memory_space<vmem>>, vector<1x1x8xf32>
    %315 = vector.shape_cast %314 : vector<1x1x8xf32> to vector<1x8xf32>
    %316 = vector.broadcast %315 : vector<1x8xf32> to vector<32x8xf32>
    %317 = arith.addf %313, %316 : vector<32x8xf32>
    %318 = vector.shape_cast %317 : vector<32x8xf32> to vector<2x16x8xf32>
    "tpu.trace_start"() <{level = 10 : i32, message = "bqd,bkd->bqk"}> : () -> ()
    %cst_177 = arith.constant dense<0.000000e+00> : vector<2x16x16xf32>
    %319 = tpu.matmul %302, %310, %cst_177 {dimension_numbers = #tpu.dot_dimension_numbers<[2], [2], [1], [1], [0, 0, 0, 1, 1, 1], [0], [0]>} : vector<2x16x8xf32>, vector<2x16x8xf32>, vector<2x16x16xf32> -> vector<2x16x16xf32>
    "tpu.trace_stop"() : () -> ()
    %cst_178 = arith.constant dense<0xFF800000> : vector<2x16xf32>
    %320 = vector.multi_reduction <maximumf>, %319, %cst_178 [2] : vector<2x16x16xf32> to vector<2x16xf32>
    %321 = vector.shape_cast %320 : vector<2x16xf32> to vector<2x16x1xf32>
    %322 = vector.broadcast %321 : vector<2x16x1xf32> to vector<2x16x16xf32>
    %323 = arith.subf %319, %322 : vector<2x16x16xf32>
    %324 = math.exp %323 : vector<2x16x16xf32>
    %cst_179 = arith.constant dense<0.000000e+00> : vector<2x16xf32>
    %325 = vector.multi_reduction <add>, %324, %cst_179 [2] : vector<2x16x16xf32> to vector<2x16xf32>
    %326 = vector.shape_cast %325 : vector<2x16xf32> to vector<2x16x1xf32>
    %327 = tpu.reciprocal %326 {approx = true} : vector<2x16x1xf32> -> vector<2x16x1xf32>
    %328 = vector.broadcast %327 : vector<2x16x1xf32> to vector<2x16x16xf32>
    %329 = arith.mulf %324, %328 : vector<2x16x16xf32>
    "tpu.trace_start"() <{level = 10 : i32, message = "bqk,bkd->bqd"}> : () -> ()
    %cst_180 = arith.constant dense<0.000000e+00> : vector<2x16x8xf32>
    %330 = tpu.matmul %329, %318, %cst_180 {dimension_numbers = #tpu.dot_dimension_numbers<[2], [1], [1], [2], [0, 0, 0, 1, 1, 2], [0], [0]>} : vector<2x16x16xf32>, vector<2x16x8xf32>, vector<2x16x8xf32> -> vector<2x16x8xf32>
    "tpu.trace_stop"() : () -> ()
    %331 = vector.shape_cast %330 : vector<2x16x8xf32> to vector<32x8xf32>
    %c5_181 = arith.constant 5 : index
    %c0_182 = arith.constant 0 : index
    %c0_183 = arith.constant 0 : index
    %332 = vector.load %arg3[%c5_181, %c0_182, %c0_183] : memref<8x8x32xf32, #tpu.memory_space<vmem>>, vector<1x8x32xf32>
    %333 = vector.shape_cast %332 : vector<1x8x32xf32> to vector<8x32xf32>
    %cst_184 = arith.constant dense<0.000000e+00> : vector<32x32xf32>
    %334 = tpu.matmul %331, %333, %cst_184 {dimension_numbers = #tpu.dot_dimension_numbers<[1], [0], [0], [1], [0, 0, 1, 1], [], []>} : vector<32x8xf32>, vector<8x32xf32>, vector<32x32xf32> -> vector<32x32xf32>
    %335 = arith.addf %294, %334 : vector<32x32xf32>
    %c14 = arith.constant 14 : index
    %c0_185 = arith.constant 0 : index
    %c0_186 = arith.constant 0 : index
    %336 = vector.load %arg1[%c14, %c0_185, %c0_186] : memref<24x32x8xf32, #tpu.memory_space<vmem>>, vector<1x32x8xf32>
    %337 = vector.shape_cast %336 : vector<1x32x8xf32> to vector<32x8xf32>
    %cst_187 = arith.constant dense<0.000000e+00> : vector<32x8xf32>
    %338 = tpu.matmul %243, %337, %cst_187 {dimension_numbers = #tpu.dot_dimension_numbers<[1], [0], [0], [1], [0, 0, 1, 1], [], []>} : vector<32x32xf32>, vector<32x8xf32>, vector<32x8xf32> -> vector<32x8xf32>
    %c14_188 = arith.constant 14 : index
    %c0_189 = arith.constant 0 : index
    %c0_190 = arith.constant 0 : index
    %339 = vector.load %arg2[%c14_188, %c0_189, %c0_190] : memref<24x1x8xf32, #tpu.memory_space<vmem>>, vector<1x1x8xf32>
    %340 = vector.shape_cast %339 : vector<1x1x8xf32> to vector<1x8xf32>
    %341 = vector.broadcast %340 : vector<1x8xf32> to vector<32x8xf32>
    %342 = arith.addf %338, %341 : vector<32x8xf32>
    %343 = vector.shape_cast %342 : vector<32x8xf32> to vector<2x16x8xf32>
    %c18 = arith.constant 18 : index
    %c0_191 = arith.constant 0 : index
    %c0_192 = arith.constant 0 : index
    %344 = vector.load %arg1[%c18, %c0_191, %c0_192] : memref<24x32x8xf32, #tpu.memory_space<vmem>>, vector<1x32x8xf32>
    %345 = vector.shape_cast %344 : vector<1x32x8xf32> to vector<32x8xf32>
    %cst_193 = arith.constant dense<0.000000e+00> : vector<32x8xf32>
    %346 = tpu.matmul %243, %345, %cst_193 {dimension_numbers = #tpu.dot_dimension_numbers<[1], [0], [0], [1], [0, 0, 1, 1], [], []>} : vector<32x32xf32>, vector<32x8xf32>, vector<32x8xf32> -> vector<32x8xf32>
    %c18_194 = arith.constant 18 : index
    %c0_195 = arith.constant 0 : index
    %c0_196 = arith.constant 0 : index
    %347 = vector.load %arg2[%c18_194, %c0_195, %c0_196] : memref<24x1x8xf32, #tpu.memory_space<vmem>>, vector<1x1x8xf32>
    %348 = vector.shape_cast %347 : vector<1x1x8xf32> to vector<1x8xf32>
    %349 = vector.broadcast %348 : vector<1x8xf32> to vector<32x8xf32>
    %350 = arith.addf %346, %349 : vector<32x8xf32>
    %351 = vector.shape_cast %350 : vector<32x8xf32> to vector<2x16x8xf32>
    %c22 = arith.constant 22 : index
    %c0_197 = arith.constant 0 : index
    %c0_198 = arith.constant 0 : index
    %352 = vector.load %arg1[%c22, %c0_197, %c0_198] : memref<24x32x8xf32, #tpu.memory_space<vmem>>, vector<1x32x8xf32>
    %353 = vector.shape_cast %352 : vector<1x32x8xf32> to vector<32x8xf32>
    %cst_199 = arith.constant dense<0.000000e+00> : vector<32x8xf32>
    %354 = tpu.matmul %243, %353, %cst_199 {dimension_numbers = #tpu.dot_dimension_numbers<[1], [0], [0], [1], [0, 0, 1, 1], [], []>} : vector<32x32xf32>, vector<32x8xf32>, vector<32x8xf32> -> vector<32x8xf32>
    %c22_200 = arith.constant 22 : index
    %c0_201 = arith.constant 0 : index
    %c0_202 = arith.constant 0 : index
    %355 = vector.load %arg2[%c22_200, %c0_201, %c0_202] : memref<24x1x8xf32, #tpu.memory_space<vmem>>, vector<1x1x8xf32>
    %356 = vector.shape_cast %355 : vector<1x1x8xf32> to vector<1x8xf32>
    %357 = vector.broadcast %356 : vector<1x8xf32> to vector<32x8xf32>
    %358 = arith.addf %354, %357 : vector<32x8xf32>
    %359 = vector.shape_cast %358 : vector<32x8xf32> to vector<2x16x8xf32>
    "tpu.trace_start"() <{level = 10 : i32, message = "bqd,bkd->bqk"}> : () -> ()
    %cst_203 = arith.constant dense<0.000000e+00> : vector<2x16x16xf32>
    %360 = tpu.matmul %343, %351, %cst_203 {dimension_numbers = #tpu.dot_dimension_numbers<[2], [2], [1], [1], [0, 0, 0, 1, 1, 1], [0], [0]>} : vector<2x16x8xf32>, vector<2x16x8xf32>, vector<2x16x16xf32> -> vector<2x16x16xf32>
    "tpu.trace_stop"() : () -> ()
    %cst_204 = arith.constant dense<0xFF800000> : vector<2x16xf32>
    %361 = vector.multi_reduction <maximumf>, %360, %cst_204 [2] : vector<2x16x16xf32> to vector<2x16xf32>
    %362 = vector.shape_cast %361 : vector<2x16xf32> to vector<2x16x1xf32>
    %363 = vector.broadcast %362 : vector<2x16x1xf32> to vector<2x16x16xf32>
    %364 = arith.subf %360, %363 : vector<2x16x16xf32>
    %365 = math.exp %364 : vector<2x16x16xf32>
    %cst_205 = arith.constant dense<0.000000e+00> : vector<2x16xf32>
    %366 = vector.multi_reduction <add>, %365, %cst_205 [2] : vector<2x16x16xf32> to vector<2x16xf32>
    %367 = vector.shape_cast %366 : vector<2x16xf32> to vector<2x16x1xf32>
    %368 = tpu.reciprocal %367 {approx = true} : vector<2x16x1xf32> -> vector<2x16x1xf32>
    %369 = vector.broadcast %368 : vector<2x16x1xf32> to vector<2x16x16xf32>
    %370 = arith.mulf %365, %369 : vector<2x16x16xf32>
    "tpu.trace_start"() <{level = 10 : i32, message = "bqk,bkd->bqd"}> : () -> ()
    %cst_206 = arith.constant dense<0.000000e+00> : vector<2x16x8xf32>
    %371 = tpu.matmul %370, %359, %cst_206 {dimension_numbers = #tpu.dot_dimension_numbers<[2], [1], [1], [2], [0, 0, 0, 1, 1, 2], [0], [0]>} : vector<2x16x16xf32>, vector<2x16x8xf32>, vector<2x16x8xf32> -> vector<2x16x8xf32>
    "tpu.trace_stop"() : () -> ()
    %372 = vector.shape_cast %371 : vector<2x16x8xf32> to vector<32x8xf32>
    %c6_207 = arith.constant 6 : index
    %c0_208 = arith.constant 0 : index
    %c0_209 = arith.constant 0 : index
    %373 = vector.load %arg3[%c6_207, %c0_208, %c0_209] : memref<8x8x32xf32, #tpu.memory_space<vmem>>, vector<1x8x32xf32>
    %374 = vector.shape_cast %373 : vector<1x8x32xf32> to vector<8x32xf32>
    %cst_210 = arith.constant dense<0.000000e+00> : vector<32x32xf32>
    %375 = tpu.matmul %372, %374, %cst_210 {dimension_numbers = #tpu.dot_dimension_numbers<[1], [0], [0], [1], [0, 0, 1, 1], [], []>} : vector<32x8xf32>, vector<8x32xf32>, vector<32x32xf32> -> vector<32x32xf32>
    %376 = arith.addf %335, %375 : vector<32x32xf32>
    %c15 = arith.constant 15 : index
    %c0_211 = arith.constant 0 : index
    %c0_212 = arith.constant 0 : index
    %377 = vector.load %arg1[%c15, %c0_211, %c0_212] : memref<24x32x8xf32, #tpu.memory_space<vmem>>, vector<1x32x8xf32>
    %378 = vector.shape_cast %377 : vector<1x32x8xf32> to vector<32x8xf32>
    %cst_213 = arith.constant dense<0.000000e+00> : vector<32x8xf32>
    %379 = tpu.matmul %243, %378, %cst_213 {dimension_numbers = #tpu.dot_dimension_numbers<[1], [0], [0], [1], [0, 0, 1, 1], [], []>} : vector<32x32xf32>, vector<32x8xf32>, vector<32x8xf32> -> vector<32x8xf32>
    %c15_214 = arith.constant 15 : index
    %c0_215 = arith.constant 0 : index
    %c0_216 = arith.constant 0 : index
    %380 = vector.load %arg2[%c15_214, %c0_215, %c0_216] : memref<24x1x8xf32, #tpu.memory_space<vmem>>, vector<1x1x8xf32>
    %381 = vector.shape_cast %380 : vector<1x1x8xf32> to vector<1x8xf32>
    %382 = vector.broadcast %381 : vector<1x8xf32> to vector<32x8xf32>
    %383 = arith.addf %379, %382 : vector<32x8xf32>
    %384 = vector.shape_cast %383 : vector<32x8xf32> to vector<2x16x8xf32>
    %c19 = arith.constant 19 : index
    %c0_217 = arith.constant 0 : index
    %c0_218 = arith.constant 0 : index
    %385 = vector.load %arg1[%c19, %c0_217, %c0_218] : memref<24x32x8xf32, #tpu.memory_space<vmem>>, vector<1x32x8xf32>
    %386 = vector.shape_cast %385 : vector<1x32x8xf32> to vector<32x8xf32>
    %cst_219 = arith.constant dense<0.000000e+00> : vector<32x8xf32>
    %387 = tpu.matmul %243, %386, %cst_219 {dimension_numbers = #tpu.dot_dimension_numbers<[1], [0], [0], [1], [0, 0, 1, 1], [], []>} : vector<32x32xf32>, vector<32x8xf32>, vector<32x8xf32> -> vector<32x8xf32>
    %c19_220 = arith.constant 19 : index
    %c0_221 = arith.constant 0 : index
    %c0_222 = arith.constant 0 : index
    %388 = vector.load %arg2[%c19_220, %c0_221, %c0_222] : memref<24x1x8xf32, #tpu.memory_space<vmem>>, vector<1x1x8xf32>
    %389 = vector.shape_cast %388 : vector<1x1x8xf32> to vector<1x8xf32>
    %390 = vector.broadcast %389 : vector<1x8xf32> to vector<32x8xf32>
    %391 = arith.addf %387, %390 : vector<32x8xf32>
    %392 = vector.shape_cast %391 : vector<32x8xf32> to vector<2x16x8xf32>
    %c23 = arith.constant 23 : index
    %c0_223 = arith.constant 0 : index
    %c0_224 = arith.constant 0 : index
    %393 = vector.load %arg1[%c23, %c0_223, %c0_224] : memref<24x32x8xf32, #tpu.memory_space<vmem>>, vector<1x32x8xf32>
    %394 = vector.shape_cast %393 : vector<1x32x8xf32> to vector<32x8xf32>
    %cst_225 = arith.constant dense<0.000000e+00> : vector<32x8xf32>
    %395 = tpu.matmul %243, %394, %cst_225 {dimension_numbers = #tpu.dot_dimension_numbers<[1], [0], [0], [1], [0, 0, 1, 1], [], []>} : vector<32x32xf32>, vector<32x8xf32>, vector<32x8xf32> -> vector<32x8xf32>
    %c23_226 = arith.constant 23 : index
    %c0_227 = arith.constant 0 : index
    %c0_228 = arith.constant 0 : index
    %396 = vector.load %arg2[%c23_226, %c0_227, %c0_228] : memref<24x1x8xf32, #tpu.memory_space<vmem>>, vector<1x1x8xf32>
    %397 = vector.shape_cast %396 : vector<1x1x8xf32> to vector<1x8xf32>
    %398 = vector.broadcast %397 : vector<1x8xf32> to vector<32x8xf32>
    %399 = arith.addf %395, %398 : vector<32x8xf32>
    %400 = vector.shape_cast %399 : vector<32x8xf32> to vector<2x16x8xf32>
    "tpu.trace_start"() <{level = 10 : i32, message = "bqd,bkd->bqk"}> : () -> ()
    %cst_229 = arith.constant dense<0.000000e+00> : vector<2x16x16xf32>
    %401 = tpu.matmul %384, %392, %cst_229 {dimension_numbers = #tpu.dot_dimension_numbers<[2], [2], [1], [1], [0, 0, 0, 1, 1, 1], [0], [0]>} : vector<2x16x8xf32>, vector<2x16x8xf32>, vector<2x16x16xf32> -> vector<2x16x16xf32>
    "tpu.trace_stop"() : () -> ()
    %cst_230 = arith.constant dense<0xFF800000> : vector<2x16xf32>
    %402 = vector.multi_reduction <maximumf>, %401, %cst_230 [2] : vector<2x16x16xf32> to vector<2x16xf32>
    %403 = vector.shape_cast %402 : vector<2x16xf32> to vector<2x16x1xf32>
    %404 = vector.broadcast %403 : vector<2x16x1xf32> to vector<2x16x16xf32>
    %405 = arith.subf %401, %404 : vector<2x16x16xf32>
    %406 = math.exp %405 : vector<2x16x16xf32>
    %cst_231 = arith.constant dense<0.000000e+00> : vector<2x16xf32>
    %407 = vector.multi_reduction <add>, %406, %cst_231 [2] : vector<2x16x16xf32> to vector<2x16xf32>
    %408 = vector.shape_cast %407 : vector<2x16xf32> to vector<2x16x1xf32>
    %409 = tpu.reciprocal %408 {approx = true} : vector<2x16x1xf32> -> vector<2x16x1xf32>
    %410 = vector.broadcast %409 : vector<2x16x1xf32> to vector<2x16x16xf32>
    %411 = arith.mulf %406, %410 : vector<2x16x16xf32>
    "tpu.trace_start"() <{level = 10 : i32, message = "bqk,bkd->bqd"}> : () -> ()
    %cst_232 = arith.constant dense<0.000000e+00> : vector<2x16x8xf32>
    %412 = tpu.matmul %411, %400, %cst_232 {dimension_numbers = #tpu.dot_dimension_numbers<[2], [1], [1], [2], [0, 0, 0, 1, 1, 2], [0], [0]>} : vector<2x16x16xf32>, vector<2x16x8xf32>, vector<2x16x8xf32> -> vector<2x16x8xf32>
    "tpu.trace_stop"() : () -> ()
    %413 = vector.shape_cast %412 : vector<2x16x8xf32> to vector<32x8xf32>
    %c7_233 = arith.constant 7 : index
    %c0_234 = arith.constant 0 : index
    %c0_235 = arith.constant 0 : index
    %414 = vector.load %arg3[%c7_233, %c0_234, %c0_235] : memref<8x8x32xf32, #tpu.memory_space<vmem>>, vector<1x8x32xf32>
    %415 = vector.shape_cast %414 : vector<1x8x32xf32> to vector<8x32xf32>
    %cst_236 = arith.constant dense<0.000000e+00> : vector<32x32xf32>
    %416 = tpu.matmul %413, %415, %cst_236 {dimension_numbers = #tpu.dot_dimension_numbers<[1], [0], [0], [1], [0, 0, 1, 1], [], []>} : vector<32x8xf32>, vector<8x32xf32>, vector<32x32xf32> -> vector<32x32xf32>
    %417 = arith.addf %376, %416 : vector<32x32xf32>
    %418 = arith.addf %243, %417 : vector<32x32xf32>
    %cst_237 = arith.constant dense<0.000000e+00> : vector<32xf32>
    %419 = vector.multi_reduction <add>, %418, %cst_237 [1] : vector<32x32xf32> to vector<32xf32>
    %420 = vector.shape_cast %419 : vector<32xf32> to vector<32x1xf32>
    %cst_238 = arith.constant 3.200000e+01 : f32
    %421 = vector.broadcast %cst_238 : f32 to vector<32x1xf32>
    %422 = arith.divf %420, %421 : vector<32x1xf32>
    %423 = arith.mulf %418, %418 : vector<32x32xf32>
    %cst_239 = arith.constant dense<0.000000e+00> : vector<32xf32>
    %424 = vector.multi_reduction <add>, %423, %cst_239 [1] : vector<32x32xf32> to vector<32xf32>
    %425 = vector.shape_cast %424 : vector<32xf32> to vector<32x1xf32>
    %cst_240 = arith.constant 3.200000e+01 : f32
    %426 = vector.broadcast %cst_240 : f32 to vector<32x1xf32>
    %427 = arith.divf %425, %426 : vector<32x1xf32>
    %428 = arith.mulf %422, %422 : vector<32x1xf32>
    %429 = arith.subf %427, %428 : vector<32x1xf32>
    %430 = vector.broadcast %422 : vector<32x1xf32> to vector<32x32xf32>
    %431 = arith.subf %418, %430 : vector<32x32xf32>
    %cst_241 = arith.constant 9.99999996E-13 : f32
    %432 = vector.broadcast %cst_241 : f32 to vector<32x1xf32>
    %433 = arith.addf %429, %432 : vector<32x1xf32>
    %434 = math.rsqrt %433 : vector<32x1xf32>
    %435 = vector.broadcast %434 : vector<32x1xf32> to vector<32x32xf32>
    %436 = arith.mulf %431, %435 : vector<32x32xf32>
    %437 = vector.broadcast %249 : vector<1x32xf32> to vector<32x32xf32>
    %438 = arith.mulf %436, %437 : vector<32x32xf32>
    %439 = vector.broadcast %250 : vector<1x32xf32> to vector<32x32xf32>
    %440 = arith.addf %438, %439 : vector<32x32xf32>
    %c1_242 = arith.constant 1 : index
    %c0_243 = arith.constant 0 : index
    %c0_244 = arith.constant 0 : index
    %441 = vector.load %arg4[%c1_242, %c0_243, %c0_244] : memref<2x32x64xf32, #tpu.memory_space<vmem>>, vector<1x32x64xf32>
    %442 = vector.shape_cast %441 : vector<1x32x64xf32> to vector<32x64xf32>
    %cst_245 = arith.constant dense<0.000000e+00> : vector<32x64xf32>
    %443 = tpu.matmul %440, %442, %cst_245 {dimension_numbers = #tpu.dot_dimension_numbers<[1], [0], [0], [1], [0, 0, 1, 1], [], []>} : vector<32x32xf32>, vector<32x64xf32>, vector<32x64xf32> -> vector<32x64xf32>
    %444 = vector.broadcast %247 : vector<1x64xf32> to vector<32x64xf32>
    %445 = arith.addf %443, %444 : vector<32x64xf32>
    %446 = arith.mulf %445, %445 : vector<32x64xf32>
    %447 = arith.mulf %445, %446 : vector<32x64xf32>
    %cst_246 = arith.constant 4.471500e-02 : f32
    %448 = vector.broadcast %cst_246 : f32 to vector<32x64xf32>
    %449 = arith.mulf %448, %447 : vector<32x64xf32>
    %450 = arith.addf %445, %449 : vector<32x64xf32>
    %cst_247 = arith.constant 0.797884583 : f32
    %451 = vector.broadcast %cst_247 : f32 to vector<32x64xf32>
    %452 = arith.mulf %451, %450 : vector<32x64xf32>
    %453 = math.tanh %452 : vector<32x64xf32>
    %cst_248 = arith.constant 1.000000e+00 : f32
    %454 = vector.broadcast %cst_248 : f32 to vector<32x64xf32>
    %455 = arith.addf %454, %453 : vector<32x64xf32>
    %cst_249 = arith.constant 5.000000e-01 : f32
    %456 = vector.broadcast %cst_249 : f32 to vector<32x64xf32>
    %457 = arith.mulf %456, %455 : vector<32x64xf32>
    %458 = arith.mulf %445, %457 : vector<32x64xf32>
    %c1_250 = arith.constant 1 : index
    %c0_251 = arith.constant 0 : index
    %c0_252 = arith.constant 0 : index
    %459 = vector.load %arg5[%c1_250, %c0_251, %c0_252] : memref<2x64x32xf32, #tpu.memory_space<vmem>>, vector<1x64x32xf32>
    %460 = vector.shape_cast %459 : vector<1x64x32xf32> to vector<64x32xf32>
    %cst_253 = arith.constant dense<0.000000e+00> : vector<32x32xf32>
    %461 = tpu.matmul %458, %460, %cst_253 {dimension_numbers = #tpu.dot_dimension_numbers<[1], [0], [0], [1], [0, 0, 1, 1], [], []>} : vector<32x64xf32>, vector<64x32xf32>, vector<32x32xf32> -> vector<32x32xf32>
    %462 = vector.broadcast %248 : vector<1x32xf32> to vector<32x32xf32>
    %463 = arith.addf %461, %462 : vector<32x32xf32>
    %464 = arith.addf %440, %463 : vector<32x32xf32>
    %cst_254 = arith.constant dense<0.000000e+00> : vector<32xf32>
    %465 = vector.multi_reduction <add>, %464, %cst_254 [1] : vector<32x32xf32> to vector<32xf32>
    %466 = vector.shape_cast %465 : vector<32xf32> to vector<32x1xf32>
    %cst_255 = arith.constant 3.200000e+01 : f32
    %467 = vector.broadcast %cst_255 : f32 to vector<32x1xf32>
    %468 = arith.divf %466, %467 : vector<32x1xf32>
    %469 = arith.mulf %464, %464 : vector<32x32xf32>
    %cst_256 = arith.constant dense<0.000000e+00> : vector<32xf32>
    %470 = vector.multi_reduction <add>, %469, %cst_256 [1] : vector<32x32xf32> to vector<32xf32>
    %471 = vector.shape_cast %470 : vector<32xf32> to vector<32x1xf32>
    %cst_257 = arith.constant 3.200000e+01 : f32
    %472 = vector.broadcast %cst_257 : f32 to vector<32x1xf32>
    %473 = arith.divf %471, %472 : vector<32x1xf32>
    %474 = arith.mulf %468, %468 : vector<32x1xf32>
    %475 = arith.subf %473, %474 : vector<32x1xf32>
    %476 = vector.broadcast %468 : vector<32x1xf32> to vector<32x32xf32>
    %477 = arith.subf %464, %476 : vector<32x32xf32>
    %cst_258 = arith.constant 9.99999996E-13 : f32
    %478 = vector.broadcast %cst_258 : f32 to vector<32x1xf32>
    %479 = arith.addf %475, %478 : vector<32x1xf32>
    %480 = math.rsqrt %479 : vector<32x1xf32>
    %481 = vector.broadcast %480 : vector<32x1xf32> to vector<32x32xf32>
    %482 = arith.mulf %477, %481 : vector<32x32xf32>
    %483 = vector.broadcast %251 : vector<1x32xf32> to vector<32x32xf32>
    %484 = arith.mulf %482, %483 : vector<32x32xf32>
    %485 = vector.broadcast %252 : vector<1x32xf32> to vector<32x32xf32>
    %486 = arith.addf %484, %485 : vector<32x32xf32>
    %c0_259 = arith.constant 0 : index
    %c0_260 = arith.constant 0 : index
    %487 = vector.load %arg7[%c0_259, %c0_260] : memref<32x32xf32, #tpu.memory_space<vmem>>, vector<32x32xf32>
    tpu.vector_store %arg7[%c0_259, %c0_260], %486 {strides = array<i32>} : memref<32x32xf32, #tpu.memory_space<vmem>>, vector<32x32xf32>,
    return
  }
}

</mosaic_0001>

<bundles_post_ra>
// kernel: bert_forward.1
= control target key start
LH: loop header
LB: loop body
LE: loop exit
PB: predicated region body
PF: predicated region fallthrough
CT: control target
= control target key end

     0   :  { %vm43_vm0 = vcmask 261120   ;;  %s10511_s0 = inlined_call_operand.vmem [shape: f32[32,32], index: 0, kind: input, shape index: {}]   ;;  %s10512_s1 = inlined_call_operand.vmem [shape: f32[24,32,8], index: 1, kind: input, shape index: {}]   ;;  %s10513_s2 = inlined_call_operand.vmem [shape: f32[24,1,8], index: 2, kind: input, shape index: {}]   ;;  %s10514_s3 = inlined_call_operand.vmem [shape: f32[8,8,32], index: 3, kind: input, shape index: {}]   ;;  %s10515_s4 = inlined_call_operand.vmem [shape: f32[2,32,64], index: 4, kind: input, shape index: {}]   ;;  %s10516_s5 = inlined_call_operand.vmem [shape: f32[2,64,32], index: 5, kind: input, shape index: {}]   ;;  %s10517_s6 = inlined_call_operand.vmem [shape: f32[2,8,64], index: 6, kind: input, shape index: {}]   ;;  %s10518_s7 = inlined_call_operand.hbm [shape: f32[32,32], index: 7, kind: output, shape index: {}]  }
   0x1   :  { %v32_v0 = vld [vmem:[%s10512_s1] sm:$0xff]  ;;  %v33_v1 = vld [vmem:[%s10512_s1 + $0x8] sm:$0xff]  ;;  %v34_v2 = vld [vmem:[%s10512_s1 + $0x10] sm:$0xff] }
   0x2   :  { %v8621_v3 = vpack.c.bf16 %v33_v1, %v32_v0  ;;  %v35_v4 = vld [vmem:[%s10512_s1 + $0x18] sm:$0xff]  ;;  %v9318_v5 = vld [vmem:[%s10511_s0] sm:$0xff]  ;;  %v7132_v8 = vld [vmem:[%s10512_s1 + $0x88] sm:$0xff] }
   0x3   :  { %v8625_v6 = vpack.c.bf16 %v35_v4, %v34_v2  ;;  %7933 = vmatprep.mubr.msk.f32.mxu1 %vm43_vm0, %v9318_v5  ;;  %v7131_v7 = vld [vmem:[%s10512_s1 + $0x80] sm:$0xff]  ;;  %7961 = vmatprep.mubr.msk.f32.mxu0 %vm43_vm0, %v9318_v5  ;;  %v7142_v10 = vld [vmem:[%s10512_s1 + $0x108] sm:$0xff]  ;;  %v7143_v11 = vld [vmem:[%s10512_s1 + $0x110] sm:$0xff] }
   0x4   :  { %8622 = vmatprep.subr.bf16.mxu1 %v8621_v3  ;;  %v7141_v9 = vld [vmem:[%s10512_s1 + $0x100] sm:$0xff]  ;;  %v8629_v12 = vpack.c.bf16 %v7132_v8, %v7131_v7  ;;  %v7144_v14 = vld [vmem:[%s10512_s1 + $0x118] sm:$0xff] }
   0x5   :  { %8624 = vmatpush3.bf16.msra.mxu1 %v8621_v3  ;;  %v8637_v13 = vpack.c.bf16 %v7142_v10, %v7141_v9 }
   0x6   :  { %8626 = vmatprep.subr.bf16.mxu1 %v8625_v6 }
   0x7   :  { %12 = vsyncpa [#allocation3], 0  ;;  %v7133_v15 = vld [vmem:[%s10512_s1 + $0x90] sm:$0xff]  ;;  %v7134_v16 = vld [vmem:[%s10512_s1 + $0x98] sm:$0xff]  ;;  %v8641_v17 = vpack.c.bf16 %v7144_v14, %v7143_v11  ;;  %8638 = vmatprep.subr.bf16.mxu0 %v8637_v13  ;;  %vm337_vm1 = vcmask 64512   ;;  %vm512_vm3 = vcmask 130048  }
   0x8   :  { %v9351_v18 = vld [vmem:[%s10511_s0 + $0x8] sm:$0xff]  ;;  %8640 = vmatpush3.bf16.msra.mxu0 %v8637_v13  ;;  %v9356_v19 = vld [vmem:[%s10511_s0 + $0x10] sm:$0xff]  ;;  %v8633_v20 = vpack.c.bf16 %v7134_v16, %v7133_v15  ;;  %v9365_v21 = vld [vmem:[%s10511_s0 + $0x18] sm:$0xff]  ;;  %vm3390_vm4 = vcmask 523264  }
   0x9   :  { %8628 = vmatpush3.bf16.msra.mxu1 %v8625_v6  ;;  %8642 = vmatprep.subr.bf16.mxu0 %v8641_v17  ;;  %v7126_v22 = vld [vmem:[%s10513_s2] ss:$0 sm:$0xff]  ;;  %v7146_v27 = vld [vmem:[%s10513_s2 + $0x8] ss:$0 sm:$0xff]  ;;  %v7136_v30 = vld [vmem:[%s10513_s2 + $0x4] ss:$0 sm:$0xff] }
   0xa   :  { %8630 = vmatprep.subr.bf16.mxu1 %v8629_v12  ;;  %vm9396_vm2 = vmpackc.low %vm337_vm1, %vm337_vm1 }
   0xc   :  { %7934 = vmatmul.mubr.msk.f32.vlgmr.msra.gmra.mrb[0].mxu1 %vm43_vm0, %v9351_v18  ;;  %8644 = vmatpush3.bf16.msra.mxu0 %v8641_v17 }
   0xd   :  { %8632 = vmatpush3.bf16.msra.mxu1 %v8629_v12  ;;  %7936 = vmatprep.mubr.msk.f32.mxu1 %vm43_vm0, %v9356_v19 }
   0xe   :  { %8634 = vmatprep.subr.bf16.mxu1 %v8633_v20 }
   0xf   :  { %7962 = vmatmul.mubr.msk.f32.vlgmr.msra.gmra.mrb[0].mxu0 %vm43_vm0, %v9351_v18 }
  0x10   :  { %7937 = vmatmul.mubr.msk.f32.gmra.mrb[2].mxu1 %vm43_vm0, %v9365_v21  ;;  %7964 = vmatprep.mubr.msk.f32.mxu0 %vm43_vm0, %v9356_v19 }
  0x11   :  { %8636 = vmatpush3.bf16.msra.mxu1 %v8633_v20  ;;  %7947 = vmatprep.mubr.msk.f32.mxu1 %vm43_vm0, %v9318_v5 }
  0x13   :  { %7965 = vmatmul.mubr.msk.f32.gmra.mrb[2].mxu0 %vm43_vm0, %v9365_v21 }
  0x14   :  { %7948 = vmatmul.mubr.msk.f32.vlgmr.msra.gmra.mrb[4].mxu1 %vm43_vm0, %v9351_v18 }
  0x15   :  { %7950 = vmatprep.mubr.msk.f32.mxu1 %vm43_vm0, %v9356_v19 }
  0x18   :  { %7951 = vmatmul.mubr.msk.f32.gmra.mrb[6].mxu1 %vm43_vm0, %v9365_v21 }
  0xdf   :  { %v7935_v23 = vpop.f32.mrb[0].mxu1 }
  0xe0   :  { %v122_v24 = vpop.f32.mrb[1].mxu1  ;;  %v128_v52 = vadd.f32 %v7935_v23, %v7126_v22 }
  0xe1   :  { %v123_v25 = vadd.f32 %v7126_v22, %v122_v24 }
  0xe2   :  { %v7963_v31 = vpop.f32.mrb[0].mxu0 }
  0xe3   :  { %v7938_v26 = vpop.f32.mrb[2].mxu1  ;;  %7971 = vmatprep.mubr.msk.f32.mxu1 %vm337_vm1, %v123_v25  ;;  %v324_v32 = vadd.f32 %v7963_v31, %v7146_v27  ;;  %v318_v33 = vpop.f32.mrb[1].mxu0 }
  0xe4   :  { %v132_v28 = vpop.f32.mrb[3].mxu1  ;;  %v319_v35 = vadd.f32 %v7146_v27, %v318_v33  ;;  %v138_v53 = vadd.f32 %v7938_v26, %v7126_v22 }
  0xe5   :  { %v133_v29 = vadd.f32 %v7126_v22, %v132_v28  ;;  %v719_v22 = vld [vmem:[%s10514_s3] sm:$0xff] }
  0xe6   :  { %v8657_v39 = vpack.c.bf16 %v324_v32, %v319_v35  ;;  %v7966_v40 = vpop.f32.mrb[2].mxu0  ;;  %v7177_v35 = vld [vmem:[%s10512_s1 + $0xa0] sm:$0xff] }
  0xe7   :  { %v7949_v34 = vpop.f32.mrb[4].mxu1  ;;  %7978 = vmatprep.mubr.msk.f32.mxu0 %vm337_vm1, %v133_v29  ;;  %v334_v42 = vadd.f32 %v7966_v40, %v7146_v27  ;;  %v328_v43 = vpop.f32.mrb[3].mxu0 }
  0xe8   :  { %v226_v36 = vadd.f32 %v7949_v34, %v7136_v30  ;;  %v220_v37 = vpop.f32.mrb[5].mxu1  ;;  %v329_v46 = vadd.f32 %v7146_v27, %v328_v43  ;;  %v7170_v43 = vld [vmem:[%s10512_s1 + $0x38] sm:$0xff] }
  0xe9   :  { %v221_v38 = vadd.f32 %v7136_v30, %v220_v37 }
  0xea   :  { %v9402_v50 = vpack.c.bf16 %v334_v42, %v329_v46  ;;  %v7169_v42 = vld [vmem:[%s10512_s1 + $0x30] sm:$0xff]  ;;  %v7188_v46 = vld [vmem:[%s10512_s1 + $0x128] sm:$0xff] }
  0xeb   :  { %v8645_v44 = vpack.c.bf16 %v226_v36, %v221_v38  ;;  %v7952_v45 = vpop.f32.mrb[6].mxu1  ;;  %v7178_v36 = vld [vmem:[%s10512_s1 + $0xa8] sm:$0xff]  ;;  %v7167_v38 = vld [vmem:[%s10512_s1 + $0x20] sm:$0xff] }
  0xec   :  { %v236_v47 = vadd.f32 %v7952_v45, %v7136_v30  ;;  %v230_v48 = vpop.f32.mrb[7].mxu1  ;;  %v8673_v37 = vpack.c.bf16 %v7178_v36, %v7177_v35  ;;  %v7187_v45 = vld [vmem:[%s10512_s1 + $0x120] sm:$0xff] }
  0xed   :  { %v231_v49 = vadd.f32 %v7136_v30, %v230_v48  ;;  %8647 = vmatprep.subr.msk.bf16.mxu1 %vm9396_vm2, %v8645_v44  ;;  %v7179_v48 = vld [vmem:[%s10512_s1 + $0xb0] sm:$0xff] }
  0xee   :  { %8650 = vmatpush3.bf16.xpose.msk.msra.mxu1 %vm9396_vm2, %v8645_v44  ;;  %v8669_v44 = vpack.c.bf16 %v7170_v43, %v7169_v42 }
  0xef   :  { %v8651_v51 = vpack.c.bf16 %v236_v47, %v231_v49  ;;  %8658 = vmatprep.subr.bf16.mxu1 %v8657_v39  ;;  %v8681_v47 = vpack.c.bf16 %v7188_v46, %v7187_v45  ;;  %v7180_v49 = vld [vmem:[%s10512_s1 + $0xb8] sm:$0xff] }
  0xf1   :  { %8653 = vmatprep.subr.msk.bf16.mxu0 %vm9396_vm2, %v8651_v51 }
  0xf2   :  { %8656 = vmatpush3.bf16.xpose.msk.msra.mxu0 %vm9396_vm2, %v8651_v51 }
  0xf3   :  { %7995 = vmatprep.subr.mxu0 %v719_v22 }
  0xf5   :  { %7972 = vmatmul.mubr.msk.f32.vlgmr.msra.gmra.mrb[8].mxu1 %vm337_vm1, %v128_v52  ;;  %v8677_v52 = vpack.c.bf16 %v7180_v49, %v7179_v48 }
  0xf6   :  { %8660 = vmatpush3.bf16.msra.mxu1 %v8657_v39  ;;  %v7168_v39 = vld [vmem:[%s10512_s1 + $0x28] sm:$0xff] }
  0xf7   :  { %8662 = vmatprep.subr.bf16.mxu1 %v9402_v50  ;;  %v8665_v40 = vpack.c.bf16 %v7168_v39, %v7167_v38 }
  0xf9   :  { %7979 = vmatmul.mubr.msk.f32.vlgmr.msra.gmra.mrb[4].mxu0 %vm337_vm1, %v138_v53 }
  0xfa   :  { %7996 = vmatpush3.msra.mxu0 %v719_v22 }
  0xfb   :  { %8674 = vmatprep.subr.bf16.mxu0 %v8673_v37 }
 0x1c8   :  { %v7973_v54 = vpop.f32.mrb[8].mxu1 }
 0x1c9   :  { %v416_v55 = vpop.f32.mrb[9].mxu1  ;;  %v516_v60 = vsel %vm512_vm3, %v7973_v54, -inf }
 0x1ca   :  { %v513_v56 = vsel %vm512_vm3, %v416_v55, -inf }
 0x1cb   :  { %514 = vmax.xlane.f32.xlu0 %v513_v56  ;;  %v7190_v56 = vld [vmem:[%s10512_s1 + $0x138] sm:$0xff] }
 0x1cc   :  { %v7980_v57 = vpop.f32.mrb[4].mxu0 }
 0x1cd   :  { %v503_v58 = vpop.f32.mrb[5].mxu0  ;;  %v522_v61 = vsel %vm512_vm3, %v7980_v57, -inf }
 0x1ce   :  { %v519_v59 = vsel %vm512_vm3, %v503_v58, -inf }
 0x1cf   :  { %520 = vmax.xlane.f32.xlu1 %v519_v59  ;;  %517 = vmax.xlane.f32.xlu0 %v516_v60  ;;  %v7172_v59 = vld [vmem:[%s10513_s2 + $0x1] ss:$0 sm:$0xff] }
 0x1d3   :  { %523 = vmax.xlane.f32.xlu1 %v522_v61 }
 0x258   :  { %v515_v62 = vpop.xlane.xlu0 %514 }
 0x259   :  { %v525_v63 = vsub.f32 %v416_v55, %v515_v62  ;;  %v7189_v55 = vld [vmem:[%s10512_s1 + $0x130] sm:$0xff] }
 0x25b   :  { %v529_v0 = vmul.f32 1.442695, %v525_v63 }
 0x25c   :  { %v521_v1 = vpop.xlane.xlu1 %520  ;;  %v518_v2 = vpop.xlane.xlu0 %517 }
 0x25d   :  { %9056 = vpow2.f32 %v529_v0  ;;  %v527_v3 = vsub.f32 %v503_v58, %v521_v1  ;;  %v526_v4 = vsub.f32 %v7973_v54, %v518_v2 }
 0x25f   :  { %v533_v6 = vmul.f32 1.442695, %v527_v3  ;;  %v531_v7 = vmul.f32 1.442695, %v526_v4  ;;  %v7182_v3 = vld [vmem:[%s10513_s2 + $0x5] ss:$0 sm:$0xff] }
 0x260   :  { %v524_v8 = vpop.xlane.xlu1 %523 }
 0x261   :  { %9058 = vpow2.f32 %v533_v6  ;;  %v528_v9 = vsub.f32 %v7980_v57, %v524_v8  ;;  %v8685_v57 = vpack.c.bf16 %v7190_v56, %v7189_v55 }
 0x262   :  { %9060 = vpow2.f32 %v531_v7 }
 0x263   :  { %v535_v10 = vmul.f32 1.442695, %v528_v9 }
 0x265   :  { %9062 = vpow2.f32 %v535_v10 }
 0x267   :  { %v9057_v11 = vpop.eup %9056 }
 0x268   :  { %v537_v12 = vsel %vm512_vm3, %v9057_v11, 0.0 }
 0x269   :  { %538 = vadd.xlane.f32.xlu0 %v537_v12 }
 0x26b   :  { %v9059_v13 = vpop.eup %9058 }
 0x26c   :  { %v9061_v14 = vpop.eup %9060  ;;  %v543_v15 = vsel %vm512_vm3, %v9059_v13, 0.0 }
 0x26d   :  { %544 = vadd.xlane.f32.xlu0 %v543_v15  ;;  %v540_v16 = vsel %vm512_vm3, %v9061_v14, 0.0  ;;  %v7192_v15 = vld [vmem:[%s10513_s2 + $0x9] ss:$0 sm:$0xff] }
 0x26e   :  { %541 = vadd.xlane.f32.xlu1 %v540_v16 }
 0x26f   :  { %v9063_v17 = vpop.eup %9062 }
 0x270   :  { %v546_v20 = vsel %vm512_vm3, %v9063_v17, 0.0 }
 0x272   :  { %547 = vadd.xlane.f32.xlu1 %v546_v20 }
 0x2f6   :  { %v539_v23 = vpop.xlane.xlu0 %538 }
 0x2f7   :  { %9064 = vrcp.f32 %v539_v23 }
 0x2fa   :  { %v545_v24 = vpop.xlane.xlu0 %544 }
 0x2fb   :  { %v542_v25 = vpop.xlane.xlu1 %541  ;;  %9066 = vrcp.f32 %v545_v24 }
 0x2fc   :  { %9068 = vrcp.f32 %v542_v25 }
 0x2ff   :  { %v548_v26 = vpop.xlane.xlu1 %547 }
 0x300   :  { %9070 = vrcp.f32 %v548_v26 }
 0x301   :  { %v9065_v27 = vpop.eup %9064 }
 0x302   :  { %v553_v28 = vmul.f32 %v9065_v27, %v9057_v11 }
 0x304   :  { %7985 = vmatprep.mubr.msk.f32.mxu1 %vm512_vm3, %v553_v28 }
 0x305   :  { %v9067_v29 = vpop.eup %9066 }
 0x306   :  { %v9069_v30 = vpop.eup %9068  ;;  %v555_v31 = vmul.f32 %v9067_v29, %v9059_v13 }
 0x307   :  { %v554_v32 = vmul.f32 %v9069_v30, %v9061_v14 }
 0x309   :  { %7986 = vmatmul.mubr.msk.f32.vlgmr.msra.gmra.mrb[10].mxu1 %vm512_vm3, %v554_v32 }
 0x30a   :  { %v9071_v33 = vpop.eup %9070  ;;  %8664 = vmatpush3.bf16.msra.mxu1 %v9402_v50  ;;  %7992 = vmatprep.mubr.msk.f32.mxu1 %vm512_vm3, %v555_v31 }
 0x30b   :  { %v556_v34 = vmul.f32 %v9071_v33, %v9063_v17  ;;  %8666 = vmatprep.subr.bf16.mxu1 %v8665_v40 }
 0x30d   :  { %7993 = vmatmul.mubr.msk.f32.vlgmr.msra.gmra.mrb[12].mxu1 %vm512_vm3, %v556_v34 }
 0x30e   :  { %8011 = vmatprep.mubr.msk.f32.mxu1 %vm43_vm0, %v9318_v5  ;;  %8668 = vmatpush3.bf16.msra.mxu1 %v8665_v40 }
 0x30f   :  { %8670 = vmatprep.subr.bf16.mxu1 %v8669_v44 }
 0x312   :  { %8672 = vmatpush3.bf16.msra.mxu1 %v8669_v44 }
 0x313   :  { %8682 = vmatprep.subr.bf16.mxu1 %v8681_v47 }
 0x315   :  { %8012 = vmatmul.mubr.msk.f32.vlgmr.msra.gmra.mrb[14].mxu1 %vm43_vm0, %v9351_v18 }
 0x316   :  { %8014 = vmatprep.mubr.msk.f32.mxu1 %vm43_vm0, %v9356_v19  ;;  %8684 = vmatpush3.bf16.msra.mxu1 %v8681_v47 }
 0x317   :  { %8686 = vmatprep.subr.bf16.mxu1 %v8685_v57 }
 0x319   :  { %8015 = vmatmul.mubr.msk.f32.gmra.mrb[16].mxu1 %vm43_vm0, %v9365_v21 }
 0x31a   :  { %8039 = vmatprep.mubr.msk.f32.mxu1 %vm43_vm0, %v9318_v5  ;;  %8688 = vmatpush3.bf16.msra.mxu1 %v8685_v57 }
 0x31d   :  { %8040 = vmatmul.mubr.msk.f32.vlgmr.msra.gmra.mrb[18].mxu1 %vm43_vm0, %v9351_v18 }
 0x31e   :  { %8042 = vmatprep.mubr.msk.f32.mxu1 %vm43_vm0, %v9356_v19 }
 0x321   :  { %8043 = vmatmul.mubr.msk.f32.gmra.mrb[20].mxu1 %vm43_vm0, %v9365_v21 }
 0x3dc   :  { %v7987_v50 = vpop.f32.mrb[10].mxu1 }
 0x3dd   :  { %v629_v51 = vpop.f32.mrb[11].mxu1 }
 0x3de   :  { %7997 = vmatprep.mubr.msk.f32.mxu0 %vm337_vm1, %v629_v51 }
 0x3df   :  { %7998 = vmatmul.mubr.msk.f32.vlgmr.msra.gmra.mrb[6].mxu0 %vm337_vm1, %v7987_v50 }
 0x3e0   :  { %v7994_v53 = vpop.f32.mrb[12].mxu1  ;;  %8676 = vmatpush3.bf16.msra.mxu0 %v8673_v37 }
 0x3e1   :  { %v710_v54 = vpop.f32.mrb[13].mxu1  ;;  %8678 = vmatprep.subr.bf16.mxu0 %v8677_v52 }
 0x3e2   :  { %8000 = vmatprep.mubr.msk.f32.mxu0 %vm337_vm1, %v710_v54 }
 0x3e3   :  { %8001 = vmatmul.mubr.msk.f32.gmra.mrb[8].mxu0 %vm337_vm1, %v7994_v53 }
 0x3e4   :  { %8680 = vmatpush3.bf16.msra.mxu0 %v8677_v52  ;;  %8025 = vmatprep.mubr.msk.f32.mxu0 %vm43_vm0, %v9318_v5 }
 0x3e7   :  { %8026 = vmatmul.mubr.msk.f32.vlgmr.msra.gmra.mrb[10].mxu0 %vm43_vm0, %v9351_v18 }
 0x3e8   :  { %8028 = vmatprep.mubr.msk.f32.mxu0 %vm43_vm0, %v9356_v19  ;;  %v8013_v58 = vpop.f32.mrb[14].mxu1 }
 0x3e9   :  { %v910_v60 = vadd.f32 %v8013_v58, %v7172_v59  ;;  %v904_v61 = vpop.f32.mrb[15].mxu1 }
 0x3ea   :  { %v905_v62 = vadd.f32 %v7172_v59, %v904_v61 }
 0x3eb   :  { %8029 = vmatmul.mubr.msk.f32.gmra.mrb[12].mxu0 %vm43_vm0, %v9365_v21 }
 0x3ec   :  { %v8016_v63 = vpop.f32.mrb[16].mxu1  ;;  %8049 = vmatprep.mubr.msk.f32.mxu0 %vm337_vm1, %v905_v62 }
 0x3ed   :  { %v920_v0 = vadd.f32 %v8016_v63, %v7172_v59  ;;  %v914_v1 = vpop.f32.mrb[17].mxu1 }
 0x3ee   :  { %v915_v2 = vadd.f32 %v7172_v59, %v914_v1 }
 0x3f0   :  { %8056 = vmatprep.mubr.msk.f32.mxu1 %vm337_vm1, %v915_v2  ;;  %v8041_v16 = vpop.f32.mrb[18].mxu1 }
 0x3f1   :  { %v1106_v17 = vadd.f32 %v8041_v16, %v7192_v15  ;;  %v1100_v20 = vpop.f32.mrb[19].mxu1 }
 0x3f2   :  { %v1101_v22 = vadd.f32 %v7192_v15, %v1100_v20  ;;  %v7235_v20 = vld [vmem:[%s10512_s1 + $0x148] sm:$0xff] }
 0x3f4   :  { %v8701_v23 = vpack.c.bf16 %v1106_v17, %v1101_v22  ;;  %v8044_v24 = vpop.f32.mrb[20].mxu1  ;;  %v7234_v17 = vld [vmem:[%s10512_s1 + $0x140] sm:$0xff] }
 0x3f5   :  { %v1116_v25 = vadd.f32 %v8044_v24, %v7192_v15  ;;  %v1110_v26 = vpop.f32.mrb[21].mxu1  ;;  %v8725_v22 = vpack.c.bf16 %v7235_v20, %v7234_v17  ;;  %v7227_v24 = vld [vmem:[%s10512_s1 + $0xd8] sm:$0xff] }
 0x3f6   :  { %v1111_v27 = vadd.f32 %v7192_v15, %v1110_v26  ;;  %v7217_v15 = vld [vmem:[%s10512_s1 + $0x58] sm:$0xff] }
 0x3f8   :  { %v8705_v28 = vpack.c.bf16 %v1116_v25, %v1111_v27 }
 0x4ba   :  { %v8027_v4 = vpop.f32.mrb[10].mxu0 }
 0x4bb   :  { %v1008_v6 = vadd.f32 %v8027_v4, %v7182_v3  ;;  %v1002_v7 = vpop.f32.mrb[11].mxu0 }
 0x4bc   :  { %v1003_v8 = vadd.f32 %v7182_v3, %v1002_v7 }
 0x4be   :  { %v8689_v9 = vpack.c.bf16 %v1008_v6, %v1003_v8  ;;  %v8030_v10 = vpop.f32.mrb[12].mxu0  ;;  %v7224_v8 = vld [vmem:[%s10512_s1 + $0xc0] sm:$0xff] }
 0x4bf   :  { %v1018_v11 = vadd.f32 %v8030_v10, %v7182_v3  ;;  %v1012_v12 = vpop.f32.mrb[13].mxu0 }
 0x4c0   :  { %v1013_v13 = vadd.f32 %v7182_v3, %v1012_v12  ;;  %8691 = vmatprep.subr.msk.bf16.mxu0 %vm9396_vm2, %v8689_v9  ;;  %v7209_v3 = vld [vmem:[%s10514_s3 + $0x8] sm:$0xff] }
 0x4c1   :  { %8694 = vmatpush3.bf16.xpose.msk.msra.mxu0 %vm9396_vm2, %v8689_v9  ;;  %v7225_v9 = vld [vmem:[%s10512_s1 + $0xc8] sm:$0xff] }
 0x4c2   :  { %v8695_v14 = vpack.c.bf16 %v1018_v11, %v1013_v13  ;;  %8702 = vmatprep.subr.bf16.mxu0 %v8701_v23  ;;  %v8717_v10 = vpack.c.bf16 %v7225_v9, %v7224_v8  ;;  %v7214_v11 = vld [vmem:[%s10512_s1 + $0x40] sm:$0xff]  ;;  %v7215_v12 = vld [vmem:[%s10512_s1 + $0x48] sm:$0xff] }
 0x4c3   :  { %v8709_v13 = vpack.c.bf16 %v7215_v12, %v7214_v11 }
 0x4c4   :  { %8697 = vmatprep.subr.msk.bf16.mxu1 %vm9396_vm2, %v8695_v14 }
 0x4c5   :  { %8700 = vmatpush3.bf16.xpose.msk.msra.mxu1 %vm9396_vm2, %v8695_v14  ;;  %v7216_v14 = vld [vmem:[%s10512_s1 + $0x50] sm:$0xff] }
 0x4c6   :  { %8710 = vmatprep.subr.bf16.mxu1 %v8709_v13  ;;  %v8713_v16 = vpack.c.bf16 %v7217_v15, %v7216_v14 }
 0x4c8   :  { %8050 = vmatmul.mubr.msk.f32.vlgmr.msra.gmra.mrb[14].mxu0 %vm337_vm1, %v910_v60 }
 0x4c9   :  { %8704 = vmatpush3.bf16.msra.mxu0 %v8701_v23  ;;  %v7226_v23 = vld [vmem:[%s10512_s1 + $0xd0] sm:$0xff] }
 0x4ca   :  { %8706 = vmatprep.subr.bf16.mxu0 %v8705_v28  ;;  %v8721_v27 = vpack.c.bf16 %v7227_v24, %v7226_v23 }
 0x4cc   :  { %8057 = vmatmul.mubr.msk.f32.vlgmr.msra.gmra.mrb[22].mxu1 %vm337_vm1, %v920_v0 }
 0x4cd   :  { %8089 = vmatprep.mubr.msk.f32.mxu1 %vm43_vm0, %v9318_v5  ;;  %8712 = vmatpush3.bf16.msra.mxu1 %v8709_v13 }
 0x4ce   :  { %8714 = vmatprep.subr.bf16.mxu1 %v8713_v16 }
 0x4d1   :  { %8716 = vmatpush3.bf16.msra.mxu1 %v8713_v16 }
 0x4d2   :  { %8726 = vmatprep.subr.bf16.mxu1 %v8725_v22 }
 0x4d4   :  { %8090 = vmatmul.mubr.msk.f32.vlgmr.msra.gmra.mrb[24].mxu1 %vm43_vm0, %v9351_v18 }
 0x4d5   :  { %8092 = vmatprep.mubr.msk.f32.mxu1 %vm43_vm0, %v9356_v19  ;;  %8728 = vmatpush3.bf16.msra.mxu1 %v8725_v22 }
 0x4d8   :  { %8093 = vmatmul.mubr.msk.f32.gmra.mrb[26].mxu1 %vm43_vm0, %v9365_v21 }
 0x4d9   :  { %8117 = vmatprep.mubr.msk.f32.mxu1 %vm43_vm0, %v9318_v5 }
 0x59b   :  { %v8051_v29 = vpop.f32.mrb[14].mxu0 }
 0x59c   :  { %v1197_v30 = vpop.f32.mrb[15].mxu0  ;;  %v1296_v31 = vsel %vm512_vm3, %v8051_v29, -inf }
 0x59d   :  { %1297 = vmax.xlane.f32.xlu1 %v1296_v31  ;;  %v1293_v32 = vsel %vm512_vm3, %v1197_v30, -inf  ;;  %v7237_v31 = vld [vmem:[%s10512_s1 + $0x158] sm:$0xff] }
 0x59e   :  { %1294 = vmax.xlane.f32.xlu0 %v1293_v32 }
 0x59f   :  { %v8058_v33 = vpop.f32.mrb[22].mxu1 }
 0x5a0   :  { %v1284_v34 = vpop.f32.mrb[23].mxu1  ;;  %v1302_v35 = vsel %vm512_vm3, %v8058_v33, -inf }
 0x5a1   :  { %1303 = vmax.xlane.f32.xlu1 %v1302_v35  ;;  %v1299_v36 = vsel %vm512_vm3, %v1284_v34, -inf }
 0x5a2   :  { %1300 = vmax.xlane.f32.xlu0 %v1299_v36 }
 0x62a   :  { %v1298_v37 = vpop.xlane.xlu1 %1297 }
 0x62b   :  { %v1306_v38 = vsub.f32 %v8051_v29, %v1298_v37  ;;  %v1295_v39 = vpop.xlane.xlu0 %1294 }
 0x62c   :  { %v1305_v40 = vsub.f32 %v1197_v30, %v1295_v39  ;;  %v7236_v30 = vld [vmem:[%s10512_s1 + $0x150] sm:$0xff] }
 0x62d   :  { %v1311_v42 = vmul.f32 1.442695, %v1306_v38  ;;  %v8729_v32 = vpack.c.bf16 %v7237_v31, %v7236_v30 }
 0x62e   :  { %v1309_v43 = vmul.f32 1.442695, %v1305_v40  ;;  %v1304_v44 = vpop.xlane.xlu1 %1303 }
 0x62f   :  { %9072 = vpow2.f32 %v1311_v42  ;;  %v1308_v45 = vsub.f32 %v8058_v33, %v1304_v44  ;;  %v1301_v46 = vpop.xlane.xlu0 %1300  ;;  %8730 = vmatprep.subr.bf16.mxu1 %v8729_v32  ;;  %v8091_v33 = vpop.f32.mrb[24].mxu1 }
 0x630   :  { %9074 = vpow2.f32 %v1309_v43  ;;  %v1307_v47 = vsub.f32 %v1284_v34, %v1301_v46  ;;  %8732 = vmatpush3.bf16.msra.mxu1 %v8729_v32  ;;  %v7219_v34 = vld [vmem:[%s10513_s2 + $0x2] ss:$0 sm:$0xff]  ;;  %v1681_v36 = vpop.f32.mrb[25].mxu1  ;;  %v7229_v43 = vld [vmem:[%s10513_s2 + $0x6] ss:$0 sm:$0xff] }
 0x631   :  { %v1315_v48 = vmul.f32 1.442695, %v1308_v45  ;;  %v1687_v35 = vadd.f32 %v8091_v33, %v7219_v34  ;;  %v1682_v37 = vadd.f32 %v7219_v34, %v1681_v36  ;;  %v8094_v38 = vpop.f32.mrb[26].mxu1  ;;  %v7256_v33 = vld [vmem:[%s10514_s3 + $0x10] sm:$0xff] }
 0x632   :  { %v1313_v49 = vmul.f32 1.442695, %v1307_v47  ;;  %v1697_v39 = vadd.f32 %v8094_v38, %v7219_v34  ;;  %v1691_v40 = vpop.f32.mrb[27].mxu1 }
 0x633   :  { %9076 = vpow2.f32 %v1315_v48  ;;  %8118 = vmatmul.mubr.msk.f32.vlgmr.msra.gmra.mrb[28].mxu1 %vm43_vm0, %v9351_v18  ;;  %v1692_v42 = vadd.f32 %v7219_v34, %v1691_v40 }
 0x634   :  { %9078 = vpow2.f32 %v1313_v49  ;;  %8120 = vmatprep.mubr.msk.f32.mxu1 %vm43_vm0, %v9356_v19 }
 0x637   :  { %8121 = vmatmul.mubr.msk.f32.gmra.mrb[30].mxu1 %vm43_vm0, %v9365_v21 }
 0x638   :  { %8134 = vmatprep.mubr.msk.f32.mxu1 %vm337_vm1, %v1692_v42 }
 0x639   :  { %v9073_v50 = vpop.eup %9072 }
 0x63a   :  { %v9075_v51 = vpop.eup %9074  ;;  %v1320_v52 = vsel %vm512_vm3, %v9073_v50, 0.0 }
 0x63b   :  { %1321 = vadd.xlane.f32.xlu1 %v1320_v52  ;;  %v1317_v53 = vsel %vm512_vm3, %v9075_v51, 0.0 }
 0x63c   :  { %1318 = vadd.xlane.f32.xlu0 %v1317_v53 }
 0x63d   :  { %v9077_v54 = vpop.eup %9076 }
 0x63e   :  { %v9079_v55 = vpop.eup %9078  ;;  %v1326_v56 = vsel %vm512_vm3, %v9077_v54, 0.0 }
 0x63f   :  { %1327 = vadd.xlane.f32.xlu1 %v1326_v56  ;;  %v1323_v57 = vsel %vm512_vm3, %v9079_v55, 0.0 }
 0x640   :  { %1324 = vadd.xlane.f32.xlu0 %v1323_v57 }
 0x6c8   :  { %v1322_v58 = vpop.xlane.xlu1 %1321 }
 0x6c9   :  { %9080 = vrcp.f32 %v1322_v58  ;;  %v1319_v59 = vpop.xlane.xlu0 %1318 }
 0x6ca   :  { %9082 = vrcp.f32 %v1319_v59 }
 0x6cc   :  { %v1328_v60 = vpop.xlane.xlu1 %1327 }
 0x6cd   :  { %9084 = vrcp.f32 %v1328_v60  ;;  %v1325_v61 = vpop.xlane.xlu0 %1324 }
 0x6ce   :  { %9086 = vrcp.f32 %v1325_v61 }
 0x6d3   :  { %v9081_v62 = vpop.eup %9080 }
 0x6d4   :  { %v9083_v63 = vpop.eup %9082  ;;  %v1334_v1 = vmul.f32 %v9081_v62, %v9073_v50 }
 0x6d5   :  { %v1333_v0 = vmul.f32 %v9083_v63, %v9075_v51 }
 0x6d7   :  { %v9085_v2 = vpop.eup %9084  ;;  %8063 = vmatprep.mubr.msk.f32.mxu0 %vm512_vm3, %v1333_v0 }
 0x6d8   :  { %v9087_v4 = vpop.eup %9086  ;;  %8064 = vmatmul.mubr.msk.f32.vlgmr.msra.gmra.mrb[16].mxu0 %vm512_vm3, %v1334_v1  ;;  %v1336_v7 = vmul.f32 %v9085_v2, %v9077_v54  ;;  %v7239_v54 = vld [vmem:[%s10513_s2 + $0xa] ss:$0 sm:$0xff] }
 0x6d9   :  { %8708 = vmatpush3.bf16.msra.mxu0 %v8705_v28  ;;  %v1335_v6 = vmul.f32 %v9087_v4, %v9079_v55 }
 0x6da   :  { %8073 = vmatprep.subr.mxu0 %v7209_v3 }
 0x6db   :  { %8070 = vmatprep.mubr.msk.f32.mxu0 %vm512_vm3, %v1335_v6 }
 0x6dc   :  { %8071 = vmatmul.mubr.msk.f32.vlgmr.msra.gmra.mrb[18].mxu0 %vm512_vm3, %v1336_v7 }
 0x6dd   :  { %8074 = vmatpush3.msra.mxu0 %v7209_v3 }
 0x6de   :  { %8718 = vmatprep.subr.bf16.mxu0 %v8717_v10 }
 0x706   :  { %v8119_v55 = vpop.f32.mrb[28].mxu1 }
 0x707   :  { %v1883_v56 = vadd.f32 %v8119_v55, %v7239_v54  ;;  %v1877_v57 = vpop.f32.mrb[29].mxu1 }
 0x708   :  { %v1878_v58 = vadd.f32 %v7239_v54, %v1877_v57  ;;  %v7282_v57 = vld [vmem:[%s10512_s1 + $0x168] sm:$0xff] }
 0x70a   :  { %v8745_v59 = vpack.c.bf16 %v1883_v56, %v1878_v58  ;;  %v8122_v60 = vpop.f32.mrb[30].mxu1  ;;  %v7281_v56 = vld [vmem:[%s10512_s1 + $0x160] sm:$0xff] }
 0x70b   :  { %v1893_v61 = vadd.f32 %v8122_v60, %v7239_v54  ;;  %v1887_v62 = vpop.f32.mrb[31].mxu1  ;;  %v8769_v58 = vpack.c.bf16 %v7282_v57, %v7281_v56  ;;  %v7274_v60 = vld [vmem:[%s10512_s1 + $0xf8] sm:$0xff] }
 0x70c   :  { %v1888_v63 = vadd.f32 %v7239_v54, %v1887_v62  ;;  %v7264_v54 = vld [vmem:[%s10512_s1 + $0x78] sm:$0xff] }
 0x70e   :  { %v8749_v0 = vpack.c.bf16 %v1893_v61, %v1888_v63 }
 0x7ab   :  { %v8065_v25 = vpop.f32.mrb[16].mxu0 }
 0x7ac   :  { %v1409_v26 = vpop.f32.mrb[17].mxu0 }
 0x7ad   :  { %8075 = vmatprep.mubr.msk.f32.mxu0 %vm337_vm1, %v1409_v26 }
 0x7ae   :  { %8076 = vmatmul.mubr.msk.f32.vlgmr.msra.gmra.mrb[6].mxu0 %vm337_vm1, %v8065_v25 }
 0x7af   :  { %v8072_v28 = vpop.f32.mrb[18].mxu0  ;;  %8720 = vmatpush3.bf16.msra.mxu0 %v8717_v10 }
 0x7b0   :  { %v1490_v29 = vpop.f32.mrb[19].mxu0  ;;  %8722 = vmatprep.subr.bf16.mxu0 %v8721_v27 }
 0x7b1   :  { %8078 = vmatprep.mubr.msk.f32.mxu0 %vm337_vm1, %v1490_v29 }
 0x7b2   :  { %8079 = vmatmul.mubr.msk.f32.gmra.mrb[8].mxu0 %vm337_vm1, %v8072_v28 }
 0x7b3   :  { %8724 = vmatpush3.bf16.msra.mxu0 %v8721_v27  ;;  %8103 = vmatprep.mubr.msk.f32.mxu0 %vm43_vm0, %v9318_v5 }
 0x7b6   :  { %8104 = vmatmul.mubr.msk.f32.vlgmr.msra.gmra.mrb[20].mxu0 %vm43_vm0, %v9351_v18 }
 0x7b7   :  { %8106 = vmatprep.mubr.msk.f32.mxu0 %vm43_vm0, %v9356_v19 }
 0x7ba   :  { %8107 = vmatmul.mubr.msk.f32.gmra.mrb[22].mxu0 %vm43_vm0, %v9365_v21 }
 0x7bb   :  { %8127 = vmatprep.mubr.msk.f32.mxu0 %vm337_vm1, %v1682_v37 }
 0x889   :  { %v8105_v44 = vpop.f32.mrb[20].mxu0 }
 0x88a   :  { %v1785_v45 = vadd.f32 %v8105_v44, %v7229_v43  ;;  %v1779_v46 = vpop.f32.mrb[21].mxu0 }
 0x88b   :  { %v1780_v47 = vadd.f32 %v7229_v43, %v1779_v46 }
 0x88d   :  { %v8733_v48 = vpack.c.bf16 %v1785_v45, %v1780_v47  ;;  %v8108_v49 = vpop.f32.mrb[22].mxu0  ;;  %v7271_v47 = vld [vmem:[%s10512_s1 + $0xe0] sm:$0xff] }
 0x88e   :  { %v1795_v50 = vadd.f32 %v8108_v49, %v7229_v43  ;;  %v1789_v51 = vpop.f32.mrb[23].mxu0 }
 0x88f   :  { %v1790_v52 = vadd.f32 %v7229_v43, %v1789_v51  ;;  %8735 = vmatprep.subr.msk.bf16.mxu0 %vm9396_vm2, %v8733_v48  ;;  %v7262_v51 = vld [vmem:[%s10512_s1 + $0x68] sm:$0xff] }
 0x890   :  { %8738 = vmatpush3.bf16.xpose.msk.msra.mxu0 %vm9396_vm2, %v8733_v48  ;;  %v7272_v48 = vld [vmem:[%s10512_s1 + $0xe8] sm:$0xff] }
 0x891   :  { %v8739_v53 = vpack.c.bf16 %v1795_v50, %v1790_v52  ;;  %8746 = vmatprep.subr.bf16.mxu0 %v8745_v59  ;;  %v8761_v49 = vpack.c.bf16 %v7272_v48, %v7271_v47  ;;  %v7261_v50 = vld [vmem:[%s10512_s1 + $0x60] sm:$0xff] }
 0x892   :  { %v8753_v52 = vpack.c.bf16 %v7262_v51, %v7261_v50 }
 0x893   :  { %8741 = vmatprep.subr.msk.bf16.mxu1 %vm9396_vm2, %v8739_v53 }
 0x894   :  { %8744 = vmatpush3.bf16.xpose.msk.msra.mxu1 %vm9396_vm2, %v8739_v53  ;;  %v7263_v53 = vld [vmem:[%s10512_s1 + $0x70] sm:$0xff] }
 0x895   :  { %8750 = vmatprep.subr.bf16.mxu1 %v8749_v0  ;;  %v8757_v55 = vpack.c.bf16 %v7264_v54, %v7263_v53 }
 0x897   :  { %8128 = vmatmul.mubr.msk.f32.vlgmr.msra.gmra.mrb[24].mxu0 %vm337_vm1, %v1687_v35 }
 0x898   :  { %8748 = vmatpush3.bf16.msra.mxu0 %v8745_v59  ;;  %v7273_v59 = vld [vmem:[%s10512_s1 + $0xf0] sm:$0xff] }
 0x899   :  { %8151 = vmatprep.subr.mxu0 %v7256_v33  ;;  %v8765_v63 = vpack.c.bf16 %v7274_v60, %v7273_v59 }
 0x89b   :  { %8135 = vmatmul.mubr.msk.f32.vlgmr.msra.gmra.mrb[32].mxu1 %vm337_vm1, %v1697_v39 }
 0x89c   :  { %8752 = vmatpush3.bf16.msra.mxu1 %v8749_v0 }
 0x89d   :  { %8754 = vmatprep.subr.bf16.mxu1 %v8753_v52 }
 0x96a   :  { %v8129_v1 = vpop.f32.mrb[24].mxu0 }
 0x96b   :  { %v1974_v2 = vpop.f32.mrb[25].mxu0  ;;  %v2073_v3 = vsel %vm512_vm3, %v8129_v1, -inf }
 0x96c   :  { %2074 = vmax.xlane.f32.xlu1 %v2073_v3  ;;  %v2070_v4 = vsel %vm512_vm3, %v1974_v2, -inf  ;;  %v7284_v3 = vld [vmem:[%s10512_s1 + $0x178] sm:$0xff] }
 0x96d   :  { %2071 = vmax.xlane.f32.xlu0 %v2070_v4 }
 0x96e   :  { %v8136_v6 = vpop.f32.mrb[32].mxu1 }
 0x96f   :  { %v2061_v7 = vpop.f32.mrb[33].mxu1  ;;  %v2079_v8 = vsel %vm512_vm3, %v8136_v6, -inf }
 0x970   :  { %2080 = vmax.xlane.f32.xlu1 %v2079_v8  ;;  %v2076_v9 = vsel %vm512_vm3, %v2061_v7, -inf }
 0x971   :  { %2077 = vmax.xlane.f32.xlu0 %v2076_v9 }
 0x9f9   :  { %v2075_v10 = vpop.xlane.xlu1 %2074 }
 0x9fa   :  { %v2083_v11 = vsub.f32 %v8129_v1, %v2075_v10  ;;  %v2072_v12 = vpop.xlane.xlu0 %2071 }
 0x9fb   :  { %v2082_v13 = vsub.f32 %v1974_v2, %v2072_v12  ;;  %v7283_v2 = vld [vmem:[%s10512_s1 + $0x170] sm:$0xff] }
 0x9fc   :  { %v2088_v14 = vmul.f32 1.442695, %v2083_v11  ;;  %v8773_v4 = vpack.c.bf16 %v7284_v3, %v7283_v2 }
 0x9fd   :  { %v2086_v15 = vmul.f32 1.442695, %v2082_v13  ;;  %v2081_v16 = vpop.xlane.xlu1 %2080 }
 0x9fe   :  { %9088 = vpow2.f32 %v2088_v14  ;;  %v2085_v17 = vsub.f32 %v8136_v6, %v2081_v16  ;;  %v2078_v20 = vpop.xlane.xlu0 %2077  ;;  %v7266_v6 = vld [vmem:[%s10513_s2 + $0x3] ss:$0 sm:$0xff] }
 0x9ff   :  { %9090 = vpow2.f32 %v2086_v15  ;;  %v2084_v22 = vsub.f32 %v2061_v7, %v2078_v20 }
 0xa00   :  { %v2092_v23 = vmul.f32 1.442695, %v2085_v17 }
 0xa01   :  { %v2090_v24 = vmul.f32 1.442695, %v2084_v22 }
 0xa02   :  { %9092 = vpow2.f32 %v2092_v23 }
 0xa03   :  { %9094 = vpow2.f32 %v2090_v24 }
 0xa08   :  { %v9089_v25 = vpop.eup %9088 }
 0xa09   :  { %v9091_v26 = vpop.eup %9090  ;;  %v2097_v27 = vsel %vm512_vm3, %v9089_v25, 0.0 }
 0xa0a   :  { %2098 = vadd.xlane.f32.xlu1 %v2097_v27  ;;  %v2094_v28 = vsel %vm512_vm3, %v9091_v26, 0.0 }
 0xa0b   :  { %2095 = vadd.xlane.f32.xlu0 %v2094_v28 }
 0xa0c   :  { %v9093_v29 = vpop.eup %9092 }
 0xa0d   :  { %v9095_v30 = vpop.eup %9094  ;;  %v2103_v31 = vsel %vm512_vm3, %v9093_v29, 0.0 }
 0xa0e   :  { %2104 = vadd.xlane.f32.xlu1 %v2103_v31  ;;  %v2100_v32 = vsel %vm512_vm3, %v9095_v30, 0.0 }
 0xa0f   :  { %2101 = vadd.xlane.f32.xlu0 %v2100_v32 }
 0xa97   :  { %v2099_v34 = vpop.xlane.xlu1 %2098 }
 0xa98   :  { %9096 = vrcp.f32 %v2099_v34  ;;  %v2096_v35 = vpop.xlane.xlu0 %2095 }
 0xa99   :  { %9098 = vrcp.f32 %v2096_v35 }
 0xa9b   :  { %v2105_v36 = vpop.xlane.xlu1 %2104 }
 0xa9c   :  { %9100 = vrcp.f32 %v2105_v36  ;;  %v2102_v37 = vpop.xlane.xlu0 %2101 }
 0xa9d   :  { %9102 = vrcp.f32 %v2102_v37 }
 0xaa2   :  { %v9097_v38 = vpop.eup %9096 }
 0xaa3   :  { %v9099_v39 = vpop.eup %9098  ;;  %v2111_v42 = vmul.f32 %v9097_v38, %v9089_v25  ;;  %v7286_v25 = vld [vmem:[%s10513_s2 + $0xb] ss:$0 sm:$0xff] }
 0xaa4   :  { %v2110_v40 = vmul.f32 %v9099_v39, %v9091_v26 }
 0xaa6   :  { %v9101_v43 = vpop.eup %9100  ;;  %8141 = vmatprep.mubr.msk.f32.mxu0 %vm512_vm3, %v2110_v40 }
 0xaa7   :  { %v9103_v44 = vpop.eup %9102  ;;  %8142 = vmatmul.mubr.msk.f32.vlgmr.msra.gmra.mrb[26].mxu0 %vm512_vm3, %v2111_v42  ;;  %v2113_v46 = vmul.f32 %v9101_v43, %v9093_v29 }
 0xaa8   :  { %v2112_v45 = vmul.f32 %v9103_v44, %v9095_v30  ;;  %8152 = vmatpush3.msra.mxu0 %v7256_v33 }
 0xaa9   :  { %8762 = vmatprep.subr.bf16.mxu0 %v8761_v49 }
 0xaaa   :  { %8148 = vmatprep.mubr.msk.f32.mxu1 %vm512_vm3, %v2112_v45 }
 0xaab   :  { %8149 = vmatmul.mubr.msk.f32.vlgmr.msra.gmra.mrb[34].mxu1 %vm512_vm3, %v2113_v46 }
 0xaac   :  { %8167 = vmatprep.mubr.msk.f32.mxu1 %vm43_vm0, %v9318_v5  ;;  %8756 = vmatpush3.bf16.msra.mxu1 %v8753_v52 }
 0xaad   :  { %8758 = vmatprep.subr.bf16.mxu1 %v8757_v55 }
 0xab0   :  { %8760 = vmatpush3.bf16.msra.mxu1 %v8757_v55 }
 0xab1   :  { %8770 = vmatprep.subr.bf16.mxu1 %v8769_v58 }
 0xab3   :  { %8168 = vmatmul.mubr.msk.f32.vlgmr.msra.gmra.mrb[36].mxu1 %vm43_vm0, %v9351_v18 }
 0xab4   :  { %8170 = vmatprep.mubr.msk.f32.mxu1 %vm43_vm0, %v9356_v19  ;;  %8772 = vmatpush3.bf16.msra.mxu1 %v8769_v58 }
 0xab5   :  { %8774 = vmatprep.subr.bf16.mxu1 %v8773_v4 }
 0xab7   :  { %8171 = vmatmul.mubr.msk.f32.gmra.mrb[38].mxu1 %vm43_vm0, %v9365_v21 }
 0xab8   :  { %8195 = vmatprep.mubr.msk.f32.mxu1 %vm43_vm0, %v9318_v5  ;;  %8776 = vmatpush3.bf16.msra.mxu1 %v8773_v4 }
 0xabb   :  { %8196 = vmatmul.mubr.msk.f32.vlgmr.msra.gmra.mrb[40].mxu1 %vm43_vm0, %v9351_v18 }
 0xabc   :  { %8198 = vmatprep.mubr.msk.f32.mxu1 %vm43_vm0, %v9356_v19 }
 0xabf   :  { %8199 = vmatmul.mubr.msk.f32.gmra.mrb[42].mxu1 %vm43_vm0, %v9365_v21 }
 0xb7a   :  { %v8143_v61 = vpop.f32.mrb[26].mxu0 }
 0xb7b   :  { %v2186_v62 = vpop.f32.mrb[27].mxu0 }
 0xb7c   :  { %8153 = vmatprep.mubr.msk.f32.mxu0 %vm337_vm1, %v2186_v62 }
 0xb7d   :  { %8154 = vmatmul.mubr.msk.f32.vlgmr.msra.gmra.mrb[6].mxu0 %vm337_vm1, %v8143_v61 }
 0xb7e   :  { %v8150_v0 = vpop.f32.mrb[34].mxu1  ;;  %8764 = vmatpush3.bf16.msra.mxu0 %v8761_v49 }
 0xb7f   :  { %v2267_v1 = vpop.f32.mrb[35].mxu1  ;;  %8766 = vmatprep.subr.bf16.mxu0 %v8765_v63 }
 0xb80   :  { %8156 = vmatprep.mubr.msk.f32.mxu0 %vm337_vm1, %v2267_v1 }
 0xb81   :  { %8157 = vmatmul.mubr.msk.f32.gmra.mrb[8].mxu0 %vm337_vm1, %v8150_v0 }
 0xb82   :  { %8768 = vmatpush3.bf16.msra.mxu0 %v8765_v63  ;;  %8181 = vmatprep.mubr.msk.f32.mxu0 %vm43_vm0, %v9318_v5 }
 0xb85   :  { %8182 = vmatmul.mubr.msk.f32.vlgmr.msra.gmra.mrb[28].mxu0 %vm43_vm0, %v9351_v18 }
 0xb86   :  { %8184 = vmatprep.mubr.msk.f32.mxu0 %vm43_vm0, %v9356_v19  ;;  %v8169_v5 = vpop.f32.mrb[36].mxu1  ;;  %v7276_v19 = vld [vmem:[%s10513_s2 + $0x7] ss:$0 sm:$0xff] }
 0xb87   :  { %v2464_v7 = vadd.f32 %v8169_v5, %v7266_v6  ;;  %v2458_v8 = vpop.f32.mrb[37].mxu1 }
 0xb88   :  { %v2459_v9 = vadd.f32 %v7266_v6, %v2458_v8 }
 0xb89   :  { %8185 = vmatmul.mubr.msk.f32.gmra.mrb[30].mxu0 %vm43_vm0, %v9365_v21 }
 0xb8a   :  { %8205 = vmatprep.mubr.msk.f32.mxu0 %vm337_vm1, %v2459_v9  ;;  %v8172_v10 = vpop.f32.mrb[38].mxu1 }
 0xb8b   :  { %v2474_v11 = vadd.f32 %v8172_v10, %v7266_v6  ;;  %v2468_v12 = vpop.f32.mrb[39].mxu1  ;;  %v7303_v10 = vld [vmem:[%s10514_s3 + $0x18] sm:$0xff] }
 0xb8c   :  { %v2469_v18 = vadd.f32 %v7266_v6, %v2468_v12 }
 0xb8e   :  { %8212 = vmatprep.mubr.msk.f32.mxu1 %vm337_vm1, %v2469_v18  ;;  %v8197_v26 = vpop.f32.mrb[40].mxu1 }
 0xb8f   :  { %v2660_v27 = vadd.f32 %v8197_v26, %v7286_v25  ;;  %v2654_v28 = vpop.f32.mrb[41].mxu1 }
 0xb90   :  { %v2655_v29 = vadd.f32 %v7286_v25, %v2654_v28 }
 0xb92   :  { %v8789_v30 = vpack.c.bf16 %v2660_v27, %v2655_v29  ;;  %v8200_v31 = vpop.f32.mrb[42].mxu1  ;;  %v9232_v27 = vld [vmem:[%s10511_s0 + $0x8] sm:$0xff]  ;;  %v9233_v29 = vld [vmem:[%s10511_s0] sm:$0xff] }
 0xb93   :  { %v2670_v32 = vadd.f32 %v8200_v31, %v7286_v25  ;;  %v2664_v33 = vpop.f32.mrb[43].mxu1 }
 0xb94   :  { %v2665_v34 = vadd.f32 %v7286_v25, %v2664_v33 }
 0xb96   :  { %v8793_v35 = vpack.c.bf16 %v2670_v32, %v2665_v34 }
 0xc58   :  { %v8183_v13 = vpop.f32.mrb[28].mxu0 }
 0xc59   :  { %v2562_v14 = vadd.f32 %v8183_v13, %v7276_v19  ;;  %v2556_v15 = vpop.f32.mrb[29].mxu0 }
 0xc5a   :  { %v2557_v16 = vadd.f32 %v7276_v19, %v2556_v15 }
 0xc5c   :  { %v8777_v17 = vpack.c.bf16 %v2562_v14, %v2557_v16  ;;  %v8186_v20 = vpop.f32.mrb[30].mxu0  ;;  %v817_v16 = vlaneseq }
 0xc5d   :  { %v2572_v22 = vadd.f32 %v8186_v20, %v7276_v19  ;;  %v2566_v21 = vpop.f32.mrb[31].mxu0 }
 0xc5e   :  { %v2567_v23 = vadd.f32 %v7276_v19, %v2566_v21  ;;  %8779 = vmatprep.subr.msk.bf16.mxu0 %vm9396_vm2, %v8777_v17 }
 0xc5f   :  { %8782 = vmatpush3.bf16.xpose.msk.msra.mxu0 %vm9396_vm2, %v8777_v17  ;;  %v9733_v17 = vshrl.u32 %v817_v16, 7 }
 0xc60   :  { %v8783_v24 = vpack.c.bf16 %v2572_v22, %v2567_v23  ;;  %8790 = vmatprep.subr.bf16.mxu0 %v8789_v30  ;;  %v9739_v22 = vld [vmem:[%s10517_s6] sm:$0xff] }
 0xc61   :  { %v819_v20 = vsub.s32 0, %v9733_v17 }
 0xc62   :  { %8785 = vmatprep.subr.msk.bf16.mxu1 %vm9396_vm2, %v8783_v24 }
 0xc63   :  { %8788 = vmatpush3.bf16.xpose.msk.msra.mxu1 %vm9396_vm2, %v8783_v24  ;;  %v820_v21 = vrot.slane %v9739_v22, %v819_v20 }
 0xc66   :  { %8206 = vmatmul.mubr.msk.f32.vlgmr.msra.gmra.mrb[32].mxu0 %vm337_vm1, %v2464_v7 }
 0xc67   :  { %8792 = vmatpush3.bf16.msra.mxu0 %v8789_v30 }
 0xc68   :  { %8794 = vmatprep.subr.bf16.mxu0 %v8793_v35 }
 0xc6a   :  { %8213 = vmatmul.mubr.msk.f32.vlgmr.msra.gmra.mrb[44].mxu1 %vm337_vm1, %v2474_v11 }
 0xd39   :  { %v8207_v36 = vpop.f32.mrb[32].mxu0 }
 0xd3a   :  { %v2751_v37 = vpop.f32.mrb[33].mxu0  ;;  %v2850_v38 = vsel %vm512_vm3, %v8207_v36, -inf }
 0xd3b   :  { %2851 = vmax.xlane.f32.xlu1 %v2850_v38  ;;  %v2847_v39 = vsel %vm512_vm3, %v2751_v37, -inf }
 0xd3c   :  { %2848 = vmax.xlane.f32.xlu0 %v2847_v39  ;;  %v9234_v39 = vld [vmem:[%s10511_s0 + $0x18] sm:$0xff] }
 0xd3d   :  { %v8214_v40 = vpop.f32.mrb[44].mxu1 }
 0xd3e   :  { %v2838_v42 = vpop.f32.mrb[45].mxu1  ;;  %v2856_v43 = vsel %vm512_vm3, %v8214_v40, -inf }
 0xd3f   :  { %2857 = vmax.xlane.f32.xlu1 %v2856_v43  ;;  %v2853_v44 = vsel %vm512_vm3, %v2838_v42, -inf  ;;  %v9235_v43 = vld [vmem:[%s10511_s0 + $0x10] sm:$0xff] }
 0xd40   :  { %2854 = vmax.xlane.f32.xlu0 %v2853_v44 }
 0xdc8   :  { %v2852_v45 = vpop.xlane.xlu1 %2851 }
 0xdc9   :  { %v2860_v46 = vsub.f32 %v8207_v36, %v2852_v45  ;;  %v2849_v47 = vpop.xlane.xlu0 %2848 }
 0xdca   :  { %v2859_v48 = vsub.f32 %v2751_v37, %v2849_v47 }
 0xdcb   :  { %v2865_v49 = vmul.f32 1.442695, %v2860_v46 }
 0xdcc   :  { %v2863_v50 = vmul.f32 1.442695, %v2859_v48  ;;  %v2858_v51 = vpop.xlane.xlu1 %2857 }
 0xdcd   :  { %9104 = vpow2.f32 %v2865_v49  ;;  %v2862_v52 = vsub.f32 %v8214_v40, %v2858_v51  ;;  %v2855_v53 = vpop.xlane.xlu0 %2854 }
 0xdce   :  { %9106 = vpow2.f32 %v2863_v50  ;;  %v2861_v54 = vsub.f32 %v2838_v42, %v2855_v53  ;;  %v3238_v53 = vld [vmem:[%s10515_s4 + $0x8] sm:$0xff] }
 0xdcf   :  { %v2869_v55 = vmul.f32 1.442695, %v2862_v52  ;;  %v3237_v52 = vld [vmem:[%s10515_s4] sm:$0xff] }
 0xdd0   :  { %v2867_v56 = vmul.f32 1.442695, %v2861_v54  ;;  %v8797_v54 = vpack.c.bf16 %v3238_v53, %v3237_v52  ;;  %v3380_v53 = vld [vmem:[%s10516_s5 + $0x10] sm:$0xff] }
 0xdd1   :  { %9108 = vpow2.f32 %v2869_v55  ;;  %v3239_v55 = vld [vmem:[%s10515_s4 + $0x10] sm:$0xff] }
 0xdd2   :  { %9110 = vpow2.f32 %v2867_v56  ;;  %v3240_v56 = vld [vmem:[%s10515_s4 + $0x18] sm:$0xff]  ;;  %8798 = vmatprep.subr.bf16.mxu1 %v8797_v54 }
 0xdd3   :  { %8800 = vmatpush3.bf16.msra.mxu1 %v8797_v54  ;;  %v3381_v54 = vld [vmem:[%s10516_s5 + $0x18] sm:$0xff] }
 0xdd7   :  { %v9105_v57 = vpop.eup %9104 }
 0xdd8   :  { %v9107_v58 = vpop.eup %9106  ;;  %v2874_v59 = vsel %vm512_vm3, %v9105_v57, 0.0 }
 0xdd9   :  { %2875 = vadd.xlane.f32.xlu1 %v2874_v59  ;;  %v2871_v60 = vsel %vm512_vm3, %v9107_v58, 0.0 }
 0xdda   :  { %2872 = vadd.xlane.f32.xlu0 %v2871_v60 }
 0xddb   :  { %v9109_v61 = vpop.eup %9108 }
 0xddc   :  { %v9111_v62 = vpop.eup %9110  ;;  %v2880_v63 = vsel %vm512_vm3, %v9109_v61, 0.0 }
 0xddd   :  { %2881 = vadd.xlane.f32.xlu1 %v2880_v63  ;;  %v2877_v0 = vsel %vm512_vm3, %v9111_v62, 0.0 }
 0xdde   :  { %2878 = vadd.xlane.f32.xlu0 %v2877_v0 }
 0xe66   :  { %v2876_v1 = vpop.xlane.xlu1 %2875 }
 0xe67   :  { %9112 = vrcp.f32 %v2876_v1  ;;  %v2873_v2 = vpop.xlane.xlu0 %2872 }
 0xe68   :  { %9114 = vrcp.f32 %v2873_v2 }
 0xe6a   :  { %v2882_v3 = vpop.xlane.xlu1 %2881 }
 0xe6b   :  { %9116 = vrcp.f32 %v2882_v3  ;;  %v2879_v4 = vpop.xlane.xlu0 %2878 }
 0xe6c   :  { %9118 = vrcp.f32 %v2879_v4 }
 0xe71   :  { %v9113_v5 = vpop.eup %9112 }
 0xe72   :  { %v9115_v6 = vpop.eup %9114  ;;  %v2888_v8 = vmul.f32 %v9113_v5, %v9105_v57  ;;  %v8801_v57 = vpack.c.bf16 %v3240_v56, %v3239_v55  ;;  %v8809_v55 = vpack.c.bf16 %v3381_v54, %v3380_v53  ;;  %v3382_v56 = vld [vmem:[%s10516_s5 + $0x20] sm:$0xff]  ;;  %v3388_v54 = vsub.s32 2, %v9733_v17 }
 0xe73   :  { %v2887_v7 = vmul.f32 %v9115_v6, %v9107_v58 }
 0xe74   :  { %8802 = vmatprep.subr.bf16.mxu1 %v8801_v57 }
 0xe75   :  { %v9117_v9 = vpop.eup %9116  ;;  %8219 = vmatprep.mubr.msk.f32.mxu0 %vm512_vm3, %v2887_v7  ;;  %8804 = vmatpush3.bf16.msra.mxu1 %v8801_v57  ;;  %v3383_v57 = vld [vmem:[%s10516_s5 + $0x28] sm:$0xff] }
 0xe76   :  { %v9119_v11 = vpop.eup %9118  ;;  %8220 = vmatmul.mubr.msk.f32.vlgmr.msra.gmra.mrb[34].mxu0 %vm512_vm3, %v2888_v8  ;;  %v2890_v18 = vmul.f32 %v9117_v9, %v9109_v61 }
 0xe77   :  { %8796 = vmatpush3.bf16.msra.mxu0 %v8793_v35  ;;  %v2889_v12 = vmul.f32 %v9119_v11, %v9111_v62 }
 0xe78   :  { %8229 = vmatprep.subr.mxu0 %v7303_v10 }
 0xe79   :  { %8226 = vmatprep.mubr.msk.f32.mxu0 %vm512_vm3, %v2889_v12 }
 0xe7a   :  { %8227 = vmatmul.mubr.msk.f32.vlgmr.msra.gmra.mrb[36].mxu0 %vm512_vm3, %v2890_v18 }
 0xe7b   :  { %8230 = vmatpush3.msra.mxu0 %v7303_v10 }
 0xf49   :  { %v8221_v19 = vpop.f32.mrb[34].mxu0 }
 0xf4a   :  { %v2963_v13 = vpop.f32.mrb[35].mxu0 }
 0xf4b   :  { %8231 = vmatprep.mubr.msk.f32.mxu0 %vm337_vm1, %v2963_v13 }
 0xf4c   :  { %8232 = vmatmul.mubr.msk.f32.vlgmr.msra.gmra.mrb[6].mxu0 %vm337_vm1, %v8221_v19 }
 0xf4d   :  { %v8228_v14 = vpop.f32.mrb[36].mxu0 }
 0xf4e   :  { %v3044_v15 = vpop.f32.mrb[37].mxu0 }
 0xf4f   :  { %8234 = vmatprep.mubr.msk.f32.mxu0 %vm337_vm1, %v3044_v15 }
 0xf50   :  { %8235 = vmatmul.mubr.msk.f32.gmra.mrb[8].mxu0 %vm337_vm1, %v8228_v14 }
0x101f   :  { %v8233_v23 = vpop.f32.mrb[6].mxu0 }
0x1020   :  { %v9021_v24 = vadd.f32 %v8233_v23, %v820_v21  ;;  %v3133_v25 = vpop.f32.mrb[7].mxu0  ;;  %v3223_v23 = vsub.s32 3, %v9733_v17 }
0x1021   :  { %v9022_v26 = vadd.f32 %v3133_v25, %v820_v21 }
0x1022   :  { %v9747_v28 = vadd.f32 %v9232_v27, %v9021_v24 }
0x1023   :  { %v9752_v30 = vadd.f32 %v9233_v29, %v9022_v26  ;;  %v8236_v31 = vpop.f32.mrb[8].mxu0  ;;  %v3231_v26 = vsub.s32 4, %v9733_v17  ;;  %v3224_v29 = vrot.slane %v9739_v22, %v3223_v23 }
0x1024   :  { %v9023_v32 = vadd.f32 %v8236_v31, %v820_v21  ;;  %v3143_v33 = vpop.f32.mrb[9].mxu0  ;;  %v3163_v34 = vsel %vm43_vm0, %v9747_v28, 0.0  ;;  %v3178_v35 = vmul.f32 %v9747_v28, %v9747_v28 }
0x1025   :  { %v9024_v36 = vadd.f32 %v3143_v33, %v820_v21  ;;  %3164 = vadd.xlane.f32.xlu1 %v3163_v34  ;;  %v3160_v37 = vsel %vm43_vm0, %v9752_v30, 0.0  ;;  %v3177_v38 = vmul.f32 %v9752_v30, %v9752_v30 }
0x1026   :  { %3161 = vadd.xlane.f32.xlu0 %v3160_v37  ;;  %v9765_v40 = vadd.f32 %v9234_v39, %v9023_v32  ;;  %v3184_v42 = vsel %vm43_vm0, %v3178_v35, 0.0 }
0x1027   :  { %v9771_v44 = vadd.f32 %v9235_v43, %v9024_v36  ;;  %v3181_v45 = vsel %vm43_vm0, %v3177_v38, 0.0  ;;  %v3232_v36 = vrot.slane %v9739_v22, %v3231_v26 }
0x1028   :  { %v3169_v46 = vsel %vm43_vm0, %v9765_v40, 0.0  ;;  %v3180_v47 = vmul.f32 %v9765_v40, %v9765_v40 }
0x1029   :  { %3185 = vadd.xlane.f32.xlu1 %v3184_v42  ;;  %v3166_v48 = vsel %vm43_vm0, %v9771_v44, 0.0  ;;  %v3179_v49 = vmul.f32 %v9771_v44, %v9771_v44 }
0x102a   :  { %3182 = vadd.xlane.f32.xlu0 %v3181_v45  ;;  %v3190_v50 = vsel %vm43_vm0, %v3180_v47, 0.0 }
0x102b   :  { %v3187_v51 = vsel %vm43_vm0, %v3179_v49, 0.0 }
0x102d   :  { %3170 = vadd.xlane.f32.xlu1 %v3169_v46 }
0x102e   :  { %3167 = vadd.xlane.f32.xlu0 %v3166_v48 }
0x1031   :  { %3191 = vadd.xlane.f32.xlu1 %v3190_v50 }
0x1032   :  { %3188 = vadd.xlane.f32.xlu0 %v3187_v51 }
0x10b2   :  { %v3165_v58 = vpop.xlane.xlu1 %3164 }
0x10b3   :  { %v3174_v59 = vmul.f32 0.03125, %v3165_v58  ;;  %v3162_v60 = vpop.xlane.xlu0 %3161  ;;  %v8813_v58 = vpack.c.bf16 %v3383_v57, %v3382_v56 }
0x10b4   :  { %v3173_v61 = vmul.f32 0.03125, %v3162_v60  ;;  %v3385_v60 = vld [vmem:[%s10516_s5 + $0x38] sm:$0xff] }
0x10b5   :  { %v3198_v63 = vmul.f32 %v3174_v59, %v3174_v59  ;;  %v3206_v27 = vsub.f32 %v9747_v28, %v3174_v59  ;;  %v3384_v59 = vld [vmem:[%s10516_s5 + $0x30] sm:$0xff] }
0x10b6   :  { %v3186_v62 = vpop.xlane.xlu1 %3185  ;;  %v3197_v2 = vmul.f32 %v3173_v61, %v3173_v61  ;;  %v3205_v32 = vsub.f32 %v9752_v30, %v3173_v61  ;;  %v8817_v61 = vpack.c.bf16 %v3385_v60, %v3384_v59 }
0x10b7   :  { %v3194_v0 = vmul.f32 0.03125, %v3186_v62  ;;  %v3183_v1 = vpop.xlane.xlu0 %3182  ;;  %v3243_v62 = vsub.s32 1, %v9733_v17 }
0x10b8   :  { %v3193_v3 = vmul.f32 0.03125, %v3183_v1 }
0x10b9   :  { %v3202_v4 = vsub.f32 %v3194_v0, %v3198_v63  ;;  %v3244_v63 = vrot.slane %v9739_v22, %v3243_v62 }
0x10ba   :  { %v3201_v5 = vsub.f32 %v3193_v3, %v3197_v2  ;;  %v3171_v6 = vpop.xlane.xlu1 %3170 }
0x10bb   :  { %v3210_v7 = vadd.f32 1e-12, %v3202_v4  ;;  %v3176_v8 = vmul.f32 0.03125, %v3171_v6  ;;  %v3168_v9 = vpop.xlane.xlu0 %3167 }
0x10bc   :  { %v3209_v10 = vadd.f32 1e-12, %v3201_v5  ;;  %v3175_v11 = vmul.f32 0.03125, %v3168_v9 }
0x10bd   :  { %9120 = vrsqrt.f32 %v3210_v7  ;;  %v3200_v18 = vmul.f32 %v3176_v8, %v3176_v8  ;;  %v3208_v28 = vsub.f32 %v9765_v40, %v3176_v8  ;;  %v3378_v40 = vld [vmem:[%s10516_s5] sm:$0xff] }
0x10be   :  { %9122 = vrsqrt.f32 %v3209_v10  ;;  %v3192_v12 = vpop.xlane.xlu1 %3191  ;;  %v3199_v14 = vmul.f32 %v3175_v11, %v3175_v11  ;;  %v3207_v45 = vsub.f32 %v9771_v44, %v3175_v11  ;;  %v3379_v44 = vld [vmem:[%s10516_s5 + $0x8] sm:$0xff] }
0x10bf   :  { %v3196_v19 = vmul.f32 0.03125, %v3192_v12  ;;  %v3189_v13 = vpop.xlane.xlu0 %3188  ;;  %v8805_v52 = vpack.c.bf16 %v3379_v44, %v3378_v40 }
0x10c0   :  { %v3195_v15 = vmul.f32 0.03125, %v3189_v13 }
0x10c1   :  { %v3204_v16 = vsub.f32 %v3196_v19, %v3200_v18  ;;  %8806 = vmatprep.subr.bf16.mxu0 %v8805_v52 }
0x10c2   :  { %v3203_v21 = vsub.f32 %v3195_v15, %v3199_v14  ;;  %8808 = vmatpush3.bf16.msra.mxu0 %v8805_v52 }
0x10c3   :  { %v3212_v24 = vadd.f32 1e-12, %v3204_v16  ;;  %8810 = vmatprep.subr.bf16.mxu0 %v8809_v55 }
0x10c4   :  { %v3211_v25 = vadd.f32 1e-12, %v3203_v21 }
0x10c5   :  { %9124 = vrsqrt.f32 %v3212_v24 }
0x10c6   :  { %9126 = vrsqrt.f32 %v3211_v25  ;;  %8812 = vmatpush3.bf16.msra.mxu0 %v8809_v55  ;;  %v3389_v55 = vrot.slane %v9739_v22, %v3388_v54 }
0x10c7   :  { %v9121_v31 = vpop.eup %9120  ;;  %8814 = vmatprep.subr.bf16.mxu0 %v8813_v58 }
0x10c8   :  { %v9123_v33 = vpop.eup %9122  ;;  %v3218_v34 = vmul.f32 %v9121_v31, %v3206_v27 }
0x10c9   :  { %v3217_v35 = vmul.f32 %v9123_v33, %v3205_v32 }
0x10ca   :  { %v3226_v37 = vmul.f32 %v3224_v29, %v3218_v34  ;;  %8816 = vmatpush3.bf16.msra.mxu0 %v8813_v58 }
0x10cb   :  { %v3225_v38 = vmul.f32 %v3224_v29, %v3217_v35  ;;  %8818 = vmatprep.subr.bf16.mxu0 %v8817_v61 }
0x10cc   :  { %v9809_v42 = vadd.f32 %v3232_v36, %v3226_v37 }
0x10cd   :  { %v9806_v39 = vadd.f32 %v3232_v36, %v3225_v38 }
0x10ce   :  { %8820 = vmatpush3.bf16.msra.mxu0 %v8817_v61 }
0x10cf   :  { %v9125_v43 = vpop.eup %9124  ;;  %8245 = vmatprep.mubr.msk.f32.mxu1 %vm43_vm0, %v9806_v39 }
0x10d0   :  { %v9127_v30 = vpop.eup %9126  ;;  %8246 = vmatmul.mubr.msk.f32.vlgmr.msra.gmra.mrb[46].mxu1 %vm43_vm0, %v9809_v42  ;;  %v3220_v46 = vmul.f32 %v9125_v43, %v3208_v28 }
0x10d1   :  { %v3219_v47 = vmul.f32 %v9127_v30, %v3207_v45 }
0x10d2   :  { %v3228_v48 = vmul.f32 %v3224_v29, %v3220_v46 }
0x10d3   :  { %v3227_v49 = vmul.f32 %v3224_v29, %v3219_v47 }
0x10d4   :  { %v9818_v51 = vadd.f32 %v3232_v36, %v3228_v48 }
0x10d5   :  { %v9816_v50 = vadd.f32 %v3232_v36, %v3227_v49 }
0x10d7   :  { %8248 = vmatprep.mubr.msk.f32.mxu1 %vm43_vm0, %v9816_v50 }
0x10d8   :  { %8249 = vmatmul.mubr.msk.f32.gmra.mrb[48].mxu1 %vm43_vm0, %v9818_v51 }
0x11a3   :  { %v8247_v0 = vpop.f32.mrb[46].mxu1 }
0x11a4   :  { %v3329_v1 = vadd.f32 %v8247_v0, %v3244_v63  ;;  %v3323_v2 = vpop.f32.mrb[47].mxu1 }
0x11a5   :  { %v3324_v3 = vadd.f32 %v3323_v2, %v3244_v63 }
0x11a6   :  { %v3343_v4 = vmul.f32 %v3329_v1, %v3329_v1 }
0x11a7   :  { %v3342_v5 = vmul.f32 %v3324_v3, %v3324_v3 }
0x11a8   :  { %v3347_v6 = vmul.f32 %v3343_v4, %v3329_v1 }
0x11a9   :  { %v3346_v7 = vmul.f32 %v3342_v5, %v3324_v3 }
0x11aa   :  { %v3351_v8 = vmul.f32 0.044715, %v3347_v6 }
0x11ab   :  { %v3350_v9 = vmul.f32 0.044715, %v3346_v7  ;;  %v8250_v10 = vpop.f32.mrb[48].mxu1 }
0x11ac   :  { %v3355_v11 = vadd.f32 %v3351_v8, %v3329_v1  ;;  %v3339_v12 = vadd.f32 %v8250_v10, %v3244_v63  ;;  %v3333_v18 = vpop.f32.mrb[49].mxu1 }
0x11ad   :  { %v3354_v19 = vadd.f32 %v3350_v9, %v3324_v3  ;;  %v3334_v13 = vadd.f32 %v3333_v18, %v3244_v63  ;;  %v7317_v18 = vld [vmem:[%s10512_s1 + $0x180] sm:$0xff] }
0x11ae   :  { %v3359_v14 = vmul.f32 0.7978846, %v3355_v11  ;;  %v3345_v15 = vmul.f32 %v3339_v12, %v3339_v12 }
0x11af   :  { %v3358_v16 = vmul.f32 0.7978846, %v3354_v19  ;;  %v3344_v21 = vmul.f32 %v3334_v13, %v3334_v13  ;;  %v7318_v19 = vld [vmem:[%s10512_s1 + $0x188] sm:$0xff] }
0x11b0   :  { %9128 = vtanh.f32 %v3359_v14  ;;  %v3349_v24 = vmul.f32 %v3345_v15, %v3339_v12  ;;  %v8821_v14 = vpack.c.bf16 %v7318_v19, %v7317_v18  ;;  %v7338_v15 = vld [vmem:[%s10512_s1 + $0x288] sm:$0xff] }
0x11b1   :  { %9130 = vtanh.f32 %v3358_v16  ;;  %v3348_v25 = vmul.f32 %v3344_v21, %v3334_v13  ;;  %v7319_v21 = vld [vmem:[%s10512_s1 + $0x190] sm:$0xff] }
0x11b2   :  { %v3353_v27 = vmul.f32 0.044715, %v3349_v24  ;;  %8822 = vmatprep.subr.bf16.mxu1 %v8821_v14  ;;  %v7320_v24 = vld [vmem:[%s10512_s1 + $0x198] sm:$0xff] }
0x11b3   :  { %v3352_v29 = vmul.f32 0.044715, %v3348_v25  ;;  %8824 = vmatpush3.bf16.msra.mxu1 %v8821_v14  ;;  %v7339_v25 = vld [vmem:[%s10512_s1 + $0x290] sm:$0xff]  ;;  %v7330_v14 = vld [vmem:[%s10512_s1 + $0x218] sm:$0xff] }
0x11b4   :  { %v3357_v31 = vadd.f32 %v3353_v27, %v3339_v12  ;;  %v8825_v27 = vpack.c.bf16 %v7320_v24, %v7319_v21 }
0x11b5   :  { %v3356_v32 = vadd.f32 %v3352_v29, %v3334_v13  ;;  %v7340_v29 = vld [vmem:[%s10512_s1 + $0x298] sm:$0xff] }
0x11b6   :  { %v3361_v33 = vmul.f32 0.7978846, %v3357_v31  ;;  %v8841_v31 = vpack.c.bf16 %v7340_v29, %v7339_v25  ;;  %8826 = vmatprep.subr.bf16.mxu1 %v8825_v27 }
0x11b7   :  { %v3360_v34 = vmul.f32 0.7978846, %v3356_v32  ;;  %8828 = vmatpush3.bf16.msra.mxu1 %v8825_v27  ;;  %v7327_v32 = vld [vmem:[%s10512_s1 + $0x200] sm:$0xff] }
0x11b8   :  { %9132 = vtanh.f32 %v3361_v33  ;;  %v7328_v33 = vld [vmem:[%s10512_s1 + $0x208] sm:$0xff] }
0x11b9   :  { %9134 = vtanh.f32 %v3360_v34  ;;  %v8829_v34 = vpack.c.bf16 %v7328_v33, %v7327_v32  ;;  %v7342_v33 = vld [vmem:[%s10513_s2 + $0x14] ss:$0 sm:$0xff] }
0x11ba   :  { %v9129_v35 = vpop.eup %9128 }
0x11bb   :  { %v9131_v36 = vpop.eup %9130  ;;  %v3367_v37 = vadd.f32 1.0, %v9129_v35  ;;  %8830 = vmatprep.subr.bf16.mxu1 %v8829_v34 }
0x11bc   :  { %v3366_v38 = vadd.f32 1.0, %v9131_v36 }
0x11bd   :  { %v3371_v28 = vmul.f32 0.5, %v3367_v37 }
0x11be   :  { %v3370_v43 = vmul.f32 0.5, %v3366_v38 }
0x11bf   :  { %v3375_v30 = vmul.f32 %v3371_v28, %v3329_v1 }
0x11c0   :  { %v3374_v45 = vmul.f32 %v3370_v43, %v3324_v3 }
0x11c2   :  { %v9133_v46 = vpop.eup %9132  ;;  %8267 = vmatprep.mubr.msk.f32.mxu0 %vm3390_vm4, %v3374_v45 }
0x11c3   :  { %v9135_v47 = vpop.eup %9134  ;;  %8268 = vmatmul.mubr.msk.f32.vlgmr.msra.gmra.mrb[38].mxu0 %vm3390_vm4, %v3375_v30  ;;  %v3369_v48 = vadd.f32 1.0, %v9133_v46 }
0x11c4   :  { %v3368_v49 = vadd.f32 1.0, %v9135_v47 }
0x11c5   :  { %v3373_v40 = vmul.f32 0.5, %v3369_v48 }
0x11c6   :  { %v3372_v44 = vmul.f32 0.5, %v3368_v49 }
0x11c7   :  { %v3377_v53 = vmul.f32 %v3373_v40, %v3339_v12 }
0x11c8   :  { %v3376_v52 = vmul.f32 %v3372_v44, %v3334_v13  ;;  %v7337_v13 = vld [vmem:[%s10512_s1 + $0x280] sm:$0xff] }
0x11c9   :  { %v8837_v16 = vpack.c.bf16 %v7338_v15, %v7337_v13 }
0x11ca   :  { %8270 = vmatprep.mubr.msk.f32.mxu0 %vm3390_vm4, %v3376_v52 }
0x11cb   :  { %8271 = vmatmul.mubr.msk.f32.gmra.mrb[40].mxu0 %vm3390_vm4, %v3377_v53  ;;  %8838 = vmatprep.subr.bf16.mxu0 %v8837_v16 }
0x11cc   :  { %8840 = vmatpush3.bf16.msra.mxu0 %v8837_v16 }
0x11cd   :  { %8842 = vmatprep.subr.bf16.mxu0 %v8841_v31 }
0x11d0   :  { %8844 = vmatpush3.bf16.msra.mxu0 %v8841_v31 }
0x1296   :  { %v8269_v56 = vpop.f32.mrb[38].mxu0 }
0x1297   :  { %v3475_v57 = vadd.f32 %v8269_v56, %v3389_v55  ;;  %v3469_v58 = vpop.f32.mrb[39].mxu0 }
0x1298   :  { %v3470_v59 = vadd.f32 %v3469_v58, %v3389_v55 }
0x1299   :  { %v9861_v60 = vadd.f32 %v3475_v57, %v9809_v42 }
0x129a   :  { %v9864_v61 = vadd.f32 %v3470_v59, %v9806_v39 }
0x129b   :  { %v3495_v63 = vsel %vm43_vm0, %v9861_v60, 0.0  ;;  %v3509_v0 = vmul.f32 %v9861_v60, %v9861_v60 }
0x129c   :  { %3496 = vadd.xlane.f32.xlu1 %v3495_v63  ;;  %v3492_v1 = vsel %vm43_vm0, %v9864_v61, 0.0  ;;  %v3508_v2 = vmul.f32 %v9864_v61, %v9864_v61 }
0x129d   :  { %3493 = vadd.xlane.f32.xlu0 %v3492_v1  ;;  %v3515_v39 = vsel %vm43_vm0, %v3509_v0, 0.0 }
0x129e   :  { %v8272_v3 = vpop.f32.mrb[40].mxu0  ;;  %v3512_v6 = vsel %vm43_vm0, %v3508_v2, 0.0 }
0x129f   :  { %v3485_v42 = vadd.f32 %v8272_v3, %v3389_v55  ;;  %v3479_v4 = vpop.f32.mrb[41].mxu0  ;;  %v3554_v3 = vsub.s32 5, %v9733_v17 }
0x12a0   :  { %v3480_v5 = vadd.f32 %v3479_v4, %v3389_v55  ;;  %3516 = vadd.xlane.f32.xlu1 %v3515_v39 }
0x12a1   :  { %v9877_v7 = vadd.f32 %v3485_v42, %v9818_v51  ;;  %3513 = vadd.xlane.f32.xlu0 %v3512_v6 }
0x12a2   :  { %v9880_v8 = vadd.f32 %v3480_v5, %v9816_v50  ;;  %v3562_v5 = vsub.s32 6, %v9733_v17 }
0x12a3   :  { %v3501_v9 = vsel %vm43_vm0, %v9877_v7, 0.0  ;;  %v3511_v10 = vmul.f32 %v9877_v7, %v9877_v7 }
0x12a4   :  { %3502 = vadd.xlane.f32.xlu1 %v3501_v9  ;;  %v3498_v11 = vsel %vm43_vm0, %v9880_v8, 0.0  ;;  %v3510_v12 = vmul.f32 %v9880_v8, %v9880_v8  ;;  %v3555_v9 = vrot.slane %v9739_v22, %v3554_v3 }
0x12a5   :  { %3499 = vadd.xlane.f32.xlu0 %v3498_v11  ;;  %v3521_v51 = vsel %vm43_vm0, %v3511_v10, 0.0 }
0x12a6   :  { %v3518_v50 = vsel %vm43_vm0, %v3510_v12, 0.0 }
0x12a8   :  { %3522 = vadd.xlane.f32.xlu1 %v3521_v51 }
0x12a9   :  { %3519 = vadd.xlane.f32.xlu0 %v3518_v50  ;;  %v3563_v50 = vrot.slane %v9739_v22, %v3562_v5 }
0x1329   :  { %v3497_v35 = vpop.xlane.xlu1 %3496 }
0x132a   :  { %v3505_v36 = vmul.f32 0.03125, %v3497_v35  ;;  %v3494_v37 = vpop.xlane.xlu0 %3493 }
0x132b   :  { %v3504_v38 = vmul.f32 0.03125, %v3494_v37 }
0x132c   :  { %v3529_v43 = vmul.f32 %v3505_v36, %v3505_v36  ;;  %v3537_v6 = vsub.f32 %v9861_v60, %v3505_v36  ;;  %v7329_v60 = vld [vmem:[%s10512_s1 + $0x210] sm:$0xff] }
0x132d   :  { %v3517_v28 = vpop.xlane.xlu1 %3516  ;;  %v3528_v46 = vmul.f32 %v3504_v38, %v3504_v38  ;;  %v3536_v11 = vsub.f32 %v9864_v61, %v3504_v38  ;;  %v8833_v21 = vpack.c.bf16 %v7330_v14, %v7329_v60 }
0x132e   :  { %v3525_v45 = vmul.f32 0.03125, %v3517_v28  ;;  %v3514_v30 = vpop.xlane.xlu0 %3513 }
0x132f   :  { %v3524_v47 = vmul.f32 0.03125, %v3514_v30 }
0x1330   :  { %v3533_v48 = vsub.f32 %v3525_v45, %v3529_v43 }
0x1331   :  { %v3532_v49 = vsub.f32 %v3524_v47, %v3528_v46  ;;  %v3503_v40 = vpop.xlane.xlu1 %3502 }
0x1332   :  { %v3541_v44 = vadd.f32 1e-12, %v3533_v48  ;;  %v3507_v52 = vmul.f32 0.03125, %v3503_v40  ;;  %v3500_v53 = vpop.xlane.xlu0 %3499 }
0x1333   :  { %v3540_v55 = vadd.f32 1e-12, %v3532_v49  ;;  %v3506_v56 = vmul.f32 0.03125, %v3500_v53  ;;  %v7332_v53 = vld [vmem:[%s10513_s2 + $0x10] ss:$0 sm:$0xff] }
0x1334   :  { %9136 = vrsqrt.f32 %v3541_v44  ;;  %v3531_v58 = vmul.f32 %v3507_v52, %v3507_v52  ;;  %v3539_v16 = vsub.f32 %v9877_v7, %v3507_v52 }
0x1335   :  { %9138 = vrsqrt.f32 %v3540_v55  ;;  %v3523_v57 = vpop.xlane.xlu1 %3522  ;;  %v3530_v0 = vmul.f32 %v3506_v56, %v3506_v56  ;;  %v3538_v22 = vsub.f32 %v9880_v8, %v3506_v56 }
0x1336   :  { %v3527_v59 = vmul.f32 0.03125, %v3523_v57  ;;  %v3520_v63 = vpop.xlane.xlu0 %3519 }
0x1337   :  { %v3526_v1 = vmul.f32 0.03125, %v3520_v63 }
0x1338   :  { %v3535_v2 = vsub.f32 %v3527_v59, %v3531_v58 }
0x1339   :  { %v3534_v42 = vsub.f32 %v3526_v1, %v3530_v0 }
0x133a   :  { %v3543_v4 = vadd.f32 1e-12, %v3535_v2 }
0x133b   :  { %v3542_v39 = vadd.f32 1e-12, %v3534_v42 }
0x133c   :  { %9140 = vrsqrt.f32 %v3543_v4 }
0x133d   :  { %9142 = vrsqrt.f32 %v3542_v39 }
0x133e   :  { %v9137_v10 = vpop.eup %9136 }
0x133f   :  { %v9139_v12 = vpop.eup %9138  ;;  %v3549_v51 = vmul.f32 %v9137_v10, %v3537_v6 }
0x1340   :  { %v3548_v18 = vmul.f32 %v9139_v12, %v3536_v11 }
0x1341   :  { %v3557_v19 = vmul.f32 %v3555_v9, %v3549_v51 }
0x1342   :  { %v3556_v13 = vmul.f32 %v3555_v9, %v3548_v18 }
0x1343   :  { %v9940_v61 = vadd.f32 %v3563_v50, %v3557_v19 }
0x1344   :  { %v9938_v15 = vadd.f32 %v3563_v50, %v3556_v13 }
0x1346   :  { %v9141_v24 = vpop.eup %9140  ;;  %8281 = vmatprep.mubr.msk.f32.mxu1 %vm43_vm0, %v9938_v15  ;;  %8309 = vmatprep.mubr.msk.f32.mxu0 %vm43_vm0, %v9938_v15 }
0x1347   :  { %v9143_v25 = vpop.eup %9142  ;;  %v3551_v27 = vmul.f32 %v9141_v24, %v3539_v16  ;;  %8282 = vmatmul.mubr.msk.f32.vlgmr.msra.gmra.mrb[50].mxu1 %vm43_vm0, %v9940_v61  ;;  %8310 = vmatmul.mubr.msk.f32.vlgmr.msra.gmra.mrb[42].mxu0 %vm43_vm0, %v9940_v61 }
0x1348   :  { %v3550_v29 = vmul.f32 %v9143_v25, %v3538_v22  ;;  %8832 = vmatpush3.bf16.msra.mxu1 %v8829_v34  ;;  %v7322_v34 = vld [vmem:[%s10513_s2 + $0xc] ss:$0 sm:$0xff] }
0x1349   :  { %v3559_v7 = vmul.f32 %v3555_v9, %v3551_v27  ;;  %8834 = vmatprep.subr.bf16.mxu1 %v8833_v21 }
0x134a   :  { %v3558_v31 = vmul.f32 %v3555_v9, %v3550_v29 }
0x134b   :  { %v9954_v32 = vadd.f32 %v3563_v50, %v3559_v7 }
0x134c   :  { %v9952_v8 = vadd.f32 %v3563_v50, %v3558_v31  ;;  %8836 = vmatpush3.bf16.msra.mxu1 %v8833_v21 }
0x134e   :  { %8284 = vmatprep.mubr.msk.f32.mxu1 %vm43_vm0, %v9952_v8  ;;  %8312 = vmatprep.mubr.msk.f32.mxu0 %vm43_vm0, %v9952_v8 }
0x134f   :  { %8285 = vmatmul.mubr.msk.f32.gmra.mrb[52].mxu1 %vm43_vm0, %v9954_v32  ;;  %8313 = vmatmul.mubr.msk.f32.gmra.mrb[44].mxu0 %vm43_vm0, %v9954_v32 }
0x1350   :  { %8295 = vmatprep.mubr.msk.f32.mxu1 %vm43_vm0, %v9938_v15 }
0x1353   :  { %8296 = vmatmul.mubr.msk.f32.vlgmr.msra.gmra.mrb[54].mxu1 %vm43_vm0, %v9940_v61 }
0x1354   :  { %8298 = vmatprep.mubr.msk.f32.mxu1 %vm43_vm0, %v9952_v8 }
0x1357   :  { %8299 = vmatmul.mubr.msk.f32.gmra.mrb[56].mxu1 %vm43_vm0, %v9954_v32 }
0x141a   :  { %v8283_v35 = vpop.f32.mrb[50].mxu1  ;;  %v8311_v36 = vpop.f32.mrb[42].mxu0 }
0x141b   :  { %v3863_v37 = vadd.f32 %v8311_v36, %v7342_v33  ;;  %v3661_v38 = vpop.f32.mrb[51].mxu1  ;;  %v3857_v28 = vpop.f32.mrb[43].mxu0  ;;  %v3667_v39 = vadd.f32 %v8283_v35, %v7322_v34 }
0x141c   :  { %v3662_v43 = vadd.f32 %v7322_v34, %v3661_v38  ;;  %v3858_v45 = vadd.f32 %v7342_v33, %v3857_v28 }
0x141e   :  { %v8857_v30 = vpack.c.bf16 %v3863_v37, %v3858_v45  ;;  %8319 = vmatprep.mubr.msk.f32.mxu1 %vm337_vm1, %v3662_v43  ;;  %v7359_v45 = vld [vmem:[%s10514_s3 + $0x20] sm:$0xff] }
0x1422   :  { %v8286_v46 = vpop.f32.mrb[52].mxu1  ;;  %v8314_v47 = vpop.f32.mrb[44].mxu0 }
0x1423   :  { %v3873_v48 = vadd.f32 %v8314_v47, %v7342_v33  ;;  %v3671_v49 = vpop.f32.mrb[53].mxu1  ;;  %v3867_v40 = vpop.f32.mrb[45].mxu0  ;;  %v3677_v6 = vadd.f32 %v8286_v46, %v7322_v34 }
0x1424   :  { %v3672_v44 = vadd.f32 %v7322_v34, %v3671_v49  ;;  %v3868_v52 = vadd.f32 %v7342_v33, %v3867_v40  ;;  %v7364_v40 = vld [vmem:[%s10512_s1 + $0x1a0] sm:$0xff] }
0x1426   :  { %v9982_v55 = vpack.c.bf16 %v3873_v48, %v3868_v52  ;;  %v8297_v56 = vpop.f32.mrb[54].mxu1  ;;  %8326 = vmatprep.mubr.msk.f32.mxu0 %vm337_vm1, %v3672_v44  ;;  %v7365_v44 = vld [vmem:[%s10512_s1 + $0x1a8] sm:$0xff] }
0x1427   :  { %v3765_v57 = vadd.f32 %v8297_v56, %v7332_v53  ;;  %v3759_v58 = vpop.f32.mrb[55].mxu1 }
0x1428   :  { %v3760_v59 = vadd.f32 %v7332_v53, %v3759_v58 }
0x142a   :  { %v8845_v63 = vpack.c.bf16 %v3765_v57, %v3760_v59  ;;  %v8300_v0 = vpop.f32.mrb[56].mxu1  ;;  %v8865_v57 = vpack.c.bf16 %v7365_v44, %v7364_v40  ;;  %v7366_v59 = vld [vmem:[%s10512_s1 + $0x1b0] sm:$0xff] }
0x142b   :  { %v3775_v1 = vadd.f32 %v8300_v0, %v7332_v53  ;;  %v3769_v2 = vpop.f32.mrb[57].mxu1 }
0x142c   :  { %v3770_v42 = vadd.f32 %v7332_v53, %v3769_v2  ;;  %8847 = vmatprep.subr.msk.bf16.mxu1 %vm9396_vm2, %v8845_v63 }
0x142d   :  { %8850 = vmatpush3.bf16.xpose.msk.msra.mxu1 %vm9396_vm2, %v8845_v63  ;;  %v7367_v63 = vld [vmem:[%s10512_s1 + $0x1b8] sm:$0xff] }
0x142e   :  { %v8851_v4 = vpack.c.bf16 %v3775_v1, %v3770_v42  ;;  %8858 = vmatprep.subr.bf16.mxu1 %v8857_v30  ;;  %v8869_v42 = vpack.c.bf16 %v7367_v63, %v7366_v59  ;;  %v7411_v59 = vld [vmem:[%s10512_s1 + $0x1c0] sm:$0xff]  ;;  %v7412_v63 = vld [vmem:[%s10512_s1 + $0x1c8] sm:$0xff] }
0x1430   :  { %8853 = vmatprep.subr.msk.bf16.mxu0 %vm9396_vm2, %v8851_v4 }
0x1431   :  { %8856 = vmatpush3.bf16.xpose.msk.msra.mxu0 %vm9396_vm2, %v8851_v4  ;;  %v7384_v4 = vld [vmem:[%s10512_s1 + $0x2a0] sm:$0xff] }
0x1432   :  { %8343 = vmatprep.subr.mxu0 %v7359_v45 }
0x1434   :  { %8320 = vmatmul.mubr.msk.f32.vlgmr.msra.gmra.mrb[58].mxu1 %vm337_vm1, %v3667_v39  ;;  %v7385_v39 = vld [vmem:[%s10512_s1 + $0x2a8] sm:$0xff] }
0x1435   :  { %8860 = vmatpush3.bf16.msra.mxu1 %v8857_v30 }
0x1436   :  { %8862 = vmatprep.subr.bf16.mxu1 %v9982_v55 }
0x1438   :  { %8327 = vmatmul.mubr.msk.f32.vlgmr.msra.gmra.mrb[46].mxu0 %vm337_vm1, %v3677_v6  ;;  %v7386_v6 = vld [vmem:[%s10512_s1 + $0x2b0] sm:$0xff] }
0x1439   :  { %8344 = vmatpush3.msra.mxu0 %v7359_v45 }
0x1507   :  { %v8321_v9 = vpop.f32.mrb[58].mxu1 }
0x1508   :  { %v3954_v10 = vpop.f32.mrb[59].mxu1  ;;  %v4053_v11 = vsel %vm512_vm3, %v8321_v9, -inf }
0x1509   :  { %4054 = vmax.xlane.f32.xlu1 %v4053_v11  ;;  %v4050_v12 = vsel %vm512_vm3, %v3954_v10, -inf  ;;  %v7374_v11 = vld [vmem:[%s10512_s1 + $0x220] sm:$0xff] }
0x150a   :  { %4051 = vmax.xlane.f32.xlu0 %v4050_v12  ;;  %v7375_v12 = vld [vmem:[%s10512_s1 + $0x228] sm:$0xff] }
0x150b   :  { %v8328_v51 = vpop.f32.mrb[46].mxu0 }
0x150c   :  { %v4041_v50 = vpop.f32.mrb[47].mxu0  ;;  %v4059_v18 = vsel %vm512_vm3, %v8328_v51, -inf }
0x150d   :  { %4060 = vmax.xlane.f32.xlu1 %v4059_v18  ;;  %v4056_v19 = vsel %vm512_vm3, %v4041_v50, -inf  ;;  %v7377_v18 = vld [vmem:[%s10512_s1 + $0x238] sm:$0xff] }
0x150e   :  { %4057 = vmax.xlane.f32.xlu0 %v4056_v19 }
0x1596   :  { %v4055_v13 = vpop.xlane.xlu1 %4054 }
0x1597   :  { %v4063_v60 = vsub.f32 %v8321_v9, %v4055_v13  ;;  %v4052_v14 = vpop.xlane.xlu0 %4051  ;;  %v7387_v9 = vld [vmem:[%s10512_s1 + $0x2b8] sm:$0xff] }
0x1598   :  { %v4062_v16 = vsub.f32 %v3954_v10, %v4052_v14  ;;  %v8885_v10 = vpack.c.bf16 %v7387_v9, %v7386_v6  ;;  %v7432_v6 = vld [vmem:[%s10512_s1 + $0x2c8] sm:$0xff] }
0x1599   :  { %v4068_v21 = vmul.f32 1.442695, %v4063_v60 }
0x159a   :  { %v4066_v24 = vmul.f32 1.442695, %v4062_v16  ;;  %v4061_v22 = vpop.xlane.xlu1 %4060 }
0x159b   :  { %9144 = vpow2.f32 %v4068_v21  ;;  %v4065_v25 = vsub.f32 %v8328_v51, %v4061_v22  ;;  %v4058_v27 = vpop.xlane.xlu0 %4057  ;;  %v8873_v51 = vpack.c.bf16 %v7375_v12, %v7374_v11  ;;  %v7369_v21 = vld [vmem:[%s10513_s2 + $0xd] ss:$0 sm:$0xff]  ;;  %v7434_v11 = vld [vmem:[%s10512_s1 + $0x2d8] sm:$0xff] }
0x159c   :  { %9146 = vpow2.f32 %v4066_v24  ;;  %v4064_v29 = vsub.f32 %v4041_v50, %v4058_v27  ;;  %v7376_v50 = vld [vmem:[%s10512_s1 + $0x230] sm:$0xff] }
0x159d   :  { %v4072_v7 = vmul.f32 1.442695, %v4065_v25  ;;  %8874 = vmatprep.subr.bf16.mxu0 %v8873_v51  ;;  %v8877_v60 = vpack.c.bf16 %v7377_v18, %v7376_v50 }
0x159e   :  { %v4070_v31 = vmul.f32 1.442695, %v4064_v29 }
0x159f   :  { %9148 = vpow2.f32 %v4072_v7 }
0x15a0   :  { %9150 = vpow2.f32 %v4070_v31 }
0x15a5   :  { %v9145_v33 = vpop.eup %9144 }
0x15a6   :  { %v9147_v34 = vpop.eup %9146  ;;  %v4077_v35 = vsel %vm512_vm3, %v9145_v33, 0.0 }
0x15a7   :  { %4078 = vadd.xlane.f32.xlu1 %v4077_v35  ;;  %v4074_v36 = vsel %vm512_vm3, %v9147_v34, 0.0 }
0x15a8   :  { %4075 = vadd.xlane.f32.xlu0 %v4074_v36 }
0x15a9   :  { %v9149_v37 = vpop.eup %9148 }
0x15aa   :  { %v9151_v38 = vpop.eup %9150  ;;  %v4083_v28 = vsel %vm512_vm3, %v9149_v37, 0.0 }
0x15ab   :  { %4084 = vadd.xlane.f32.xlu1 %v4083_v28  ;;  %v4080_v43 = vsel %vm512_vm3, %v9151_v38, 0.0 }
0x15ac   :  { %4081 = vadd.xlane.f32.xlu0 %v4080_v43 }
0x1634   :  { %v4079_v30 = vpop.xlane.xlu1 %4078 }
0x1635   :  { %9152 = vrcp.f32 %v4079_v30  ;;  %v4076_v46 = vpop.xlane.xlu0 %4075 }
0x1636   :  { %9154 = vrcp.f32 %v4076_v46 }
0x1638   :  { %v4085_v47 = vpop.xlane.xlu1 %4084 }
0x1639   :  { %9156 = vrcp.f32 %v4085_v47  ;;  %v4082_v48 = vpop.xlane.xlu0 %4081 }
0x163a   :  { %9158 = vrcp.f32 %v4082_v48  ;;  %v7379_v48 = vld [vmem:[%s10513_s2 + $0x11] ss:$0 sm:$0xff] }
0x163f   :  { %v9153_v49 = vpop.eup %9152 }
0x1640   :  { %v9155_v52 = vpop.eup %9154  ;;  %v4091_v56 = vmul.f32 %v9153_v49, %v9145_v33 }
0x1641   :  { %v4090_v53 = vmul.f32 %v9155_v52, %v9147_v34  ;;  %v7389_v34 = vld [vmem:[%s10513_s2 + $0x15] ss:$0 sm:$0xff] }
0x1643   :  { %v9157_v58 = vpop.eup %9156  ;;  %8333 = vmatprep.mubr.msk.f32.mxu1 %vm512_vm3, %v4090_v53 }
0x1644   :  { %v9159_v0 = vpop.eup %9158  ;;  %8334 = vmatmul.mubr.msk.f32.vlgmr.msra.gmra.mrb[60].mxu1 %vm512_vm3, %v4091_v56  ;;  %v4093_v2 = vmul.f32 %v9157_v58, %v9149_v37 }
0x1645   :  { %8864 = vmatpush3.bf16.msra.mxu1 %v9982_v55  ;;  %v4092_v1 = vmul.f32 %v9159_v0, %v9151_v38  ;;  %v8881_v55 = vpack.c.bf16 %v7385_v39, %v7384_v4  ;;  %v7414_v4 = vld [vmem:[%s10512_s1 + $0x1d8] sm:$0xff] }
0x1646   :  { %8866 = vmatprep.subr.bf16.mxu1 %v8865_v57 }
0x1647   :  { %8340 = vmatprep.mubr.msk.f32.mxu1 %vm512_vm3, %v4092_v1 }
0x1648   :  { %8341 = vmatmul.mubr.msk.f32.vlgmr.msra.gmra.mrb[62].mxu1 %vm512_vm3, %v4093_v2  ;;  %v8909_v2 = vpack.c.bf16 %v7412_v63, %v7411_v59 }
0x1649   :  { %8868 = vmatpush3.bf16.msra.mxu1 %v8865_v57  ;;  %8359 = vmatprep.mubr.msk.f32.mxu1 %vm43_vm0, %v9938_v15 }
0x164a   :  { %8870 = vmatprep.subr.bf16.mxu1 %v8869_v42 }
0x164d   :  { %8872 = vmatpush3.bf16.msra.mxu1 %v8869_v42  ;;  %v7413_v42 = vld [vmem:[%s10512_s1 + $0x1d0] sm:$0xff] }
0x164e   :  { %8882 = vmatprep.subr.bf16.mxu1 %v8881_v55  ;;  %v8913_v39 = vpack.c.bf16 %v7414_v4, %v7413_v42 }
0x1650   :  { %8360 = vmatmul.mubr.msk.f32.vlgmr.msra.gmra.mrb[64].mxu1 %vm43_vm0, %v9940_v61 }
0x1651   :  { %8362 = vmatprep.mubr.msk.f32.mxu1 %vm43_vm0, %v9952_v8  ;;  %8884 = vmatpush3.bf16.msra.mxu1 %v8881_v55  ;;  %v7431_v55 = vld [vmem:[%s10512_s1 + $0x2c0] sm:$0xff] }
0x1652   :  { %8886 = vmatprep.subr.bf16.mxu1 %v8885_v10  ;;  %v8925_v9 = vpack.c.bf16 %v7432_v6, %v7431_v55 }
0x1654   :  { %8363 = vmatmul.mubr.msk.f32.gmra.mrb[66].mxu1 %vm43_vm0, %v9954_v32 }
0x1655   :  { %8888 = vmatpush3.bf16.msra.mxu1 %v8885_v10  ;;  %8387 = vmatprep.mubr.msk.f32.mxu1 %vm43_vm0, %v9938_v15  ;;  %v7433_v10 = vld [vmem:[%s10512_s1 + $0x2d0] sm:$0xff] }
0x1656   :  { %v8929_v12 = vpack.c.bf16 %v7434_v11, %v7433_v10 }
0x1658   :  { %8388 = vmatmul.mubr.msk.f32.vlgmr.msra.gmra.mrb[68].mxu1 %vm43_vm0, %v9940_v61 }
0x1659   :  { %8390 = vmatprep.mubr.msk.f32.mxu1 %vm43_vm0, %v9952_v8 }
0x165c   :  { %8391 = vmatmul.mubr.msk.f32.gmra.mrb[70].mxu1 %vm43_vm0, %v9954_v32 }
0x1717   :  { %v8335_v19 = vpop.f32.mrb[60].mxu1 }
0x1718   :  { %v4166_v13 = vpop.f32.mrb[61].mxu1 }
0x1719   :  { %8345 = vmatprep.mubr.msk.f32.mxu0 %vm337_vm1, %v4166_v13 }
0x171a   :  { %8346 = vmatmul.mubr.msk.f32.vlgmr.msra.gmra.mrb[48].mxu0 %vm337_vm1, %v8335_v19 }
0x171b   :  { %v8342_v14 = vpop.f32.mrb[62].mxu1  ;;  %8876 = vmatpush3.bf16.msra.mxu0 %v8873_v51 }
0x171c   :  { %v4247_v16 = vpop.f32.mrb[63].mxu1  ;;  %8878 = vmatprep.subr.bf16.mxu0 %v8877_v60 }
0x171d   :  { %8348 = vmatprep.mubr.msk.f32.mxu0 %vm337_vm1, %v4247_v16 }
0x171e   :  { %8349 = vmatmul.mubr.msk.f32.gmra.mrb[50].mxu0 %vm337_vm1, %v8342_v14 }
0x171f   :  { %8880 = vmatpush3.bf16.msra.mxu0 %v8877_v60  ;;  %8373 = vmatprep.mubr.msk.f32.mxu0 %vm43_vm0, %v9938_v15 }
0x1722   :  { %8374 = vmatmul.mubr.msk.f32.vlgmr.msra.gmra.mrb[52].mxu0 %vm43_vm0, %v9940_v61 }
0x1723   :  { %v8361_v24 = vpop.f32.mrb[64].mxu1  ;;  %8376 = vmatprep.mubr.msk.f32.mxu0 %vm43_vm0, %v9952_v8 }
0x1724   :  { %v4448_v22 = vadd.f32 %v8361_v24, %v7369_v21  ;;  %v4442_v25 = vpop.f32.mrb[65].mxu1 }
0x1725   :  { %v4443_v27 = vadd.f32 %v7369_v21, %v4442_v25 }
0x1726   :  { %8377 = vmatmul.mubr.msk.f32.gmra.mrb[54].mxu0 %vm43_vm0, %v9954_v32 }
0x1727   :  { %v8364_v29 = vpop.f32.mrb[66].mxu1  ;;  %8397 = vmatprep.mubr.msk.f32.mxu0 %vm337_vm1, %v4443_v27 }
0x1728   :  { %v4458_v7 = vadd.f32 %v8364_v29, %v7369_v21  ;;  %v4452_v31 = vpop.f32.mrb[67].mxu1 }
0x1729   :  { %v4453_v33 = vadd.f32 %v7369_v21, %v4452_v31  ;;  %v7416_v21 = vld [vmem:[%s10513_s2 + $0xe] ss:$0 sm:$0xff] }
0x172b   :  { %v8389_v35 = vpop.f32.mrb[68].mxu1  ;;  %8404 = vmatprep.mubr.msk.f32.mxu1 %vm337_vm1, %v4453_v33 }
0x172c   :  { %v4644_v36 = vadd.f32 %v8389_v35, %v7389_v34  ;;  %v4638_v37 = vpop.f32.mrb[69].mxu1 }
0x172d   :  { %v4639_v38 = vadd.f32 %v7389_v34, %v4638_v37 }
0x172f   :  { %v8901_v28 = vpack.c.bf16 %v4644_v36, %v4639_v38  ;;  %v8392_v43 = vpop.f32.mrb[70].mxu1 }
0x1730   :  { %v4654_v45 = vadd.f32 %v8392_v43, %v7389_v34  ;;  %v4648_v30 = vpop.f32.mrb[71].mxu1 }
0x1731   :  { %v4649_v46 = vadd.f32 %v7389_v34, %v4648_v30  ;;  %v7436_v34 = vld [vmem:[%s10513_s2 + $0x16] ss:$0 sm:$0xff] }
0x1733   :  { %v10084_v47 = vpack.c.bf16 %v4654_v45, %v4649_v46 }
0x17f5   :  { %v8375_v49 = vpop.f32.mrb[52].mxu0 }
0x17f6   :  { %v4546_v40 = vadd.f32 %v8375_v49, %v7379_v48  ;;  %v4540_v44 = vpop.f32.mrb[53].mxu0 }
0x17f7   :  { %v4541_v52 = vadd.f32 %v7379_v48, %v4540_v44 }
0x17f9   :  { %v8889_v53 = vpack.c.bf16 %v4546_v40, %v4541_v52  ;;  %v8378_v56 = vpop.f32.mrb[54].mxu0 }
0x17fa   :  { %v4556_v57 = vadd.f32 %v8378_v56, %v7379_v48  ;;  %v4550_v58 = vpop.f32.mrb[55].mxu0 }
0x17fb   :  { %v4551_v0 = vadd.f32 %v7379_v48, %v4550_v58  ;;  %8891 = vmatprep.subr.msk.bf16.mxu0 %vm9396_vm2, %v8889_v53 }
0x17fc   :  { %8894 = vmatpush3.bf16.xpose.msk.msra.mxu0 %vm9396_vm2, %v8889_v53 }
0x17fd   :  { %v8895_v1 = vpack.c.bf16 %v4556_v57, %v4551_v0  ;;  %8902 = vmatprep.subr.bf16.mxu0 %v8901_v28 }
0x17ff   :  { %8897 = vmatprep.subr.msk.bf16.mxu1 %vm9396_vm2, %v8895_v1 }
0x1800   :  { %8900 = vmatpush3.bf16.xpose.msk.msra.mxu1 %vm9396_vm2, %v8895_v1 }
0x1801   :  { %8910 = vmatprep.subr.bf16.mxu1 %v8909_v2 }
0x1803   :  { %8398 = vmatmul.mubr.msk.f32.vlgmr.msra.gmra.mrb[56].mxu0 %vm337_vm1, %v4448_v22 }
0x1804   :  { %8904 = vmatpush3.bf16.msra.mxu0 %v8901_v28 }
0x1805   :  { %8906 = vmatprep.subr.bf16.mxu0 %v10084_v47 }
0x1807   :  { %8405 = vmatmul.mubr.msk.f32.vlgmr.msra.gmra.mrb[72].mxu1 %vm337_vm1, %v4458_v7 }
0x1808   :  { %8912 = vmatpush3.bf16.msra.mxu1 %v8909_v2  ;;  %8437 = vmatprep.mubr.msk.f32.mxu1 %vm43_vm0, %v9938_v15 }
0x1809   :  { %8914 = vmatprep.subr.bf16.mxu1 %v8913_v39 }
0x180c   :  { %8916 = vmatpush3.bf16.msra.mxu1 %v8913_v39 }
0x180d   :  { %8926 = vmatprep.subr.bf16.mxu1 %v8925_v9 }
0x180f   :  { %8438 = vmatmul.mubr.msk.f32.vlgmr.msra.gmra.mrb[74].mxu1 %vm43_vm0, %v9940_v61 }
0x1810   :  { %8440 = vmatprep.mubr.msk.f32.mxu1 %vm43_vm0, %v9952_v8  ;;  %8928 = vmatpush3.bf16.msra.mxu1 %v8925_v9 }
0x1811   :  { %8930 = vmatprep.subr.bf16.mxu1 %v8929_v12 }
0x1813   :  { %8441 = vmatmul.mubr.msk.f32.gmra.mrb[76].mxu1 %vm43_vm0, %v9954_v32 }
0x1814   :  { %8932 = vmatpush3.bf16.msra.mxu1 %v8929_v12  ;;  %8465 = vmatprep.mubr.msk.f32.mxu1 %vm43_vm0, %v9938_v15 }
0x1817   :  { %8466 = vmatmul.mubr.msk.f32.vlgmr.msra.gmra.mrb[78].mxu1 %vm43_vm0, %v9940_v61 }
0x1818   :  { %8468 = vmatprep.mubr.msk.f32.mxu1 %vm43_vm0, %v9952_v8 }
0x181b   :  { %8469 = vmatmul.mubr.msk.f32.gmra.mrb[80].mxu1 %vm43_vm0, %v9954_v32 }
0x18d6   :  { %v8399_v51 = vpop.f32.mrb[56].mxu0 }
0x18d7   :  { %v4735_v50 = vpop.f32.mrb[57].mxu0  ;;  %v4834_v18 = vsel %vm512_vm3, %v8399_v51, -inf }
0x18d8   :  { %4835 = vmax.xlane.f32.xlu1 %v4834_v18  ;;  %v4831_v19 = vsel %vm512_vm3, %v4735_v50, -inf }
0x18d9   :  { %4832 = vmax.xlane.f32.xlu0 %v4831_v19 }
0x18da   :  { %v8406_v13 = vpop.f32.mrb[72].mxu1 }
0x18db   :  { %v4822_v60 = vpop.f32.mrb[73].mxu1  ;;  %v4840_v14 = vsel %vm512_vm3, %v8406_v13, -inf }
0x18dc   :  { %4841 = vmax.xlane.f32.xlu1 %v4840_v14  ;;  %v4837_v16 = vsel %vm512_vm3, %v4822_v60, -inf }
0x18dd   :  { %4838 = vmax.xlane.f32.xlu0 %v4837_v16  ;;  %v7406_v16 = vld [vmem:[%s10514_s3 + $0x28] sm:$0xff] }
0x18e2   :  { %v8439_v24 = vpop.f32.mrb[74].mxu1 }
0x18e3   :  { %v10147_v22 = vadd.f32 %v8439_v24, %v7416_v21  ;;  %v5219_v25 = vpop.f32.mrb[75].mxu1 }
0x18e4   :  { %v10149_v27 = vadd.f32 %v7416_v21, %v5219_v25 }
0x18e6   :  { %v8442_v29 = vpop.f32.mrb[76].mxu1 }
0x18e7   :  { %v10151_v7 = vadd.f32 %v8442_v29, %v7416_v21  ;;  %v5229_v31 = vpop.f32.mrb[77].mxu1  ;;  %v7421_v29 = vld [vmem:[%s10512_s1 + $0x240] sm:$0xff] }
0x18e8   :  { %v5230_v33 = vadd.f32 %v7416_v21, %v5229_v31  ;;  %v7422_v31 = vld [vmem:[%s10512_s1 + $0x248] sm:$0xff] }
0x18ea   :  { %v8467_v35 = vpop.f32.mrb[78].mxu1  ;;  %8482 = vmatprep.mubr.msk.f32.mxu1 %vm337_vm1, %v5230_v33  ;;  %v8917_v33 = vpack.c.bf16 %v7422_v31, %v7421_v29  ;;  %v7453_v31 = vld [vmem:[%s10514_s3 + $0x30] sm:$0xff] }
0x18eb   :  { %v5421_v36 = vadd.f32 %v8467_v35, %v7436_v34  ;;  %v5415_v37 = vpop.f32.mrb[79].mxu1 }
0x18ec   :  { %v5416_v38 = vadd.f32 %v7436_v34, %v5415_v37 }
0x18ee   :  { %v10157_v28 = vpack.c.bf16 %v5421_v36, %v5416_v38  ;;  %v8470_v43 = vpop.f32.mrb[80].mxu1 }
0x18ef   :  { %v5431_v45 = vadd.f32 %v8470_v43, %v7436_v34  ;;  %v5425_v30 = vpop.f32.mrb[81].mxu1 }
0x18f0   :  { %v5426_v46 = vadd.f32 %v7436_v34, %v5425_v30  ;;  %v7424_v34 = vld [vmem:[%s10512_s1 + $0x258] sm:$0xff] }
0x18f2   :  { %v10159_v48 = vpack.c.bf16 %v5431_v45, %v5426_v46  ;;  %v7426_v45 = vld [vmem:[%s10513_s2 + $0x12] ss:$0 sm:$0xff] }
0x1965   :  { %v4836_v49 = vpop.xlane.xlu1 %4835 }
0x1966   :  { %v4844_v40 = vsub.f32 %v8399_v51, %v4836_v49  ;;  %v4833_v44 = vpop.xlane.xlu0 %4832 }
0x1967   :  { %v4843_v52 = vsub.f32 %v4735_v50, %v4833_v44 }
0x1968   :  { %v4849_v53 = vmul.f32 1.442695, %v4844_v40 }
0x1969   :  { %v4847_v56 = vmul.f32 1.442695, %v4843_v52  ;;  %v4842_v57 = vpop.xlane.xlu1 %4841 }
0x196a   :  { %9160 = vpow2.f32 %v4849_v53  ;;  %v4846_v58 = vsub.f32 %v8406_v13, %v4842_v57  ;;  %v4839_v59 = vpop.xlane.xlu0 %4838 }
0x196b   :  { %9162 = vpow2.f32 %v4847_v56  ;;  %v4845_v63 = vsub.f32 %v4822_v60, %v4839_v59 }
0x196c   :  { %v4853_v0 = vmul.f32 1.442695, %v4846_v58 }
0x196d   :  { %v4851_v1 = vmul.f32 1.442695, %v4845_v63 }
0x196e   :  { %9164 = vpow2.f32 %v4853_v0 }
0x196f   :  { %9166 = vpow2.f32 %v4851_v1 }
0x1974   :  { %v9161_v2 = vpop.eup %9160 }
0x1975   :  { %v9163_v42 = vpop.eup %9162  ;;  %v4858_v4 = vsel %vm512_vm3, %v9161_v2, 0.0 }
0x1976   :  { %4859 = vadd.xlane.f32.xlu1 %v4858_v4  ;;  %v4855_v39 = vsel %vm512_vm3, %v9163_v42, 0.0 }
0x1977   :  { %4856 = vadd.xlane.f32.xlu0 %v4855_v39 }
0x1978   :  { %v9165_v55 = vpop.eup %9164 }
0x1979   :  { %v9167_v6 = vpop.eup %9166  ;;  %v4864_v9 = vsel %vm512_vm3, %v9165_v55, 0.0 }
0x197a   :  { %4865 = vadd.xlane.f32.xlu1 %v4864_v9  ;;  %v4861_v10 = vsel %vm512_vm3, %v9167_v6, 0.0 }
0x197b   :  { %4862 = vadd.xlane.f32.xlu0 %v4861_v10 }
0x1a03   :  { %v4860_v11 = vpop.xlane.xlu1 %4859 }
0x1a04   :  { %9168 = vrcp.f32 %v4860_v11  ;;  %v4857_v12 = vpop.xlane.xlu0 %4856 }
0x1a05   :  { %9170 = vrcp.f32 %v4857_v12 }
0x1a07   :  { %v4866_v51 = vpop.xlane.xlu1 %4865 }
0x1a08   :  { %9172 = vrcp.f32 %v4866_v51  ;;  %v4863_v50 = vpop.xlane.xlu0 %4862 }
0x1a09   :  { %9174 = vrcp.f32 %v4863_v50 }
0x1a0e   :  { %v9169_v18 = vpop.eup %9168 }
0x1a0f   :  { %v9171_v19 = vpop.eup %9170  ;;  %v4872_v60 = vmul.f32 %v9169_v18, %v9161_v2 }
0x1a10   :  { %v4871_v13 = vmul.f32 %v9171_v19, %v9163_v42 }
0x1a12   :  { %v9173_v14 = vpop.eup %9172  ;;  %8411 = vmatprep.mubr.msk.f32.mxu0 %vm512_vm3, %v4871_v13 }
0x1a13   :  { %v9175_v21 = vpop.eup %9174  ;;  %8412 = vmatmul.mubr.msk.f32.vlgmr.msra.gmra.mrb[58].mxu0 %vm512_vm3, %v4872_v60  ;;  %v4874_v25 = vmul.f32 %v9173_v14, %v9165_v55 }
0x1a14   :  { %8908 = vmatpush3.bf16.msra.mxu0 %v10084_v47  ;;  %v4873_v24 = vmul.f32 %v9175_v21, %v9167_v6  ;;  %v7423_v47 = vld [vmem:[%s10512_s1 + $0x250] sm:$0xff] }
0x1a15   :  { %8421 = vmatprep.subr.mxu0 %v7406_v16  ;;  %v8921_v37 = vpack.c.bf16 %v7424_v34, %v7423_v47 }
0x1a16   :  { %8418 = vmatprep.mubr.msk.f32.mxu0 %vm512_vm3, %v4873_v24  ;;  %v7458_v24 = vld [vmem:[%s10512_s1 + $0x1e0] sm:$0xff] }
0x1a17   :  { %8419 = vmatmul.mubr.msk.f32.vlgmr.msra.gmra.mrb[60].mxu0 %vm512_vm3, %v4874_v25  ;;  %v7459_v25 = vld [vmem:[%s10512_s1 + $0x1e8] sm:$0xff] }
0x1a18   :  { %8422 = vmatpush3.msra.mxu0 %v7406_v16  ;;  %v8953_v29 = vpack.c.bf16 %v7459_v25, %v7458_v24 }
0x1a19   :  { %8918 = vmatprep.subr.bf16.mxu0 %v8917_v33 }
0x1ae6   :  { %v8413_v35 = vpop.f32.mrb[58].mxu0 }
0x1ae7   :  { %v4947_v36 = vpop.f32.mrb[59].mxu0 }
0x1ae8   :  { %8423 = vmatprep.mubr.msk.f32.mxu0 %vm337_vm1, %v4947_v36 }
0x1ae9   :  { %8424 = vmatmul.mubr.msk.f32.vlgmr.msra.gmra.mrb[48].mxu0 %vm337_vm1, %v8413_v35 }
0x1aea   :  { %v8420_v38 = vpop.f32.mrb[60].mxu0  ;;  %8920 = vmatpush3.bf16.msra.mxu0 %v8917_v33 }
0x1aeb   :  { %v5028_v43 = vpop.f32.mrb[61].mxu0  ;;  %8922 = vmatprep.subr.bf16.mxu0 %v8921_v37 }
0x1aec   :  { %8426 = vmatprep.mubr.msk.f32.mxu0 %vm337_vm1, %v5028_v43 }
0x1aed   :  { %8427 = vmatmul.mubr.msk.f32.gmra.mrb[50].mxu0 %vm337_vm1, %v8420_v38 }
0x1aee   :  { %8924 = vmatpush3.bf16.msra.mxu0 %v8921_v37  ;;  %8451 = vmatprep.mubr.msk.f32.mxu0 %vm43_vm0, %v9938_v15 }
0x1af1   :  { %8452 = vmatmul.mubr.msk.f32.vlgmr.msra.gmra.mrb[62].mxu0 %vm43_vm0, %v9940_v61 }
0x1af2   :  { %8454 = vmatprep.mubr.msk.f32.mxu0 %vm43_vm0, %v9952_v8 }
0x1af5   :  { %8455 = vmatmul.mubr.msk.f32.gmra.mrb[64].mxu0 %vm43_vm0, %v9954_v32 }
0x1af6   :  { %8475 = vmatprep.mubr.msk.f32.mxu0 %vm337_vm1, %v10149_v27 }
0x1bc4   :  { %v8453_v30 = vpop.f32.mrb[62].mxu0 }
0x1bc5   :  { %v5323_v46 = vadd.f32 %v8453_v30, %v7426_v45  ;;  %v5317_v49 = vpop.f32.mrb[63].mxu0  ;;  %v7460_v30 = vld [vmem:[%s10512_s1 + $0x1f0] sm:$0xff] }
0x1bc6   :  { %v5318_v40 = vadd.f32 %v7426_v45, %v5317_v49 }
0x1bc8   :  { %v8933_v44 = vpack.c.bf16 %v5323_v46, %v5318_v40  ;;  %v8456_v52 = vpop.f32.mrb[64].mxu0  ;;  %v7461_v46 = vld [vmem:[%s10512_s1 + $0x1f8] sm:$0xff] }
0x1bc9   :  { %v5333_v53 = vadd.f32 %v8456_v52, %v7426_v45  ;;  %v5327_v56 = vpop.f32.mrb[65].mxu0  ;;  %v8957_v52 = vpack.c.bf16 %v7461_v46, %v7460_v30 }
0x1bca   :  { %v5328_v57 = vadd.f32 %v7426_v45, %v5327_v56  ;;  %8935 = vmatprep.subr.msk.bf16.mxu0 %vm9396_vm2, %v8933_v44  ;;  %v7479_v56 = vld [vmem:[%s10512_s1 + $0x2e8] sm:$0xff] }
0x1bcb   :  { %8938 = vmatpush3.bf16.xpose.msk.msra.mxu0 %vm9396_vm2, %v8933_v44 }
0x1bcc   :  { %v8939_v27 = vpack.c.bf16 %v5333_v53, %v5328_v57  ;;  %8946 = vmatprep.subr.bf16.mxu0 %v10157_v28  ;;  %v7478_v53 = vld [vmem:[%s10512_s1 + $0x2e0] sm:$0xff] }
0x1bcd   :  { %v8969_v57 = vpack.c.bf16 %v7479_v56, %v7478_v53 }
0x1bce   :  { %8941 = vmatprep.subr.msk.bf16.mxu1 %vm9396_vm2, %v8939_v27 }
0x1bcf   :  { %8944 = vmatpush3.bf16.xpose.msk.msra.mxu1 %vm9396_vm2, %v8939_v27  ;;  %v7480_v27 = vld [vmem:[%s10512_s1 + $0x2f0] sm:$0xff] }
0x1bd0   :  { %8950 = vmatprep.subr.bf16.mxu1 %v10159_v48 }
0x1bd2   :  { %8476 = vmatmul.mubr.msk.f32.vlgmr.msra.gmra.mrb[66].mxu0 %vm337_vm1, %v10147_v22 }
0x1bd3   :  { %8948 = vmatpush3.bf16.msra.mxu0 %v10157_v28 }
0x1bd4   :  { %8499 = vmatprep.subr.mxu0 %v7453_v31 }
0x1bd6   :  { %8483 = vmatmul.mubr.msk.f32.vlgmr.msra.gmra.mrb[82].mxu1 %vm337_vm1, %v10151_v7 }
0x1bd7   :  { %8952 = vmatpush3.bf16.msra.mxu1 %v10159_v48 }
0x1bd8   :  { %8954 = vmatprep.subr.bf16.mxu1 %v8953_v29 }
0x1ca5   :  { %v8477_v58 = vpop.f32.mrb[66].mxu0 }
0x1ca6   :  { %v5512_v59 = vpop.f32.mrb[67].mxu0  ;;  %v5611_v63 = vsel %vm512_vm3, %v8477_v58, -inf }
0x1ca7   :  { %5612 = vmax.xlane.f32.xlu1 %v5611_v63  ;;  %v5608_v0 = vsel %vm512_vm3, %v5512_v59, -inf  ;;  %v7468_v63 = vld [vmem:[%s10512_s1 + $0x260] sm:$0xff] }
0x1ca8   :  { %5609 = vmax.xlane.f32.xlu0 %v5608_v0  ;;  %v7469_v0 = vld [vmem:[%s10512_s1 + $0x268] sm:$0xff] }
0x1ca9   :  { %v8484_v1 = vpop.f32.mrb[82].mxu1 }
0x1caa   :  { %v5599_v2 = vpop.f32.mrb[83].mxu1  ;;  %v5617_v42 = vsel %vm512_vm3, %v8484_v1, -inf }
0x1cab   :  { %5618 = vmax.xlane.f32.xlu1 %v5617_v42  ;;  %v5614_v22 = vsel %vm512_vm3, %v5599_v2, -inf  ;;  %v7471_v42 = vld [vmem:[%s10512_s1 + $0x278] sm:$0xff] }
0x1cac   :  { %5615 = vmax.xlane.f32.xlu0 %v5614_v22 }
0x1d34   :  { %v5613_v28 = vpop.xlane.xlu1 %5612 }
0x1d35   :  { %v5621_v7 = vsub.f32 %v8477_v58, %v5613_v28  ;;  %v5610_v4 = vpop.xlane.xlu0 %5609  ;;  %v7481_v58 = vld [vmem:[%s10512_s1 + $0x2f8] sm:$0xff] }
0x1d36   :  { %v5620_v48 = vsub.f32 %v5512_v59, %v5610_v4  ;;  %v8973_v59 = vpack.c.bf16 %v7481_v58, %v7480_v27 }
0x1d37   :  { %v5626_v39 = vmul.f32 1.442695, %v5621_v7 }
0x1d38   :  { %v5624_v55 = vmul.f32 1.442695, %v5620_v48  ;;  %v5619_v6 = vpop.xlane.xlu1 %5618 }
0x1d39   :  { %9176 = vpow2.f32 %v5626_v39  ;;  %v5623_v9 = vsub.f32 %v8484_v1, %v5619_v6  ;;  %v5616_v10 = vpop.xlane.xlu0 %5615  ;;  %v8961_v1 = vpack.c.bf16 %v7469_v0, %v7468_v63  ;;  %v7463_v39 = vld [vmem:[%s10513_s2 + $0xf] ss:$0 sm:$0xff] }
0x1d3a   :  { %9178 = vpow2.f32 %v5624_v55  ;;  %v5622_v11 = vsub.f32 %v5599_v2, %v5616_v10  ;;  %v7470_v2 = vld [vmem:[%s10512_s1 + $0x270] sm:$0xff] }
0x1d3b   :  { %v5630_v12 = vmul.f32 1.442695, %v5623_v9  ;;  %v8965_v7 = vpack.c.bf16 %v7471_v42, %v7470_v2 }
0x1d3c   :  { %v5628_v51 = vmul.f32 1.442695, %v5622_v11 }
0x1d3d   :  { %9180 = vpow2.f32 %v5630_v12 }
0x1d3e   :  { %9182 = vpow2.f32 %v5628_v51 }
0x1d43   :  { %v9177_v50 = vpop.eup %9176 }
0x1d44   :  { %v9179_v18 = vpop.eup %9178  ;;  %v5635_v19 = vsel %vm512_vm3, %v9177_v50, 0.0 }
0x1d45   :  { %5636 = vadd.xlane.f32.xlu1 %v5635_v19  ;;  %v5632_v13 = vsel %vm512_vm3, %v9179_v18, 0.0 }
0x1d46   :  { %5633 = vadd.xlane.f32.xlu0 %v5632_v13 }
0x1d47   :  { %v9181_v60 = vpop.eup %9180 }
0x1d48   :  { %v9183_v14 = vpop.eup %9182  ;;  %v5641_v16 = vsel %vm512_vm3, %v9181_v60, 0.0 }
0x1d49   :  { %5642 = vadd.xlane.f32.xlu1 %v5641_v16  ;;  %v5638_v21 = vsel %vm512_vm3, %v9183_v14, 0.0 }
0x1d4a   :  { %5639 = vadd.xlane.f32.xlu0 %v5638_v21 }
0x1dd2   :  { %v5637_v33 = vpop.xlane.xlu1 %5636 }
0x1dd3   :  { %9184 = vrcp.f32 %v5637_v33  ;;  %v5634_v47 = vpop.xlane.xlu0 %5633  ;;  %v7473_v33 = vld [vmem:[%s10513_s2 + $0x13] ss:$0 sm:$0xff] }
0x1dd4   :  { %9186 = vrcp.f32 %v5634_v47 }
0x1dd6   :  { %v5643_v34 = vpop.xlane.xlu1 %5642 }
0x1dd7   :  { %9188 = vrcp.f32 %v5643_v34  ;;  %v5640_v35 = vpop.xlane.xlu0 %5639 }
0x1dd8   :  { %9190 = vrcp.f32 %v5640_v35 }
0x1ddd   :  { %v9185_v36 = vpop.eup %9184 }
0x1dde   :  { %v9187_v37 = vpop.eup %9186  ;;  %v5649_v43 = vmul.f32 %v9185_v36, %v9177_v50 }
0x1ddf   :  { %v5648_v38 = vmul.f32 %v9187_v37, %v9179_v18  ;;  %v7483_v18 = vld [vmem:[%s10513_s2 + $0x17] ss:$0 sm:$0xff] }
0x1de1   :  { %v9189_v45 = vpop.eup %9188  ;;  %8489 = vmatprep.mubr.msk.f32.mxu0 %vm512_vm3, %v5648_v38 }
0x1de2   :  { %v9191_v49 = vpop.eup %9190  ;;  %8490 = vmatmul.mubr.msk.f32.vlgmr.msra.gmra.mrb[68].mxu0 %vm512_vm3, %v5649_v43  ;;  %v5651_v44 = vmul.f32 %v9189_v45, %v9181_v60 }
0x1de3   :  { %v5650_v40 = vmul.f32 %v9191_v49, %v9183_v14  ;;  %8500 = vmatpush3.msra.mxu0 %v7453_v31 }
0x1de4   :  { %8962 = vmatprep.subr.bf16.mxu0 %v8961_v1 }
0x1de5   :  { %8496 = vmatprep.mubr.msk.f32.mxu1 %vm512_vm3, %v5650_v40 }
0x1de6   :  { %8497 = vmatmul.mubr.msk.f32.vlgmr.msra.gmra.mrb[84].mxu1 %vm512_vm3, %v5651_v44 }
0x1de7   :  { %8956 = vmatpush3.bf16.msra.mxu1 %v8953_v29  ;;  %8515 = vmatprep.mubr.msk.f32.mxu1 %vm43_vm0, %v9938_v15 }
0x1de8   :  { %8958 = vmatprep.subr.bf16.mxu1 %v8957_v52 }
0x1deb   :  { %8960 = vmatpush3.bf16.msra.mxu1 %v8957_v52 }
0x1dec   :  { %8970 = vmatprep.subr.bf16.mxu1 %v8969_v57 }
0x1dee   :  { %8516 = vmatmul.mubr.msk.f32.vlgmr.msra.gmra.mrb[86].mxu1 %vm43_vm0, %v9940_v61 }
0x1def   :  { %8518 = vmatprep.mubr.msk.f32.mxu1 %vm43_vm0, %v9952_v8  ;;  %8972 = vmatpush3.bf16.msra.mxu1 %v8969_v57 }
0x1df0   :  { %8974 = vmatprep.subr.bf16.mxu1 %v8973_v59 }
0x1df2   :  { %8519 = vmatmul.mubr.msk.f32.gmra.mrb[88].mxu1 %vm43_vm0, %v9954_v32 }
0x1df3   :  { %8976 = vmatpush3.bf16.msra.mxu1 %v8973_v59  ;;  %8543 = vmatprep.mubr.msk.f32.mxu1 %vm43_vm0, %v9938_v15 }
0x1df6   :  { %8544 = vmatmul.mubr.msk.f32.vlgmr.msra.gmra.mrb[90].mxu1 %vm43_vm0, %v9940_v61 }
0x1df7   :  { %8546 = vmatprep.mubr.msk.f32.mxu1 %vm43_vm0, %v9952_v8 }
0x1dfa   :  { %8547 = vmatmul.mubr.msk.f32.gmra.mrb[92].mxu1 %vm43_vm0, %v9954_v32 }
0x1eb5   :  { %v8491_v22 = vpop.f32.mrb[68].mxu0 }
0x1eb6   :  { %v5724_v28 = vpop.f32.mrb[69].mxu0 }
0x1eb7   :  { %8501 = vmatprep.mubr.msk.f32.mxu0 %vm337_vm1, %v5724_v28 }
0x1eb8   :  { %8502 = vmatmul.mubr.msk.f32.vlgmr.msra.gmra.mrb[48].mxu0 %vm337_vm1, %v8491_v22 }
0x1eb9   :  { %v8498_v4 = vpop.f32.mrb[84].mxu1  ;;  %8964 = vmatpush3.bf16.msra.mxu0 %v8961_v1 }
0x1eba   :  { %v5805_v48 = vpop.f32.mrb[85].mxu1  ;;  %8966 = vmatprep.subr.bf16.mxu0 %v8965_v7 }
0x1ebb   :  { %8504 = vmatprep.mubr.msk.f32.mxu0 %vm337_vm1, %v5805_v48 }
0x1ebc   :  { %8505 = vmatmul.mubr.msk.f32.gmra.mrb[50].mxu0 %vm337_vm1, %v8498_v4 }
0x1ebd   :  { %8968 = vmatpush3.bf16.msra.mxu0 %v8965_v7  ;;  %8529 = vmatprep.mubr.msk.f32.mxu0 %vm43_vm0, %v9938_v15 }
0x1ec0   :  { %8530 = vmatmul.mubr.msk.f32.vlgmr.msra.gmra.mrb[70].mxu0 %vm43_vm0, %v9940_v61 }
0x1ec1   :  { %v8517_v55 = vpop.f32.mrb[86].mxu1  ;;  %8532 = vmatprep.mubr.msk.f32.mxu0 %vm43_vm0, %v9952_v8 }
0x1ec2   :  { %v6002_v6 = vadd.f32 %v8517_v55, %v7463_v39  ;;  %v5996_v9 = vpop.f32.mrb[87].mxu1 }
0x1ec3   :  { %v5997_v10 = vadd.f32 %v7463_v39, %v5996_v9 }
0x1ec4   :  { %8533 = vmatmul.mubr.msk.f32.gmra.mrb[72].mxu0 %vm43_vm0, %v9954_v32 }
0x1ec5   :  { %v8520_v11 = vpop.f32.mrb[88].mxu1  ;;  %8553 = vmatprep.mubr.msk.f32.mxu0 %vm337_vm1, %v5997_v10 }
0x1ec6   :  { %v6012_v12 = vadd.f32 %v8520_v11, %v7463_v39  ;;  %v6006_v51 = vpop.f32.mrb[89].mxu1 }
0x1ec7   :  { %v6007_v50 = vadd.f32 %v7463_v39, %v6006_v51 }
0x1ec9   :  { %v8545_v19 = vpop.f32.mrb[90].mxu1  ;;  %8560 = vmatprep.mubr.msk.f32.mxu1 %vm337_vm1, %v6007_v50 }
0x1eca   :  { %v6198_v13 = vadd.f32 %v8545_v19, %v7483_v18  ;;  %v6192_v60 = vpop.f32.mrb[91].mxu1 }
0x1ecb   :  { %v6193_v14 = vadd.f32 %v7483_v18, %v6192_v60 }
0x1ecd   :  { %v8989_v16 = vpack.c.bf16 %v6198_v13, %v6193_v14  ;;  %v8548_v21 = vpop.f32.mrb[92].mxu1 }
0x1ece   :  { %v6208_v24 = vadd.f32 %v8548_v21, %v7483_v18  ;;  %v6202_v25 = vpop.f32.mrb[93].mxu1 }
0x1ecf   :  { %v6203_v29 = vadd.f32 %v7483_v18, %v6202_v25 }
0x1ed1   :  { %v10305_v31 = vpack.c.bf16 %v6208_v24, %v6203_v29  ;;  %v7500_v24 = vld [vmem:[%s10514_s3 + $0x38] sm:$0xff] }
0x1f93   :  { %v8531_v47 = vpop.f32.mrb[70].mxu0 }
0x1f94   :  { %v6100_v34 = vadd.f32 %v8531_v47, %v7473_v33  ;;  %v6094_v35 = vpop.f32.mrb[71].mxu0 }
0x1f95   :  { %v6095_v36 = vadd.f32 %v7473_v33, %v6094_v35 }
0x1f97   :  { %v8977_v37 = vpack.c.bf16 %v6100_v34, %v6095_v36  ;;  %v8534_v38 = vpop.f32.mrb[72].mxu0 }
0x1f98   :  { %v6110_v43 = vadd.f32 %v8534_v38, %v7473_v33  ;;  %v6104_v45 = vpop.f32.mrb[73].mxu0 }
0x1f99   :  { %v6105_v30 = vadd.f32 %v7473_v33, %v6104_v45  ;;  %8979 = vmatprep.subr.msk.bf16.mxu0 %vm9396_vm2, %v8977_v37 }
0x1f9a   :  { %8982 = vmatpush3.bf16.xpose.msk.msra.mxu0 %vm9396_vm2, %v8977_v37 }
0x1f9b   :  { %v8983_v46 = vpack.c.bf16 %v6110_v43, %v6105_v30  ;;  %8990 = vmatprep.subr.bf16.mxu0 %v8989_v16 }
0x1f9d   :  { %8985 = vmatprep.subr.msk.bf16.mxu1 %vm9396_vm2, %v8983_v46 }
0x1f9e   :  { %8988 = vmatpush3.bf16.xpose.msk.msra.mxu1 %vm9396_vm2, %v8983_v46 }
0x1fa1   :  { %8554 = vmatmul.mubr.msk.f32.vlgmr.msra.gmra.mrb[74].mxu0 %vm337_vm1, %v6002_v6 }
0x1fa2   :  { %8992 = vmatpush3.bf16.msra.mxu0 %v8989_v16 }
0x1fa3   :  { %8994 = vmatprep.subr.bf16.mxu0 %v10305_v31 }
0x1fa5   :  { %8561 = vmatmul.mubr.msk.f32.vlgmr.msra.gmra.mrb[94].mxu1 %vm337_vm1, %v6012_v12 }
0x2074   :  { %v8555_v49 = vpop.f32.mrb[74].mxu0 }
0x2075   :  { %v6289_v40 = vpop.f32.mrb[75].mxu0  ;;  %v6388_v44 = vsel %vm512_vm3, %v8555_v49, -inf }
0x2076   :  { %6389 = vmax.xlane.f32.xlu1 %v6388_v44  ;;  %v6385_v52 = vsel %vm512_vm3, %v6289_v40, -inf }
0x2077   :  { %6386 = vmax.xlane.f32.xlu0 %v6385_v52 }
0x2078   :  { %v8562_v53 = vpop.f32.mrb[94].mxu1 }
0x2079   :  { %v6376_v56 = vpop.f32.mrb[95].mxu1  ;;  %v6394_v41 = vsel %vm512_vm3, %v8562_v53, -inf }
0x207a   :  { %6395 = vmax.xlane.f32.xlu1 %v6394_v41  ;;  %v6391_v57 = vsel %vm512_vm3, %v6376_v56, -inf }
0x207b   :  { %6392 = vmax.xlane.f32.xlu0 %v6391_v57 }
0x2103   :  { %v6390_v27 = vpop.xlane.xlu1 %6389 }
0x2104   :  { %v6398_v58 = vsub.f32 %v8555_v49, %v6390_v27  ;;  %v6387_v59 = vpop.xlane.xlu0 %6386 }
0x2105   :  { %v6397_v63 = vsub.f32 %v6289_v40, %v6387_v59 }
0x2106   :  { %v6403_v0 = vmul.f32 1.442695, %v6398_v58 }
0x2107   :  { %v6401_v1 = vmul.f32 1.442695, %v6397_v63  ;;  %v6396_v2 = vpop.xlane.xlu1 %6395 }
0x2108   :  { %9192 = vpow2.f32 %v6403_v0  ;;  %v6400_v42 = vsub.f32 %v8562_v53, %v6396_v2  ;;  %v6393_v22 = vpop.xlane.xlu0 %6392  ;;  %v7505_v2 = vld [vmem:[%s10515_s4 + $0x20] sm:$0xff] }
0x2109   :  { %9194 = vpow2.f32 %v6401_v1  ;;  %v6399_v28 = vsub.f32 %v6376_v56, %v6393_v22 }
0x210a   :  { %v6407_v7 = vmul.f32 1.442695, %v6400_v42  ;;  %v7506_v42 = vld [vmem:[%s10515_s4 + $0x28] sm:$0xff] }
0x210b   :  { %v6405_v4 = vmul.f32 1.442695, %v6399_v28  ;;  %v8997_v22 = vpack.c.bf16 %v7506_v42, %v7505_v2  ;;  %v7507_v28 = vld [vmem:[%s10515_s4 + $0x30] sm:$0xff] }
0x210c   :  { %9196 = vpow2.f32 %v6407_v7  ;;  %v7508_v7 = vld [vmem:[%s10515_s4 + $0x38] sm:$0xff]  ;;  %v7515_v42 = vld [vmem:[%s10516_s5 + $0x50] sm:$0xff] }
0x210d   :  { %9198 = vpow2.f32 %v6405_v4  ;;  %8998 = vmatprep.subr.bf16.mxu1 %v8997_v22  ;;  %v9001_v4 = vpack.c.bf16 %v7508_v7, %v7507_v28  ;;  %v7517_v7 = vld [vmem:[%s10516_s5 + $0x60] sm:$0xff] }
0x210e   :  { %9000 = vmatpush3.bf16.msra.mxu1 %v8997_v22  ;;  %v7516_v22 = vld [vmem:[%s10516_s5 + $0x58] sm:$0xff] }
0x210f   :  { %9002 = vmatprep.subr.bf16.mxu1 %v9001_v4  ;;  %v9009_v28 = vpack.c.bf16 %v7516_v22, %v7515_v42 }
0x2112   :  { %v9193_v48 = vpop.eup %9192  ;;  %9004 = vmatpush3.bf16.msra.mxu1 %v9001_v4  ;;  %v7518_v4 = vld [vmem:[%s10516_s5 + $0x68] sm:$0xff] }
0x2113   :  { %v9195_v39 = vpop.eup %9194  ;;  %v6412_v55 = vsel %vm512_vm3, %v9193_v48, 0.0 }
0x2114   :  { %6413 = vadd.xlane.f32.xlu1 %v6412_v55  ;;  %v6409_v6 = vsel %vm512_vm3, %v9195_v39, 0.0 }
0x2115   :  { %6410 = vadd.xlane.f32.xlu0 %v6409_v6 }
0x2116   :  { %v9197_v9 = vpop.eup %9196 }
0x2117   :  { %v9199_v10 = vpop.eup %9198  ;;  %v6418_v11 = vsel %vm512_vm3, %v9197_v9, 0.0 }
0x2118   :  { %6419 = vadd.xlane.f32.xlu1 %v6418_v11  ;;  %v6415_v12 = vsel %vm512_vm3, %v9199_v10, 0.0 }
0x2119   :  { %6416 = vadd.xlane.f32.xlu0 %v6415_v12 }
0x21a1   :  { %v6414_v51 = vpop.xlane.xlu1 %6413 }
0x21a2   :  { %9200 = vrcp.f32 %v6414_v51  ;;  %v6411_v50 = vpop.xlane.xlu0 %6410 }
0x21a3   :  { %9202 = vrcp.f32 %v6411_v50 }
0x21a5   :  { %v6420_v18 = vpop.xlane.xlu1 %6419 }
0x21a6   :  { %9204 = vrcp.f32 %v6420_v18  ;;  %v6417_v19 = vpop.xlane.xlu0 %6416 }
0x21a7   :  { %9206 = vrcp.f32 %v6417_v19 }
0x21ac   :  { %v9201_v13 = vpop.eup %9200 }
0x21ad   :  { %v9203_v60 = vpop.eup %9202  ;;  %v6426_v16 = vmul.f32 %v9201_v13, %v9193_v48 }
0x21ae   :  { %v6425_v14 = vmul.f32 %v9203_v60, %v9195_v39 }
0x21b0   :  { %v9205_v21 = vpop.eup %9204  ;;  %8567 = vmatprep.mubr.msk.f32.mxu0 %vm512_vm3, %v6425_v14 }
0x21b1   :  { %v9207_v25 = vpop.eup %9206  ;;  %8568 = vmatmul.mubr.msk.f32.vlgmr.msra.gmra.mrb[76].mxu0 %vm512_vm3, %v6426_v16  ;;  %v6428_v33 = vmul.f32 %v9205_v21, %v9197_v9 }
0x21b2   :  { %8996 = vmatpush3.bf16.msra.mxu0 %v10305_v31  ;;  %v6427_v29 = vmul.f32 %v9207_v25, %v9199_v10  ;;  %v10344_v31 = vld [vmem:[%s10517_s6 + $0x8] sm:$0xff] }
0x21b3   :  { %8577 = vmatprep.subr.mxu0 %v7500_v24  ;;  %v4358_v37 = vrot.slane %v10344_v31, %v819_v20 }
0x21b4   :  { %8574 = vmatprep.mubr.msk.f32.mxu0 %vm512_vm3, %v6427_v29 }
0x21b5   :  { %8575 = vmatmul.mubr.msk.f32.vlgmr.msra.gmra.mrb[78].mxu0 %vm512_vm3, %v6428_v33 }
0x21b6   :  { %8578 = vmatpush3.msra.mxu0 %v7500_v24 }
0x2284   :  { %v8569_v47 = vpop.f32.mrb[76].mxu0 }
0x2285   :  { %v6501_v34 = vpop.f32.mrb[77].mxu0 }
0x2286   :  { %8579 = vmatprep.mubr.msk.f32.mxu0 %vm337_vm1, %v6501_v34 }
0x2287   :  { %8580 = vmatmul.mubr.msk.f32.vlgmr.msra.gmra.mrb[48].mxu0 %vm337_vm1, %v8569_v47 }
0x2288   :  { %v8576_v35 = vpop.f32.mrb[78].mxu0 }
0x2289   :  { %v6582_v36 = vpop.f32.mrb[79].mxu0 }
0x228a   :  { %8582 = vmatprep.mubr.msk.f32.mxu0 %vm337_vm1, %v6582_v36 }
0x228b   :  { %8583 = vmatmul.mubr.msk.f32.gmra.mrb[50].mxu0 %vm337_vm1, %v8576_v35 }
0x235a   :  { %v8581_v38 = vpop.f32.mrb[48].mxu0 }
0x235b   :  { %v9025_v43 = vadd.f32 %v8581_v38, %v4358_v37  ;;  %v6671_v45 = vpop.f32.mrb[49].mxu0 }
0x235c   :  { %v9026_v30 = vadd.f32 %v6671_v45, %v4358_v37 }
0x235d   :  { %v10350_v46 = vadd.f32 %v9025_v43, %v9940_v61 }
0x235e   :  { %v10353_v49 = vadd.f32 %v9026_v30, %v9938_v15  ;;  %v8584_v40 = vpop.f32.mrb[50].mxu0  ;;  %v6761_v30 = vrot.slane %v10344_v31, %v3223_v23 }
0x235f   :  { %v9027_v44 = vadd.f32 %v8584_v40, %v4358_v37  ;;  %v6681_v52 = vpop.f32.mrb[51].mxu0  ;;  %v6701_v53 = vsel %vm43_vm0, %v10350_v46, 0.0  ;;  %v6715_v56 = vmul.f32 %v10350_v46, %v10350_v46 }
0x2360   :  { %v9028_v20 = vadd.f32 %v6681_v52, %v4358_v37  ;;  %6702 = vadd.xlane.f32.xlu1 %v6701_v53  ;;  %v6698_v41 = vsel %vm43_vm0, %v10353_v49, 0.0  ;;  %v6714_v61 = vmul.f32 %v10353_v49, %v10353_v49 }
0x2361   :  { %6699 = vadd.xlane.f32.xlu0 %v6698_v41  ;;  %v10364_v15 = vadd.f32 %v9027_v44, %v9954_v32  ;;  %v6721_v57 = vsel %vm43_vm0, %v6715_v56, 0.0 }
0x2362   :  { %v10368_v27 = vadd.f32 %v9028_v20, %v9952_v8  ;;  %v6718_v58 = vsel %vm43_vm0, %v6714_v61, 0.0  ;;  %v6769_v20 = vrot.slane %v10344_v31, %v3231_v26 }
0x2363   :  { %v6707_v59 = vsel %vm43_vm0, %v10364_v15, 0.0  ;;  %v6717_v63 = vmul.f32 %v10364_v15, %v10364_v15 }
0x2364   :  { %6722 = vadd.xlane.f32.xlu1 %v6721_v57  ;;  %v6704_v32 = vsel %vm43_vm0, %v10368_v27, 0.0  ;;  %v6716_v0 = vmul.f32 %v10368_v27, %v10368_v27 }
0x2365   :  { %6719 = vadd.xlane.f32.xlu0 %v6718_v58  ;;  %v6727_v8 = vsel %vm43_vm0, %v6717_v63, 0.0 }
0x2366   :  { %v6724_v1 = vsel %vm43_vm0, %v6716_v0, 0.0 }
0x2368   :  { %6708 = vadd.xlane.f32.xlu1 %v6707_v59 }
0x2369   :  { %6705 = vadd.xlane.f32.xlu0 %v6704_v32 }
0x236c   :  { %6728 = vadd.xlane.f32.xlu1 %v6727_v8 }
0x236d   :  { %6725 = vadd.xlane.f32.xlu0 %v6724_v1 }
0x23ed   :  { %v6703_v48 = vpop.xlane.xlu1 %6702 }
0x23ee   :  { %v6711_v39 = vmul.f32 0.03125, %v6703_v48  ;;  %v6700_v55 = vpop.xlane.xlu0 %6699  ;;  %v9013_v48 = vpack.c.bf16 %v7518_v4, %v7517_v7 }
0x23ef   :  { %v6710_v6 = vmul.f32 0.03125, %v6700_v55  ;;  %v7520_v55 = vld [vmem:[%s10516_s5 + $0x78] sm:$0xff] }
0x23f0   :  { %v6735_v10 = vmul.f32 %v6711_v39, %v6711_v39  ;;  %v6743_v45 = vsub.f32 %v10350_v46, %v6711_v39  ;;  %v7519_v39 = vld [vmem:[%s10516_s5 + $0x70] sm:$0xff] }
0x23f1   :  { %v6723_v9 = vpop.xlane.xlu1 %6722  ;;  %v6734_v51 = vmul.f32 %v6710_v6, %v6710_v6  ;;  %v6742_v44 = vsub.f32 %v10353_v49, %v6710_v6  ;;  %v9017_v6 = vpack.c.bf16 %v7520_v55, %v7519_v39 }
0x23f2   :  { %v6731_v11 = vmul.f32 0.03125, %v6723_v9  ;;  %v6720_v12 = vpop.xlane.xlu0 %6719  ;;  %v6782_v9 = vrot.slane %v10344_v31, %v3243_v62 }
0x23f3   :  { %v6730_v50 = vmul.f32 0.03125, %v6720_v12 }
0x23f4   :  { %v6739_v18 = vsub.f32 %v6731_v11, %v6735_v10 }
0x23f5   :  { %v6738_v19 = vsub.f32 %v6730_v50, %v6734_v51  ;;  %v6709_v13 = vpop.xlane.xlu1 %6708 }
0x23f6   :  { %v6747_v60 = vadd.f32 1e-12, %v6739_v18  ;;  %v6713_v14 = vmul.f32 0.03125, %v6709_v13  ;;  %v6706_v16 = vpop.xlane.xlu0 %6705 }
0x23f7   :  { %v6746_v21 = vadd.f32 1e-12, %v6738_v19  ;;  %v6712_v24 = vmul.f32 0.03125, %v6706_v16 }
0x23f8   :  { %9208 = vrsqrt.f32 %v6747_v60  ;;  %v6737_v29 = vmul.f32 %v6713_v14, %v6713_v14  ;;  %v6745_v46 = vsub.f32 %v10364_v15, %v6713_v14  ;;  %v7513_v15 = vld [vmem:[%s10516_s5 + $0x40] sm:$0xff] }
0x23f9   :  { %9210 = vrsqrt.f32 %v6746_v21  ;;  %v6729_v25 = vpop.xlane.xlu1 %6728  ;;  %v6736_v34 = vmul.f32 %v6712_v24, %v6712_v24  ;;  %v6744_v23 = vsub.f32 %v10368_v27, %v6712_v24  ;;  %v7514_v27 = vld [vmem:[%s10516_s5 + $0x48] sm:$0xff]  ;;  %s9260_s5 = smov [#allocation2]  }
0x23fa   :  { %v6733_v33 = vmul.f32 0.03125, %v6729_v25  ;;  %v6726_v47 = vpop.xlane.xlu0 %6725  ;;  %v9005_v2 = vpack.c.bf16 %v7514_v27, %v7513_v15  ;;  %s7115_s12 = sshll.u32 %s9260_s5, 4  ;;  %s7116_s12 = int_to_ptr.vmem [resolvable:$true] %s7115_s12 }
0x23fb   :  { %v6732_v35 = vmul.f32 0.03125, %v6726_v47  ;;  %s9236_s2 = scalar_lea.vmem %s7116_s12, 512  ;;  %p9241_p1 = scmp.lt.s32.totalorder %s7116_s12, %s7116_s12 }
0x23fc   :  { %v6741_v36 = vsub.f32 %v6733_v33, %v6737_v29  ;;  %9006 = vmatprep.subr.bf16.mxu0 %v9005_v2  ;;  %p9237_p0 = scmp.ne.s32.totalorder %s7116_s12, %s9236_s2  ;;  %p9242_p2 = scmp.lt.s32.totalorder %s9236_s2, %s9236_s2 }
0x23fd   :  { %v6740_v37 = vsub.f32 %v6732_v35, %v6736_v34  ;;  %9008 = vmatpush3.bf16.msra.mxu0 %v9005_v2  ;;  %v6928_v2 = vrot.slane %v10344_v31, %v3388_v54 }
0x23fe   :  { %v6749_v38 = vadd.f32 1e-12, %v6741_v36  ;;  %9010 = vmatprep.subr.bf16.mxu0 %v9009_v28  ;;  %p9243_p3 = por %p9242_p2, %p9241_p1 }
0x23ff   :  { %v6748_v43 = vadd.f32 1e-12, %v6740_v37 }
0x2400   :  { %9212 = vrsqrt.f32 %v6749_v38  ;;  %p9244_p4 = pnand %p9243_p3, %p9237_p0 }
0x2401   :  { %9214 = vrsqrt.f32 %v6748_v43  ;;  %9012 = vmatpush3.bf16.msra.mxu0 %v9009_v28 }
0x2402   :  { %v9209_v40 = vpop.eup %9208  ;;  %9014 = vmatprep.subr.bf16.mxu0 %v9013_v48 }
0x2403   :  { %v9211_v52 = vpop.eup %9210  ;;  %v6755_v53 = vmul.f32 %v9209_v40, %v6743_v45 }
0x2404   :  { %v6754_v56 = vmul.f32 %v9211_v52, %v6742_v44 }
0x2405   :  { %v6763_v41 = vmul.f32 %v6761_v30, %v6755_v53  ;;  %9016 = vmatpush3.bf16.msra.mxu0 %v9013_v48 }
0x2406   :  { %v6762_v61 = vmul.f32 %v6761_v30, %v6754_v56  ;;  %9018 = vmatprep.subr.bf16.mxu0 %v9017_v6 }
0x2407   :  { %v10404_v58 = vadd.f32 %v6769_v20, %v6763_v41 }
0x2408   :  { %v10401_v57 = vadd.f32 %v6769_v20, %v6762_v61 }
0x2409   :  { %9020 = vmatpush3.bf16.msra.mxu0 %v9017_v6 }
0x240a   :  { %v9213_v59 = vpop.eup %9212  ;;  %8593 = vmatprep.mubr.msk.f32.mxu1 %vm43_vm0, %v10401_v57 }
0x240b   :  { %v9215_v49 = vpop.eup %9214  ;;  %8594 = vmatmul.mubr.msk.f32.vlgmr.msra.gmra.mrb[96].mxu1 %vm43_vm0, %v10404_v58  ;;  %v6757_v63 = vmul.f32 %v9213_v59, %v6745_v46 }
0x240c   :  { %v6756_v26 = vmul.f32 %v9215_v49, %v6744_v23 }
0x240d   :  { %v6765_v32 = vmul.f32 %v6761_v30, %v6757_v63 }
0x240e   :  { %v6764_v0 = vmul.f32 %v6761_v30, %v6756_v26 }
0x240f   :  { %v10413_v1 = vadd.f32 %v6769_v20, %v6765_v32 }
0x2410   :  { %v10411_v8 = vadd.f32 %v6769_v20, %v6764_v0 }
0x2412   :  { %8596 = vmatprep.mubr.msk.f32.mxu1 %vm43_vm0, %v10411_v8 }
0x2413   :  { %8597 = vmatmul.mubr.msk.f32.gmra.mrb[98].mxu1 %vm43_vm0, %v10413_v1 }
0x24de   :  { %v8595_v10 = vpop.f32.mrb[96].mxu1 }
0x24df   :  { %v6867_v11 = vadd.f32 %v8595_v10, %v6782_v9  ;;  %v6861_v12 = vpop.f32.mrb[97].mxu1 }
0x24e0   :  { %v6862_v51 = vadd.f32 %v6861_v12, %v6782_v9 }
0x24e1   :  { %v6881_v50 = vmul.f32 %v6867_v11, %v6867_v11 }
0x24e2   :  { %v6880_v18 = vmul.f32 %v6862_v51, %v6862_v51 }
0x24e3   :  { %v6885_v19 = vmul.f32 %v6881_v50, %v6867_v11 }
0x24e4   :  { %v6884_v13 = vmul.f32 %v6880_v18, %v6862_v51 }
0x24e5   :  { %v6889_v60 = vmul.f32 0.044715, %v6885_v19 }
0x24e6   :  { %v6888_v14 = vmul.f32 0.044715, %v6884_v13  ;;  %v8598_v16 = vpop.f32.mrb[98].mxu1 }
0x24e7   :  { %v6893_v21 = vadd.f32 %v6889_v60, %v6867_v11  ;;  %v6877_v24 = vadd.f32 %v8598_v16, %v6782_v9  ;;  %v6871_v25 = vpop.f32.mrb[99].mxu1 }
0x24e8   :  { %v6892_v29 = vadd.f32 %v6888_v14, %v6862_v51  ;;  %v6872_v33 = vadd.f32 %v6871_v25, %v6782_v9 }
0x24e9   :  { %v6897_v47 = vmul.f32 0.7978846, %v6893_v21  ;;  %v6883_v34 = vmul.f32 %v6877_v24, %v6877_v24 }
0x24ea   :  { %v6896_v35 = vmul.f32 0.7978846, %v6892_v29  ;;  %v6882_v62 = vmul.f32 %v6872_v33, %v6872_v33 }
0x24eb   :  { %9216 = vtanh.f32 %v6897_v47  ;;  %v6887_v36 = vmul.f32 %v6883_v34, %v6877_v24 }
0x24ec   :  { %9218 = vtanh.f32 %v6896_v35  ;;  %v6886_v37 = vmul.f32 %v6882_v62, %v6872_v33 }
0x24ed   :  { %v6891_v38 = vmul.f32 0.044715, %v6887_v36 }
0x24ee   :  { %v6890_v43 = vmul.f32 0.044715, %v6886_v37 }
0x24ef   :  { %v6895_v45 = vadd.f32 %v6891_v38, %v6877_v24 }
0x24f0   :  { %v6894_v30 = vadd.f32 %v6890_v43, %v6872_v33 }
0x24f1   :  { %v6899_v40 = vmul.f32 0.7978846, %v6895_v45 }
0x24f2   :  { %v6898_v44 = vmul.f32 0.7978846, %v6894_v30 }
0x24f3   :  { %9220 = vtanh.f32 %v6899_v40 }
0x24f4   :  { %9222 = vtanh.f32 %v6898_v44 }
0x24f5   :  { %v9217_v52 = vpop.eup %9216 }
0x24f6   :  { %v9219_v53 = vpop.eup %9218  ;;  %v6905_v56 = vadd.f32 1.0, %v9217_v52 }
0x24f7   :  { %v6904_v20 = vadd.f32 1.0, %v9219_v53 }
0x24f8   :  { %v6909_v41 = vmul.f32 0.5, %v6905_v56 }
0x24f9   :  { %v6908_v61 = vmul.f32 0.5, %v6904_v20 }
0x24fa   :  { %v6913_v59 = vmul.f32 %v6909_v41, %v6867_v11 }
0x24fb   :  { %v6912_v46 = vmul.f32 %v6908_v61, %v6862_v51 }
0x24fd   :  { %v9221_v23 = vpop.eup %9220  ;;  %8615 = vmatprep.mubr.msk.f32.mxu0 %vm3390_vm4, %v6912_v46 }
0x24fe   :  { %v9223_v49 = vpop.eup %9222  ;;  %8616 = vmatmul.mubr.msk.f32.vlgmr.msra.gmra.mrb[80].mxu0 %vm3390_vm4, %v6913_v59  ;;  %v6907_v63 = vadd.f32 1.0, %v9221_v23 }
0x24ff   :  { %v6906_v26 = vadd.f32 1.0, %v9223_v49 }
0x2500   :  { %v6911_v32 = vmul.f32 0.5, %v6907_v63  ;;  %v7093_v63 = vrot.slane %v10344_v31, %v3554_v3 }
0x2501   :  { %v6910_v0 = vmul.f32 0.5, %v6906_v26 }
0x2502   :  { %v6915_v27 = vmul.f32 %v6911_v32, %v6877_v24 }
0x2503   :  { %v6914_v15 = vmul.f32 %v6910_v0, %v6872_v33 }
0x2505   :  { %8618 = vmatprep.mubr.msk.f32.mxu0 %vm3390_vm4, %v6914_v15 }
0x2506   :  { %8619 = vmatmul.mubr.msk.f32.gmra.mrb[82].mxu0 %vm3390_vm4, %v6915_v27  ;;  %v7101_v27 = vrot.slane %v10344_v31, %v3562_v5 }
0x25d1   :  { %v8617_v42 = vpop.f32.mrb[80].mxu0 }
0x25d2   :  { %v7013_v22 = vadd.f32 %v8617_v42, %v6928_v2  ;;  %v7007_v28 = vpop.f32.mrb[81].mxu0 }
0x25d3   :  { %v7008_v7 = vadd.f32 %v7007_v28, %v6928_v2 }
0x25d4   :  { %v10454_v4 = vadd.f32 %v7013_v22, %v10404_v58 }
0x25d5   :  { %v10457_v48 = vadd.f32 %v7008_v7, %v10401_v57 }
0x25d6   :  { %v7033_v39 = vsel %vm43_vm0, %v10454_v4, 0.0  ;;  %v7047_v55 = vmul.f32 %v10454_v4, %v10454_v4 }
0x25d7   :  { %7034 = vadd.xlane.f32.xlu1 %v7033_v39  ;;  %v7030_v54 = vsel %vm43_vm0, %v10457_v48, 0.0  ;;  %v7046_v6 = vmul.f32 %v10457_v48, %v10457_v48 }
0x25d8   :  { %7031 = vadd.xlane.f32.xlu0 %v7030_v54  ;;  %v7053_v57 = vsel %vm43_vm0, %v7047_v55, 0.0 }
0x25d9   :  { %v8620_v9 = vpop.f32.mrb[82].mxu0  ;;  %v7050_v12 = vsel %vm43_vm0, %v7046_v6, 0.0 }
0x25da   :  { %v7023_v58 = vadd.f32 %v8620_v9, %v6928_v2  ;;  %v7017_v10 = vpop.f32.mrb[83].mxu0 }
0x25db   :  { %v7018_v11 = vadd.f32 %v7017_v10, %v6928_v2  ;;  %7054 = vadd.xlane.f32.xlu1 %v7053_v57 }
0x25dc   :  { %v10470_v51 = vadd.f32 %v7023_v58, %v10413_v1  ;;  %7051 = vadd.xlane.f32.xlu0 %v7050_v12 }
0x25dd   :  { %v10473_v50 = vadd.f32 %v7018_v11, %v10411_v8 }
0x25de   :  { %v7039_v18 = vsel %vm43_vm0, %v10470_v51, 0.0  ;;  %v7049_v19 = vmul.f32 %v10470_v51, %v10470_v51 }
0x25df   :  { %7040 = vadd.xlane.f32.xlu1 %v7039_v18  ;;  %v7036_v13 = vsel %vm43_vm0, %v10473_v50, 0.0  ;;  %v7048_v60 = vmul.f32 %v10473_v50, %v10473_v50 }
0x25e0   :  { %7037 = vadd.xlane.f32.xlu0 %v7036_v13  ;;  %v7059_v1 = vsel %vm43_vm0, %v7049_v19, 0.0 }
0x25e1   :  { %v7056_v8 = vsel %vm43_vm0, %v7048_v60, 0.0 }
0x25e3   :  { %7060 = vadd.xlane.f32.xlu1 %v7059_v1 }
0x25e4   :  { %7057 = vadd.xlane.f32.xlu0 %v7056_v8 }
0x2664   :  { %v7035_v14 = vpop.xlane.xlu1 %7034 }
0x2665   :  { %v7043_v16 = vmul.f32 0.03125, %v7035_v14  ;;  %v7032_v21 = vpop.xlane.xlu0 %7031 }
0x2666   :  { %v7042_v24 = vmul.f32 0.03125, %v7032_v21 }
0x2667   :  { %v7067_v29 = vmul.f32 %v7043_v16, %v7043_v16  ;;  %v7075_v49 = vsub.f32 %v10454_v4, %v7043_v16 }
0x2668   :  { %v7055_v25 = vpop.xlane.xlu1 %7054  ;;  %v7066_v34 = vmul.f32 %v7042_v24, %v7042_v24  ;;  %v7074_v32 = vsub.f32 %v10457_v48, %v7042_v24 }
0x2669   :  { %v7063_v33 = vmul.f32 0.03125, %v7055_v25  ;;  %v7052_v47 = vpop.xlane.xlu0 %7051 }
0x266a   :  { %v7062_v35 = vmul.f32 0.03125, %v7052_v47 }
0x266b   :  { %v7071_v62 = vsub.f32 %v7063_v33, %v7067_v29 }
0x266c   :  { %v7070_v36 = vsub.f32 %v7062_v35, %v7066_v34  ;;  %v7041_v37 = vpop.xlane.xlu1 %7040 }
0x266d   :  { %v7079_v38 = vadd.f32 1e-12, %v7071_v62  ;;  %v7045_v43 = vmul.f32 0.03125, %v7041_v37  ;;  %v7038_v45 = vpop.xlane.xlu0 %7037 }
0x266e   :  { %v7078_v30 = vadd.f32 1e-12, %v7070_v36  ;;  %v7044_v40 = vmul.f32 0.03125, %v7038_v45 }
0x266f   :  { %9224 = vrsqrt.f32 %v7079_v38  ;;  %v7069_v52 = vmul.f32 %v7045_v43, %v7045_v43  ;;  %v7077_v4 = vsub.f32 %v10470_v51, %v7045_v43 }
0x2670   :  { %9226 = vrsqrt.f32 %v7078_v30  ;;  %v7061_v44 = vpop.xlane.xlu1 %7060  ;;  %v7068_v20 = vmul.f32 %v7044_v40, %v7044_v40  ;;  %v7076_v39 = vsub.f32 %v10473_v50, %v7044_v40 }
0x2671   :  { %v7065_v53 = vmul.f32 0.03125, %v7061_v44  ;;  %v7058_v56 = vpop.xlane.xlu0 %7057 }
0x2672   :  { %v7064_v41 = vmul.f32 0.03125, %v7058_v56 }
0x2673   :  { %v7073_v61 = vsub.f32 %v7065_v53, %v7069_v52 }
0x2674   :  { %v7072_v46 = vsub.f32 %v7064_v41, %v7068_v20 }
0x2675   :  { %v7081_v59 = vadd.f32 1e-12, %v7073_v61 }
0x2676   :  { %v7080_v23 = vadd.f32 1e-12, %v7072_v46 }
0x2677   :  { %9228 = vrsqrt.f32 %v7081_v59 }
0x2678   :  { %9230 = vrsqrt.f32 %v7080_v23 }
0x2679   :  { %v9225_v26 = vpop.eup %9224 }
0x267a   :  { %v9227_v0 = vpop.eup %9226  ;;  %v7087_v15 = vmul.f32 %v9225_v26, %v7075_v49 }
0x267b   :  { %v7086_v2 = vmul.f32 %v9227_v0, %v7074_v32 }
0x267c   :  { %v7095_v42 = vmul.f32 %v7093_v63, %v7087_v15 }
0x267d   :  { %v7094_v22 = vmul.f32 %v7093_v63, %v7086_v2 }
0x267e   :  { %v7103_v28 = vadd.f32 %v7101_v27, %v7095_v42 }
0x267f   :  { %v7102_v7 = vadd.f32 %v7101_v27, %v7094_v22 }
0x2680   :  { %7107 = vst.msk [vmem:[#allocation2 + $0x8] sm:$0xff] %vm43_vm0, %v7103_v28 }
0x2681   :  { %v9229_v3 = vpop.eup %9228  ;;  %7106 = vst.msk [vmem:[#allocation2] sm:$0xff] %vm43_vm0, %v7102_v7 }
0x2682   :  { %v9231_v48 = vpop.eup %9230  ;;  %v7089_v55 = vmul.f32 %v9229_v3, %v7077_v4 }
0x2683   :  { %v7088_v54 = vmul.f32 %v9231_v48, %v7076_v39 }
0x2684   :  { %v7097_v17 = vmul.f32 %v7093_v63, %v7089_v55 }
0x2685   :  { %v7096_v5 = vmul.f32 %v7093_v63, %v7088_v54 }
0x2686   :  { %v7105_v31 = vadd.f32 %v7101_v27, %v7097_v17 }
0x2687   :  { %v7104_v6 = vadd.f32 %v7101_v27, %v7096_v5 }
0x2688   :  { %7109 = vst.msk [vmem:[#allocation2 + $0x18] sm:$0xff] %vm43_vm0, %v7105_v31 }
0x2689   :  { %7108 = vst.msk [vmem:[#allocation2 + $0x10] sm:$0xff] %vm43_vm0, %v7104_v6 }
0x268a   :  { %9247 = shalt.err (!%p9244_p4)
}
0x268b   :  { %s9248_s14 = scalar_lea.hbm %s10518_s7, 512 }
0x268c   :  { %p9249_p5 = scmp.ne.s32.totalorder %s10518_s7, %s9248_s14  ;;  %p9252_p6 = scmp.lt.u32.totalorder %s9248_s14, %s10518_s7 }
0x268e   :  { %p9254_p7 = pnand %p9252_p6, %p9249_p5 }
0x2690   :  { %9257 = shalt.err (!%p9254_p7)
}
0x2691   :  { %s9261_s18 = smov 128   ;;  %s9262_s19 = smov 8  }
0x2692   :  { %7121 = dma.vmem_to_hbm [thread:$0]  %s7116_s12, 512, %s10518_s7, [#allocation3], %s9261_s18, %s9261_s18, %s9262_s19  }
0x2693   :  { %9258 = dma.done.wait [#allocation3], 512  }
0x2694   :  { %9259 = vsyncadd [#allocation3], 4294966784 }
0x2695   :  { %7125 = vsyncpa [#allocation3], 1 }

</bundles_post_ra>
